<compile_context>
chip_gen: v6e
topology: v6e:2x2x1
jax: 0.10.0
libtpu: 0.0.40
codegen_flags: <defaults>
</compile_context>

<pallas_src>
from functools import partial

import numpy as np
import jax
import jax.numpy as jnp
from jax import lax
from jax.experimental import pallas as pl
from jax.experimental.pallas import tpu as pltpu

KSIZE = 3
STRIDE = 2


def _conv_out(n, k=KSIZE, s=STRIDE):
    return (n - k) // s + 1


def _round_up(x, m):
    return -(-x // m) * m


def _batch_tiling(B):
    """(TB, B_pad, n_tiles): TB multiple of 8 (sublanes), capped at 128.
    For B > 8 split into >=2 tiles (v7x: 2 TensorCores); for B <= 8 a single
    tile avoids wasted pure-padding grid steps on the sequential v5e/v6e grid."""
    if B <= 8:
        TB = 8
    else:
        TB = min(128, _round_up(-(-B // 2), 8))
    n_tiles = pl.cdiv(B, TB)
    return TB, TB * n_tiles, n_tiles


def prepare_params(params, input_shape):
    """One-time fold of im2col + conv weights + NCHW flatten + linear into
    three GEMM matrices (and spatially-tiled biases). All exact in f32; the
    GEMM matrices are then cast to bf16 for the MXU."""
    C, H, W = input_shape
    H1, W1 = _conv_out(H), _conv_out(W)
    H2, W2 = _conv_out(H1), _conv_out(W1)
    O1 = params["conv1_w"].shape[0]          # 32
    O2 = params["conv2_w"].shape[0]          # 64
    OUT = params["linear_b"].shape[0]
    M1, M2 = H1 * W1, H2 * W2

    K0 = H * W * C                            # 1024
    N1 = M1 * O1                              # 1568
    N2 = M2 * O2                              # 576
    # zero-pad GEMM widths to lane multiples (exact: pads stay 0 through ReLU)
    N1p = _round_up(N1, 128)                  # 1664
    N2p = _round_up(N2, 128)                  # 640
    N3p = _round_up(OUT, 128)                 # 128

    w1 = np.asarray(params["conv1_w"], np.float32)   # (O1, C, 3, 3)
    w2 = np.asarray(params["conv2_w"], np.float32)   # (O2, O1, 3, 3)
    w3 = np.asarray(params["linear_w"], np.float32)  # (OUT, O2*H2*W2) NCHW-flatten
    b1 = np.asarray(params["conv1_b"], np.float32)
    b2 = np.asarray(params["conv2_b"], np.float32)
    b3 = np.asarray(params["linear_b"], np.float32)

    # GEMM 1: NHWC-flat input (row (h*W+w)*C + c) -> conv1 act (col (i*W1+j)*O1 + o)
    G1 = np.zeros((K0, N1p), np.float32)
    for i in range(H1):
        for j in range(W1):
            col = (i * W1 + j) * O1
            for kh in range(KSIZE):
                for kw in range(KSIZE):
                    row = ((STRIDE * i + kh) * W + (STRIDE * j + kw)) * C
                    G1[row:row + C, col:col + O1] = w1[:, :, kh, kw].T

    # GEMM 2: conv1 act -> conv2 act (col (i*W2+j)*O2 + o)
    G2 = np.zeros((N1p, N2p), np.float32)
    for i in range(H2):
        for j in range(W2):
            col = (i * W2 + j) * O2
            for kh in range(KSIZE):
                for kw in range(KSIZE):
                    row = ((STRIDE * i + kh) * W1 + (STRIDE * j + kw)) * O1
                    G2[row:row + O1, col:col + O2] = w2[:, :, kh, kw].T

    # GEMM 3: fold PyTorch's NCHW flatten (c*M2 + r) into the linear weight
    G3 = np.zeros((N2p, N3p), np.float32)
    G3[:N2, :OUT] = w3.reshape(OUT, O2, M2).transpose(2, 1, 0).reshape(N2, OUT)

    # biases tiled over spatial positions, zero-padded to the lane-padded widths
    bias1 = np.zeros((1, N1p), np.float32); bias1[0, :N1] = np.tile(b1, M1)
    bias2 = np.zeros((1, N2p), np.float32); bias2[0, :N2] = np.tile(b2, M2)
    bias3 = np.zeros((1, N3p), np.float32); bias3[0, :OUT] = b3

    return {
        "g1": jnp.asarray(G1, jnp.bfloat16),
        "g2": jnp.asarray(G2, jnp.bfloat16),
        "g3": jnp.asarray(G3, jnp.bfloat16),
        "b1": jnp.asarray(bias1),
        "b2": jnp.asarray(bias2),
        "b3": jnp.asarray(bias3),
    }


# ----------------------------------------------------------------------------
# Fused kernel: one batch tile per grid step; three GEMMs, everything in VMEM.
# ----------------------------------------------------------------------------
def _encoder_kernel(x_ref, g1_ref, b1_ref, g2_ref, b2_ref, g3_ref, b3_ref, o_ref):
    f32 = jnp.float32
    bf16 = jnp.bfloat16

    x = x_ref[...]                                                    # (TB, K0) bf16

    # conv1 (folded im2col) + bias + ReLU
    y1 = jnp.dot(x, g1_ref[...], preferred_element_type=f32) + b1_ref[...]
    y1 = jnp.maximum(y1, 0.0).astype(bf16)                            # (TB, N1p)

    # conv2 (folded im2col) + bias + ReLU
    y2 = jnp.dot(y1, g2_ref[...], preferred_element_type=f32) + b2_ref[...]
    y2 = jnp.maximum(y2, 0.0).astype(bf16)                            # (TB, N2p)

    # NCHW flatten + linear (both folded into g3); lane-dense (TB, 128) store
    o_ref[...] = jnp.dot(y2, g3_ref[...], preferred_element_type=f32) + b3_ref[...]


@partial(jax.jit, static_argnames=("out_dim",))
def simple_visual_encoder(x, prep, out_dim):
    """x: (B, C, H, W) float32 NCHW.  Returns (B, out_dim) float32."""
    B, C, H, W = x.shape
    K0 = H * W * C
    N3p = prep["g3"].shape[1]

    TB, B_pad, n_tiles = _batch_tiling(B)

    # only per-call XLA glue: lane-dense NHWC flatten + bf16 cast (+ batch pad)
    x_mat = x.transpose(0, 2, 3, 1).reshape(B, K0).astype(jnp.bfloat16)
    if B_pad != B:
        x_mat = jnp.pad(x_mat, ((0, B_pad - B), (0, 0)))

    out = pl.pallas_call(
        _encoder_kernel,
        out_shape=jax.ShapeDtypeStruct((B_pad, N3p), jnp.float32),
        grid=(n_tiles,),
        in_specs=[
            pl.BlockSpec((TB, K0), lambda b: (b, 0)),                 # x (batch tile)
            pl.BlockSpec(prep["g1"].shape, lambda b: (0, 0)),         # folded conv1
            pl.BlockSpec(prep["b1"].shape, lambda b: (0, 0)),
            pl.BlockSpec(prep["g2"].shape, lambda b: (0, 0)),         # folded conv2
            pl.BlockSpec(prep["b2"].shape, lambda b: (0, 0)),
            pl.BlockSpec(prep["g3"].shape, lambda b: (0, 0)),         # folded linear
            pl.BlockSpec(prep["b3"].shape, lambda b: (0, 0)),
        ],
        out_specs=pl.BlockSpec((TB, N3p), lambda b: (b, 0)),
        compiler_params=pltpu.CompilerParams(
            dimension_semantics=("parallel",),         # shard batch tiles on v7x TCs
            vmem_limit_bytes=48 * 1024 * 1024,         # > v5e's 16 MiB default scoped
        ),
    )(x_mat, prep["g1"], prep["b1"], prep["g2"], prep["b2"],
      prep["g3"], prep["b3"])
    return out[:B, :out_dim]


# ----------------------------------------------------------------------------
# Pure-JAX f32 reference (for the silent sanity check).
# ----------------------------------------------------------------------------
def _reference(x, params):
    dn1 = lax.conv_dimension_numbers(x.shape, params["conv1_w"].shape,
                                     ("NCHW", "OIHW", "NCHW"))
    y = lax.conv_general_dilated(x, params["conv1_w"], (2, 2), "VALID",
                                 dimension_numbers=dn1)
    y = jax.nn.relu(y + params["conv1_b"][None, :, None, None])
    dn2 = lax.conv_dimension_numbers(y.shape, params["conv2_w"].shape,
                                     ("NCHW", "OIHW", "NCHW"))
    y = lax.conv_general_dilated(y, params["conv2_w"], (2, 2), "VALID",
                                 dimension_numbers=dn2)
    y = jax.nn.relu(y + params["conv2_b"][None, :, None, None])
    y = y.reshape(y.shape[0], -1)
    return y @ params["linear_w"].T + params["linear_b"]


def make_params(key, in_ch, H, W, out_dim):
    h = _conv_out(_conv_out(H))
    w = _conv_out(_conv_out(W))
    conv_output_dim = 64 * h * w
    k1, k2, k3, k4, k5, k6 = jax.random.split(key, 6)
    return {
        "conv1_w": 0.1 * jax.random.normal(k1, (32, in_ch, 3, 3), jnp.float32),
        "conv1_b": 0.1 * jax.random.normal(k2, (32,), jnp.float32),
        "conv2_w": 0.1 * jax.random.normal(k3, (64, 32, 3, 3), jnp.float32),
        "conv2_b": 0.1 * jax.random.normal(k4, (64,), jnp.float32),
        "linear_w": 0.05 * jax.random.normal(k5, (out_dim, conv_output_dim), jnp.float32),
        "linear_b": 0.05 * jax.random.normal(k6, (out_dim,), jnp.float32),
    }


if __name__ == "__main__":
    B, C, H, W = 2, 4, 16, 16     # input_shape = (4, 16, 16)
    OUT_DIM = 32                  # output_shape = (32,)

    key = jax.random.PRNGKey(0)
    kx, kp = jax.random.split(key)
    x = jax.random.normal(kx, (B, C, H, W), jnp.float32)
    params = make_params(kp, C, H, W, OUT_DIM)
    prep = prepare_params(params, (C, H, W))   # one-time fold into 3 GEMM matrices

    out = simple_visual_encoder(x, prep, out_dim=OUT_DIM)
    out = jax.block_until_ready(out)

    ref = _reference(x, params)
    assert out.shape == (B, OUT_DIM), out.shape
    max_err = float(jnp.max(jnp.abs(out - ref)))
    # bf16 MXU inputs with f32 accumulation vs a pure-f32 reference -> relaxed tol.
    assert max_err < 5e-2, max_err

    print("KERNEL_OK")
</pallas_src>

<mosaic_0001>
module attributes {stable_mosaic.version = 11 : i64} {
  func.func @_encoder_kernel(%arg0: i32, %arg1: memref<8x1024xbf16, #tpu.memory_space<vmem>>, %arg2: memref<1024x1664xbf16, #tpu.memory_space<vmem>>, %arg3: memref<1x1664xf32, #tpu.memory_space<vmem>>, %arg4: memref<1664x640xbf16, #tpu.memory_space<vmem>>, %arg5: memref<1x640xf32, #tpu.memory_space<vmem>>, %arg6: memref<640x128xbf16, #tpu.memory_space<vmem>>, %arg7: memref<1x128xf32, #tpu.memory_space<vmem>>, %arg8: memref<8x128xf32, #tpu.memory_space<vmem>>) attributes {dimension_semantics = [#tpu.dimension_semantics<parallel>], iteration_bounds = array<i64: 1>, scalar_prefetch = 0 : i64, scratch_operands = 0 : i64, tpu.core_type = #tpu.core_type<tc>, window_params = [{transform_indices = @transform_0, window_bounds = array<i64: 8, 1024>}, {pipeline_mode = #tpu.pipeline_mode<synchronous>, transform_indices = @transform_1, window_bounds = array<i64: 1024, 1664>}, {pipeline_mode = #tpu.pipeline_mode<synchronous>, transform_indices = @transform_2, window_bounds = array<i64: 1, 1664>}, {pipeline_mode = #tpu.pipeline_mode<synchronous>, transform_indices = @transform_3, window_bounds = array<i64: 1664, 640>}, {pipeline_mode = #tpu.pipeline_mode<synchronous>, transform_indices = @transform_4, window_bounds = array<i64: 1, 640>}, {pipeline_mode = #tpu.pipeline_mode<synchronous>, transform_indices = @transform_5, window_bounds = array<i64: 640, 128>}, {pipeline_mode = #tpu.pipeline_mode<synchronous>, transform_indices = @transform_6, window_bounds = array<i64: 1, 128>}, {transform_indices = @transform_7, window_bounds = array<i64: 8, 128>}]} {
    %c0 = arith.constant 0 : index
    %c0_0 = arith.constant 0 : index
    %0 = vector.load %arg1[%c0, %c0_0] : memref<8x1024xbf16, #tpu.memory_space<vmem>>, vector<8x1024xbf16>
    %c0_1 = arith.constant 0 : index
    %c0_2 = arith.constant 0 : index
    %1 = vector.load %arg2[%c0_1, %c0_2] : memref<1024x1664xbf16, #tpu.memory_space<vmem>>, vector<1024x1664xbf16>
    %cst = arith.constant dense<0.000000e+00> : vector<8x1664xf32>
    %2 = tpu.matmul %0, %1, %cst {dimension_numbers = #tpu.dot_dimension_numbers<[1], [0], [0], [1], [0, 0, 1, 1], [], []>} : vector<8x1024xbf16>, vector<1024x1664xbf16>, vector<8x1664xf32> -> vector<8x1664xf32>
    %c0_3 = arith.constant 0 : index
    %c0_4 = arith.constant 0 : index
    %3 = vector.load %arg3[%c0_3, %c0_4] : memref<1x1664xf32, #tpu.memory_space<vmem>>, vector<1x1664xf32>
    %4 = vector.broadcast %3 : vector<1x1664xf32> to vector<8x1664xf32>
    %5 = arith.addf %2, %4 : vector<8x1664xf32>
    %cst_5 = arith.constant 0.000000e+00 : f32
    %6 = vector.broadcast %cst_5 : f32 to vector<8x1664xf32>
    %7 = arith.maximumf %5, %6 : vector<8x1664xf32>
    %8 = arith.truncf %7 : vector<8x1664xf32> to vector<8x1664xbf16>
    %c0_6 = arith.constant 0 : index
    %c0_7 = arith.constant 0 : index
    %9 = vector.load %arg4[%c0_6, %c0_7] : memref<1664x640xbf16, #tpu.memory_space<vmem>>, vector<1664x640xbf16>
    %cst_8 = arith.constant dense<0.000000e+00> : vector<8x640xf32>
    %10 = tpu.matmul %8, %9, %cst_8 {dimension_numbers = #tpu.dot_dimension_numbers<[1], [0], [0], [1], [0, 0, 1, 1], [], []>} : vector<8x1664xbf16>, vector<1664x640xbf16>, vector<8x640xf32> -> vector<8x640xf32>
    %c0_9 = arith.constant 0 : index
    %c0_10 = arith.constant 0 : index
    %11 = vector.load %arg5[%c0_9, %c0_10] : memref<1x640xf32, #tpu.memory_space<vmem>>, vector<1x640xf32>
    %12 = vector.broadcast %11 : vector<1x640xf32> to vector<8x640xf32>
    %13 = arith.addf %10, %12 : vector<8x640xf32>
    %cst_11 = arith.constant 0.000000e+00 : f32
    %14 = vector.broadcast %cst_11 : f32 to vector<8x640xf32>
    %15 = arith.maximumf %13, %14 : vector<8x640xf32>
    %16 = arith.truncf %15 : vector<8x640xf32> to vector<8x640xbf16>
    %c0_12 = arith.constant 0 : index
    %c0_13 = arith.constant 0 : index
    %17 = vector.load %arg6[%c0_12, %c0_13] : memref<640x128xbf16, #tpu.memory_space<vmem>>, vector<640x128xbf16>
    %cst_14 = arith.constant dense<0.000000e+00> : vector<8x128xf32>
    %18 = tpu.matmul %16, %17, %cst_14 {dimension_numbers = #tpu.dot_dimension_numbers<[1], [0], [0], [1], [0, 0, 1, 1], [], []>} : vector<8x640xbf16>, vector<640x128xbf16>, vector<8x128xf32> -> vector<8x128xf32>
    %c0_15 = arith.constant 0 : index
    %c0_16 = arith.constant 0 : index
    %19 = vector.load %arg7[%c0_15, %c0_16] : memref<1x128xf32, #tpu.memory_space<vmem>>, vector<1x128xf32>
    %20 = vector.broadcast %19 : vector<1x128xf32> to vector<8x128xf32>
    %21 = arith.addf %18, %20 : vector<8x128xf32>
    %c0_17 = arith.constant 0 : index
    %c0_18 = arith.constant 0 : index
    %22 = vector.load %arg8[%c0_17, %c0_18] : memref<8x128xf32, #tpu.memory_space<vmem>>, vector<8x128xf32>
    tpu.vector_store %arg8[%c0_17, %c0_18], %21 {strides = array<i32>} : memref<8x128xf32, #tpu.memory_space<vmem>>, vector<8x128xf32>,
    return
  }
  func.func @transform_0(%arg0: i32) -> (i32, i32) {
    %c0_i32 = arith.constant 0 : i32
    %c0_i32_0 = arith.constant 0 : i32
    return %arg0, %c0_i32 : i32, i32
  }
  func.func @transform_1(%arg0: i32) -> (i32, i32) {
    %c0_i32 = arith.constant 0 : i32
    %c0_i32_0 = arith.constant 0 : i32
    %c0_i32_1 = arith.constant 0 : i32
    return %c0_i32, %c0_i32_0 : i32, i32
  }
  func.func @transform_2(%arg0: i32) -> (i32, i32) {
    %c0_i32 = arith.constant 0 : i32
    %c0_i32_0 = arith.constant 0 : i32
    %c0_i32_1 = arith.constant 0 : i32
    return %c0_i32, %c0_i32_0 : i32, i32
  }
  func.func @transform_3(%arg0: i32) -> (i32, i32) {
    %c0_i32 = arith.constant 0 : i32
    %c0_i32_0 = arith.constant 0 : i32
    %c0_i32_1 = arith.constant 0 : i32
    return %c0_i32, %c0_i32_0 : i32, i32
  }
  func.func @transform_4(%arg0: i32) -> (i32, i32) {
    %c0_i32 = arith.constant 0 : i32
    %c0_i32_0 = arith.constant 0 : i32
    %c0_i32_1 = arith.constant 0 : i32
    return %c0_i32, %c0_i32_0 : i32, i32
  }
  func.func @transform_5(%arg0: i32) -> (i32, i32) {
    %c0_i32 = arith.constant 0 : i32
    %c0_i32_0 = arith.constant 0 : i32
    %c0_i32_1 = arith.constant 0 : i32
    return %c0_i32, %c0_i32_0 : i32, i32
  }
  func.func @transform_6(%arg0: i32) -> (i32, i32) {
    %c0_i32 = arith.constant 0 : i32
    %c0_i32_0 = arith.constant 0 : i32
    %c0_i32_1 = arith.constant 0 : i32
    return %c0_i32, %c0_i32_0 : i32, i32
  }
  func.func @transform_7(%arg0: i32) -> (i32, i32) {
    %c0_i32 = arith.constant 0 : i32
    %c0_i32_0 = arith.constant 0 : i32
    return %arg0, %c0_i32 : i32, i32
  }
}

</mosaic_0001>

<bundles_post_ra>
// kernel: simple_visual_encoder.1
= control target key start
LH: loop header
LB: loop body
LE: loop exit
PB: predicated region body
PF: predicated region fallthrough
CT: control target
= control target key end

     0   :  { %12 = vsyncpa [#allocation3], 0  ;;  %s15469_s0 = inlined_call_operand.vmem [shape: bf16[8,1024], index: 0, kind: input, shape index: {}]   ;;  %s15470_s1 = inlined_call_operand.hbm [shape: bf16[1024,1664], index: 1, kind: input, shape index: {}]   ;;  %s15471_s2 = inlined_call_operand.hbm [shape: f32[1,1664], index: 2, kind: input, shape index: {}]   ;;  %s15472_s3 = inlined_call_operand.hbm [shape: bf16[1664,640], index: 3, kind: input, shape index: {}]   ;;  %s15473_s4 = inlined_call_operand.hbm [shape: f32[1,640], index: 4, kind: input, shape index: {}]   ;;  %s15474_s5 = inlined_call_operand.hbm [shape: bf16[640,128], index: 5, kind: input, shape index: {}]   ;;  %s15475_s6 = inlined_call_operand.hbm [shape: f32[1,128], index: 6, kind: input, shape index: {}]   ;;  %s15476_s7 = inlined_call_operand.vmem [shape: f32[8,128], index: 7, kind: output, shape index: {}]  }
   0x1   :  { %13 = vsyncpa [#allocation5], 0 }
   0x2   :  { %14 = vsyncpa [#allocation8], 0 }
   0x3   :  { %15 = vsyncpa [#allocation11], 0  ;;  %s15032_s24 = smov [#allocation4]   ;;  %s15033_s26 = smov [#allocation7]  }
   0x4   :  { %s36_s25 = sshll.u32 %s15032_s24, 4  ;;  %s58_s27 = sshll.u32 %s15033_s26, 4  ;;  %s37_s25 = int_to_ptr.vmem [resolvable:$true] %s36_s25  ;;  %s59_s27 = int_to_ptr.vmem [resolvable:$true] %s58_s27 }
   0x5   :  { %s14912_s28 = scalar_lea.vmem %s37_s25, 208  ;;  %s14916_s29 = scalar_lea.vmem %s37_s25, 224 }
   0x6   :  { %p14913_p0 = scmp.ne.s32.totalorder %s37_s25, %s14912_s28  ;;  %p14917_p1 = scmp.lt.s32.totalorder %s37_s25, %s37_s25 }
   0x7   :  { %p14918_p2 = scmp.lt.s32.totalorder %s14916_s29, %s14912_s28 }
   0x9   :  { %p14919_p3 = por %p14918_p2, %p14917_p1 }
   0xb   :  { %p14920_p4 = pnand %p14919_p3, %p14913_p0 }
   0xd   :  { %14923 = shalt.err (!%p14920_p4)
}
   0xe   :  { %39 = dma.hbm_to_vmem [thread:$0]  %s15471_s2, 208, %s37_s25, [#allocation5]  }
   0xf   :  { %s14932_s9 = scalar_lea.vmem %s59_s27, 80  ;;  %s14936_s10 = scalar_lea.vmem %s59_s27, 96 }
  0x10   :  { %p14933_p5 = scmp.ne.s32.totalorder %s59_s27, %s14932_s9  ;;  %p14937_p6 = scmp.lt.s32.totalorder %s59_s27, %s59_s27 }
  0x11   :  { %p14938_p7 = scmp.lt.s32.totalorder %s14936_s10, %s14932_s9 }
  0x13   :  { %p14939_p8 = por %p14938_p7, %p14937_p6 }
  0x15   :  { %p14940_p9 = pnand %p14939_p8, %p14933_p5 }
  0x17   :  { %14943 = shalt.err (!%p14940_p9)
}
  0x18   :  { %61 = dma.hbm_to_vmem [thread:$0]  %s15473_s4, 80, %s59_s27, [#allocation8]  }
  0x19   :  { %s15034_s13 = smov [#allocation2]  }
  0x1a   :  { %s23_s14 = sshll.u32 %s15034_s13, 4  ;;  %s24_s14 = int_to_ptr.vmem [resolvable:$true] %s23_s14 }
  0x1b   :  { %s14952_s15 = scalar_lea.vmem %s24_s14, 106496  ;;  %p14957_p11 = scmp.lt.s32.totalorder %s24_s14, %s24_s14 }
  0x1c   :  { %p14953_p10 = scmp.ne.s32.totalorder %s24_s14, %s14952_s15  ;;  %p14958_p12 = scmp.lt.s32.totalorder %s14952_s15, %s14952_s15 }
  0x1e   :  { %p14959_p13 = por %p14958_p12, %p14957_p11 }
  0x20   :  { %p14960_p0 = pnand %p14959_p13, %p14953_p10 }
  0x22   :  { %14963 = shalt.err (!%p14960_p0)
}
  0x23   :  { %s15035_s2 = smov 832   ;;  %s15036_s16 = smov 52  }
  0x24   :  { %29 = dma.hbm_to_vmem [thread:$0]  %s15470_s1, 106496, %s24_s14, [#allocation3], %s15035_s2, %s15035_s2, %s15036_s16  }
  0x25   :  { %s15037_s19 = smov [#allocation6]  }
  0x26   :  { %s45_s20 = sshll.u32 %s15037_s19, 4  ;;  %s46_s20 = int_to_ptr.vmem [resolvable:$true] %s45_s20 }
  0x27   :  { %s14972_s4 = scalar_lea.vmem %s46_s20, 66560  ;;  %p14977_p2 = scmp.lt.s32.totalorder %s46_s20, %s46_s20 }
  0x28   :  { %p14973_p1 = scmp.ne.s32.totalorder %s46_s20, %s14972_s4  ;;  %p14978_p3 = scmp.lt.s32.totalorder %s14972_s4, %s14972_s4 }
  0x2a   :  { %p14979_p4 = por %p14978_p3, %p14977_p2 }
  0x2c   :  { %p14980_p5 = pnand %p14979_p4, %p14973_p1 }
  0x2e   :  { %14983 = shalt.err (!%p14980_p5)
}
  0x2f   :  { %s15038_s21 = smov 320   ;;  %s15039_s22 = smov 20  }
  0x30   :  { %51 = dma.hbm_to_vmem [thread:$0]  %s15472_s3, 66560, %s46_s20, [#allocation5], %s15038_s21, %s15038_s21, %s15039_s22  }
  0x31   :  { %s15040_s25 = smov [#allocation9]  }
  0x32   :  { %s67_s26 = sshll.u32 %s15040_s25, 4  ;;  %s68_s26 = int_to_ptr.vmem [resolvable:$true] %s67_s26 }
  0x33   :  { %s14992_s1 = scalar_lea.vmem %s68_s26, 5120  ;;  %p14997_p7 = scmp.lt.s32.totalorder %s68_s26, %s68_s26 }
  0x34   :  { %p14993_p6 = scmp.ne.s32.totalorder %s68_s26, %s14992_s1  ;;  %p14998_p8 = scmp.lt.s32.totalorder %s14992_s1, %s14992_s1 }
  0x36   :  { %p14999_p9 = por %p14998_p8, %p14997_p7 }
  0x38   :  { %p15000_p10 = pnand %p14999_p9, %p14993_p6 }
  0x3a   :  { %15003 = shalt.err (!%p15000_p10)
}
  0x3b   :  { %s15041_s27 = smov 64   ;;  %s15042_s28 = smov 4  }
  0x3c   :  { %73 = dma.hbm_to_vmem [thread:$0]  %s15474_s5, 5120, %s68_s26, [#allocation8], %s15041_s27, %s15041_s27, %s15042_s28  }
  0x3d   :  { %s15043_s8 = smov [#allocation10]  }
  0x3e   :  { %s80_s9 = sshll.u32 %s15043_s8, 4  ;;  %s81_s9 = int_to_ptr.vmem [resolvable:$true] %s80_s9 }
  0x3f   :  { %s15012_s3 = scalar_lea.vmem %s81_s9, 16  ;;  %s15016_s10 = scalar_lea.vmem %s81_s9, 32 }
  0x40   :  { %p15013_p11 = scmp.ne.s32.totalorder %s81_s9, %s15012_s3  ;;  %p15017_p12 = scmp.lt.s32.totalorder %s81_s9, %s81_s9 }
  0x41   :  { %p15018_p13 = scmp.lt.s32.totalorder %s15016_s10, %s15012_s3 }
  0x43   :  { %p15019_p0 = por %p15018_p13, %p15017_p12 }
  0x45   :  { %p15020_p1 = pnand %p15019_p0, %p15013_p11 }
  0x47   :  { %15023 = shalt.err (!%p15020_p1)
}
  0x48   :  { %83 = dma.hbm_to_vmem [thread:$0]  %s15475_s6, 16, %s81_s9, [#allocation11]  }
  0x49   :  { %15024 = dma.done.wait [#allocation3], 106496  }
  0x4a   :  { %15025 = vsyncadd [#allocation3], 4294860800 }
  0x4b   :  { %15026 = dma.done.wait [#allocation5], 66768  }
  0x4c   :  { %15027 = vsyncadd [#allocation5], 4294900528 }
  0x4d   :  { %15028 = dma.done.wait [#allocation8], 5200  }
  0x4e   :  { %15029 = vsyncadd [#allocation8], 4294962096 }
  0x4f   :  { %15030 = dma.done.wait [#allocation11], 16  }
  0x50   :  { %15031 = vsyncadd [#allocation11], 4294967280  ;;  %v12907_v0 = vld [vmem:[#allocation2 + $0x2dc] ss:$52 sps:$4 sm:$0xff]   ;;  %v12911_v2 = vld [vmem:[#allocation2 + $0x2d8] ss:$52 sps:$4 sm:$0xff]  }
  0x51   :  { %v12909_v1 = vld [vmem:[#allocation2 + $0x95c] ss:$52 sps:$4 sm:$0xff]   ;;  %5324 = vmatprep.subr.bf16.mxu0 %v12907_v0  ;;  %v12912_v3 = vld [vmem:[#allocation2 + $0x958] ss:$52 sps:$4 sm:$0xff]   ;;  %v12913_v4 = vld [vmem:[#allocation2 + $0x274] ss:$52 sps:$4 sm:$0xff]  }
  0x52   :  { %5365 = vmatprep.subr.bf16.mxu1 %v12909_v1  ;;  %5325 = vmatpush1.bf16.msra.mxu0 %v12911_v2  ;;  %v12915_v5 = vld [vmem:[#allocation2 + $0x8f4] ss:$52 sps:$4 sm:$0xff]   ;;  %v12917_v6 = vld [vmem:[#allocation2 + $0x270] ss:$52 sps:$4 sm:$0xff]   ;;  %v12919_v8 = vld [vmem:[#allocation2 + $0x20c] ss:$52 sps:$4 sm:$0xff]  }
  0x53   :  { %5366 = vmatpush1.bf16.msra.mxu1 %v12912_v3  ;;  %5326 = vmatprep.subr.bf16.mxu0 %v12913_v4  ;;  %v12918_v7 = vld [vmem:[#allocation2 + $0x8f0] ss:$52 sps:$4 sm:$0xff]   ;;  %v12921_v9 = vld [vmem:[#allocation2 + $0x88c] ss:$52 sps:$4 sm:$0xff]   ;;  %v12923_v10 = vld [vmem:[#allocation2 + $0x208] ss:$52 sps:$4 sm:$0xff]  }
  0x54   :  { %5367 = vmatprep.subr.bf16.mxu1 %v12915_v5  ;;  %v12924_v11 = vld [vmem:[#allocation2 + $0x888] ss:$52 sps:$4 sm:$0xff]   ;;  %v12925_v12 = vld [vmem:[#allocation2 + $0x1a4] ss:$52 sps:$4 sm:$0xff]   ;;  %v12929_v14 = vld [vmem:[#allocation2 + $0x1a0] ss:$52 sps:$4 sm:$0xff]  }
  0x55   :  { %v12927_v13 = vld [vmem:[#allocation2 + $0x824] ss:$52 sps:$4 sm:$0xff]   ;;  %v12930_v15 = vld [vmem:[#allocation2 + $0x820] ss:$52 sps:$4 sm:$0xff]   ;;  %v12931_v16 = vld [vmem:[#allocation2 + $0x13c] ss:$52 sps:$4 sm:$0xff]  }
  0x56   :  { %5327 = vmatpush1.bf16.msra.mxu0 %v12917_v6  ;;  %v12933_v17 = vld [vmem:[#allocation2 + $0x7bc] ss:$52 sps:$4 sm:$0xff]   ;;  %v12935_v18 = vld [vmem:[#allocation2 + $0x138] ss:$52 sps:$4 sm:$0xff]   ;;  %v12937_v20 = vld [vmem:[#allocation2 + $0xd4] ss:$52 sps:$4 sm:$0xff]  }
  0x57   :  { %5368 = vmatpush1.bf16.msra.mxu1 %v12918_v7  ;;  %5328 = vmatprep.subr.bf16.mxu0 %v12919_v8  ;;  %v12936_v19 = vld [vmem:[#allocation2 + $0x7b8] ss:$52 sps:$4 sm:$0xff]   ;;  %v12939_v21 = vld [vmem:[#allocation2 + $0x754] ss:$52 sps:$4 sm:$0xff]   ;;  %v12941_v22 = vld [vmem:[#allocation2 + $0xd0] ss:$52 sps:$4 sm:$0xff]  }
  0x58   :  { %5369 = vmatprep.subr.bf16.mxu1 %v12921_v9  ;;  %v12942_v23 = vld [vmem:[#allocation2 + $0x750] ss:$52 sps:$4 sm:$0xff]   ;;  %v12943_v24 = vld [vmem:[#allocation2 + $0x6c] ss:$52 sps:$4 sm:$0xff]   ;;  %v12947_v26 = vld [vmem:[#allocation2 + $0x68] ss:$52 sps:$4 sm:$0xff]  }
  0x59   :  { %v12945_v25 = vld [vmem:[#allocation2 + $0x6ec] ss:$52 sps:$4 sm:$0xff]   ;;  %v12948_v27 = vld [vmem:[#allocation2 + $0x6e8] ss:$52 sps:$4 sm:$0xff]   ;;  %v12949_v28 = vld [vmem:[#allocation2 + $0x4] ss:$52 sps:$4 sm:$0xff]  }
  0x5a   :  { %5329 = vmatpush1.bf16.msra.mxu0 %v12923_v10  ;;  %v12951_v29 = vld [vmem:[#allocation2 + $0x684] ss:$52 sps:$4 sm:$0xff]   ;;  %v12953_v30 = vld [vmem:[#allocation2] ss:$52 sps:$4 sm:$0xff]   ;;  %v12955_v32 = vld [vmem:[#allocation2 + $0x61c] ss:$52 sps:$4 sm:$0xff]  }
  0x5b   :  { %5370 = vmatpush1.bf16.msra.mxu1 %v12924_v11  ;;  %5330 = vmatprep.subr.bf16.mxu0 %v12925_v12  ;;  %v12954_v31 = vld [vmem:[#allocation2 + $0x680] ss:$52 sps:$4 sm:$0xff]   ;;  %v12957_v33 = vld [vmem:[#allocation2 + $0xc9c] ss:$52 sps:$4 sm:$0xff]   ;;  %v12959_v34 = vld [vmem:[#allocation2 + $0x618] ss:$52 sps:$4 sm:$0xff]  }
  0x5c   :  { %5371 = vmatprep.subr.bf16.mxu1 %v12927_v13  ;;  %v12960_v35 = vld [vmem:[#allocation2 + $0xc98] ss:$52 sps:$4 sm:$0xff]   ;;  %v12961_v36 = vld [vmem:[#allocation2 + $0x5b4] ss:$52 sps:$4 sm:$0xff]   ;;  %v12965_v38 = vld [vmem:[#allocation2 + $0x5b0] ss:$52 sps:$4 sm:$0xff]  }
  0x5d   :  { %v12963_v37 = vld [vmem:[#allocation2 + $0xc34] ss:$52 sps:$4 sm:$0xff]   ;;  %v12966_v39 = vld [vmem:[#allocation2 + $0xc30] ss:$52 sps:$4 sm:$0xff]   ;;  %v12967_v40 = vld [vmem:[#allocation2 + $0x54c] ss:$52 sps:$4 sm:$0xff]  }
  0x5e   :  { %5331 = vmatpush1.bf16.msra.mxu0 %v12929_v14  ;;  %v12969_v41 = vld [vmem:[#allocation2 + $0xbcc] ss:$52 sps:$4 sm:$0xff]   ;;  %v12971_v42 = vld [vmem:[#allocation2 + $0x548] ss:$52 sps:$4 sm:$0xff]   ;;  %v12973_v44 = vld [vmem:[#allocation2 + $0x4e4] ss:$52 sps:$4 sm:$0xff]  }
  0x5f   :  { %5372 = vmatpush1.bf16.msra.mxu1 %v12930_v15  ;;  %5332 = vmatprep.subr.bf16.mxu0 %v12931_v16  ;;  %v12972_v43 = vld [vmem:[#allocation2 + $0xbc8] ss:$52 sps:$4 sm:$0xff]   ;;  %v12975_v45 = vld [vmem:[#allocation2 + $0xb64] ss:$52 sps:$4 sm:$0xff]   ;;  %v12977_v49 = vld [vmem:[#allocation2 + $0x4e0] ss:$52 sps:$4 sm:$0xff]  }
  0x60   :  { %5373 = vmatprep.subr.bf16.mxu1 %v12933_v17  ;;  %v103_v46 = vld [vmem:[%s15469_s0] sm:$0xff]  ;;  %v104_v48 = vld [vmem:[%s15469_s0 + $0x8] sm:$0xff]  ;;  %v12979_v52 = vld [vmem:[#allocation2 + $0x47c] ss:$52 sps:$4 sm:$0xff]   ;;  %vm15046_vm0 = vmmov 0  }
  0x61   :  { %v15108_v47 = vcombine.high %v103_v46, %v103_v46  ;;  %v12978_v50 = vld [vmem:[#allocation2 + $0xb60] ss:$52 sps:$4 sm:$0xff]   ;;  %v15113_v51 = vcombine.high %v104_v48, %v104_v48  ;;  %v12981_v53 = vld [vmem:[#allocation2 + $0xafc] ss:$52 sps:$4 sm:$0xff]   ;;  %v12983_v54 = vld [vmem:[#allocation2 + $0x478] ss:$52 sps:$4 sm:$0xff]   ;;  %v15117_v6 = vcombine.low %v103_v46, %v103_v46  ;;  %v15119_v7 = vcombine.low %v104_v48, %v104_v48 }
  0x62   :  { %5333 = vmatpush1.bf16.msra.mxu0 %v12935_v18  ;;  %v12984_v55 = vld [vmem:[#allocation2 + $0xaf8] ss:$52 sps:$4 sm:$0xff]   ;;  %v12985_v56 = vld [vmem:[#allocation2 + $0x414] ss:$52 sps:$4 sm:$0xff]   ;;  %v12989_v58 = vld [vmem:[#allocation2 + $0x410] ss:$52 sps:$4 sm:$0xff]  }
  0x63   :  { %5374 = vmatpush1.bf16.msra.mxu1 %v12936_v19  ;;  %5334 = vmatprep.subr.bf16.mxu0 %v12937_v20  ;;  %v12987_v57 = vld [vmem:[#allocation2 + $0xa94] ss:$52 sps:$4 sm:$0xff]   ;;  %v12990_v59 = vld [vmem:[#allocation2 + $0xa90] ss:$52 sps:$4 sm:$0xff]   ;;  %v12991_v60 = vld [vmem:[#allocation2 + $0x3ac] ss:$52 sps:$4 sm:$0xff]  }
  0x64   :  { %5375 = vmatprep.subr.bf16.mxu1 %v12939_v21  ;;  %5356 = vmatprep.mubr.bf16.mxu0 %v15108_v47  ;;  %v12993_v61 = vld [vmem:[#allocation2 + $0xa2c] ss:$52 sps:$4 sm:$0xff]   ;;  %v12995_v62 = vld [vmem:[#allocation2 + $0x3a8] ss:$52 sps:$4 sm:$0xff]   ;;  %v12997_v0 = vld [vmem:[#allocation2 + $0x344] ss:$52 sps:$4 sm:$0xff]  }
  0x65   :  { %5397 = vmatprep.mubr.bf16.mxu1 %v15113_v51  ;;  %v12996_v63 = vld [vmem:[#allocation2 + $0xa28] ss:$52 sps:$4 sm:$0xff]   ;;  %v12999_v1 = vld [vmem:[#allocation2 + $0x9c4] ss:$52 sps:$4 sm:$0xff]   ;;  %v13001_v2 = vld [vmem:[#allocation2 + $0x340] ss:$52 sps:$4 sm:$0xff]  }
  0x66   :  { %5335 = vmatpush1.bf16.msra.mxu0 %v12941_v22  ;;  %v13002_v3 = vld [vmem:[#allocation2 + $0x9c0] ss:$52 sps:$4 sm:$0xff]   ;;  %v13008_v4 = vld [vmem:[#allocation2 + $0xfdc] ss:$52 sps:$4 sm:$0xff]   ;;  %v13006_v8 = vld [vmem:[#allocation2 + $0xfd8] ss:$52 sps:$4 sm:$0xff]  }
  0x67   :  { %5376 = vmatpush1.bf16.msra.mxu1 %v12942_v23  ;;  %5336 = vmatprep.subr.bf16.mxu0 %v12943_v24  ;;  %v13011_v5 = vld [vmem:[#allocation2 + $0x165c] ss:$52 sps:$4 sm:$0xff]   ;;  %v13009_v9 = vld [vmem:[#allocation2 + $0x1658] ss:$52 sps:$4 sm:$0xff]   ;;  %v13015_v10 = vld [vmem:[#allocation2 + $0xf74] ss:$52 sps:$4 sm:$0xff]  }
  0x68   :  { %5377 = vmatprep.subr.bf16.mxu1 %v12945_v25  ;;  %v13018_v11 = vld [vmem:[#allocation2 + $0x15f4] ss:$52 sps:$4 sm:$0xff]   ;;  %v13013_v12 = vld [vmem:[#allocation2 + $0xf70] ss:$52 sps:$4 sm:$0xff]   ;;  %v13021_v14 = vld [vmem:[#allocation2 + $0xf0c] ss:$52 sps:$4 sm:$0xff]  }
  0x69   :  { %v13016_v13 = vld [vmem:[#allocation2 + $0x15f0] ss:$52 sps:$4 sm:$0xff]   ;;  %v13024_v15 = vld [vmem:[#allocation2 + $0x158c] ss:$52 sps:$4 sm:$0xff]   ;;  %v13019_v16 = vld [vmem:[#allocation2 + $0xf08] ss:$52 sps:$4 sm:$0xff]  }
  0x6a   :  { %5337 = vmatpush1.bf16.msra.mxu0 %v12947_v26  ;;  %v13022_v17 = vld [vmem:[#allocation2 + $0x1588] ss:$52 sps:$4 sm:$0xff]   ;;  %v13027_v18 = vld [vmem:[#allocation2 + $0xea4] ss:$52 sps:$4 sm:$0xff]   ;;  %v13025_v20 = vld [vmem:[#allocation2 + $0xea0] ss:$52 sps:$4 sm:$0xff]  }
  0x6b   :  { %5378 = vmatpush1.bf16.msra.mxu1 %v12948_v27  ;;  %5338 = vmatprep.subr.bf16.mxu0 %v12949_v28  ;;  %v13030_v19 = vld [vmem:[#allocation2 + $0x1524] ss:$52 sps:$4 sm:$0xff]   ;;  %v13028_v21 = vld [vmem:[#allocation2 + $0x1520] ss:$52 sps:$4 sm:$0xff]   ;;  %v13033_v22 = vld [vmem:[#allocation2 + $0xe3c] ss:$52 sps:$4 sm:$0xff]  }
  0x6c   :  { %5379 = vmatprep.subr.bf16.mxu1 %v12951_v29  ;;  %v13036_v23 = vld [vmem:[#allocation2 + $0x14bc] ss:$52 sps:$4 sm:$0xff]   ;;  %v13031_v24 = vld [vmem:[#allocation2 + $0xe38] ss:$52 sps:$4 sm:$0xff]   ;;  %v13039_v26 = vld [vmem:[#allocation2 + $0xdd4] ss:$52 sps:$4 sm:$0xff]  }
  0x6d   :  { %v13034_v25 = vld [vmem:[#allocation2 + $0x14b8] ss:$52 sps:$4 sm:$0xff]   ;;  %v13042_v27 = vld [vmem:[#allocation2 + $0x1454] ss:$52 sps:$4 sm:$0xff]   ;;  %v13037_v28 = vld [vmem:[#allocation2 + $0xdd0] ss:$52 sps:$4 sm:$0xff]  }
  0x6e   :  { %5339 = vmatpush1.bf16.msra.mxu0 %v12953_v30  ;;  %v13040_v29 = vld [vmem:[#allocation2 + $0x1450] ss:$52 sps:$4 sm:$0xff]   ;;  %v13045_v30 = vld [vmem:[#allocation2 + $0xd6c] ss:$52 sps:$4 sm:$0xff]   ;;  %v13063_v46 = vld [vmem:[#allocation2 + $0x12b4] ss:$52 sps:$4 sm:$0xff]  }
  0x6f   :  { %5380 = vmatpush1.bf16.msra.mxu1 %v12954_v31  ;;  %5340 = vmatprep.subr.bf16.mxu0 %v12955_v32  ;;  %v13048_v31 = vld [vmem:[#allocation2 + $0x13ec] ss:$52 sps:$4 sm:$0xff]   ;;  %v15126_v32 = vld [vmem:[%s15469_s0 + $0x10] sm:$0xff] }
  0x70   :  { %5381 = vmatprep.subr.bf16.mxu1 %v12957_v33  ;;  %v15131_v33 = vld [vmem:[%s15469_s0 + $0x18] sm:$0xff]  ;;  %v13066_v48 = vld [vmem:[#allocation2 + $0x1934] ss:$52 sps:$4 sm:$0xff]  }
  0x72   :  { %5341 = vmatpush2.bf16.msra.mxu0 %v12959_v34  ;;  %v13043_v34 = vld [vmem:[#allocation2 + $0xd68] ss:$52 sps:$4 sm:$0xff]  }
  0x73   :  { %5382 = vmatpush2.bf16.msra.mxu1 %v12960_v35  ;;  %5342 = vmatprep.subr.bf16.mxu0 %v12961_v36  ;;  %v13046_v35 = vld [vmem:[#allocation2 + $0x13e8] ss:$52 sps:$4 sm:$0xff]   ;;  %v15135_v36 = vcombine.high %v15126_v32, %v15126_v32 }
  0x74   :  { %5383 = vmatprep.subr.bf16.mxu1 %v12963_v37  ;;  %v15139_v37 = vcombine.high %v15131_v33, %v15131_v33 }
  0x76   :  { %5343 = vmatpush2.bf16.msra.mxu0 %v12965_v38  ;;  %v13051_v38 = vld [vmem:[#allocation2 + $0xd04] ss:$52 sps:$4 sm:$0xff]  }
  0x77   :  { %5384 = vmatpush2.bf16.msra.mxu1 %v12966_v39  ;;  %5344 = vmatprep.subr.bf16.mxu0 %v12967_v40  ;;  %v13054_v39 = vld [vmem:[#allocation2 + $0x1384] ss:$52 sps:$4 sm:$0xff]   ;;  %v13049_v40 = vld [vmem:[#allocation2 + $0xd00] ss:$52 sps:$4 sm:$0xff]  }
  0x78   :  { %5385 = vmatprep.subr.bf16.mxu1 %v12969_v41  ;;  %v13052_v41 = vld [vmem:[#allocation2 + $0x1380] ss:$52 sps:$4 sm:$0xff]  }
  0x7a   :  { %5345 = vmatpush2.bf16.msra.mxu0 %v12971_v42  ;;  %v13057_v42 = vld [vmem:[#allocation2 + $0x131c] ss:$52 sps:$4 sm:$0xff]  }
  0x7b   :  { %5386 = vmatpush2.bf16.msra.mxu1 %v12972_v43  ;;  %5346 = vmatprep.subr.bf16.mxu0 %v12973_v44  ;;  %v13060_v43 = vld [vmem:[#allocation2 + $0x199c] ss:$52 sps:$4 sm:$0xff]   ;;  %v13055_v44 = vld [vmem:[#allocation2 + $0x1318] ss:$52 sps:$4 sm:$0xff]  }
  0x7c   :  { %5387 = vmatprep.subr.bf16.mxu1 %v12975_v45  ;;  %v13058_v45 = vld [vmem:[#allocation2 + $0x1998] ss:$52 sps:$4 sm:$0xff]  }
  0x7e   :  { %5347 = vmatpush2.bf16.msra.mxu0 %v12977_v49  ;;  %v13061_v49 = vld [vmem:[#allocation2 + $0x12b0] ss:$52 sps:$4 sm:$0xff]  }
  0x7f   :  { %5388 = vmatpush2.bf16.msra.mxu1 %v12978_v50  ;;  %5348 = vmatprep.subr.bf16.mxu0 %v12979_v52  ;;  %v13064_v50 = vld [vmem:[#allocation2 + $0x1930] ss:$52 sps:$4 sm:$0xff]   ;;  %v13069_v52 = vld [vmem:[#allocation2 + $0x124c] ss:$52 sps:$4 sm:$0xff]  }
  0x80   :  { %5389 = vmatprep.subr.bf16.mxu1 %v12981_v53  ;;  %v13072_v53 = vld [vmem:[#allocation2 + $0x18cc] ss:$52 sps:$4 sm:$0xff]  }
  0x82   :  { %5349 = vmatpush2.bf16.msra.mxu0 %v12983_v54  ;;  %v13067_v54 = vld [vmem:[#allocation2 + $0x1248] ss:$52 sps:$4 sm:$0xff]  }
  0x83   :  { %5390 = vmatpush2.bf16.msra.mxu1 %v12984_v55  ;;  %5350 = vmatprep.subr.bf16.mxu0 %v12985_v56  ;;  %v13070_v55 = vld [vmem:[#allocation2 + $0x18c8] ss:$52 sps:$4 sm:$0xff]   ;;  %v13075_v56 = vld [vmem:[#allocation2 + $0x11e4] ss:$52 sps:$4 sm:$0xff]  }
  0x84   :  { %5391 = vmatprep.subr.bf16.mxu1 %v12987_v57  ;;  %v13078_v57 = vld [vmem:[#allocation2 + $0x1864] ss:$52 sps:$4 sm:$0xff]  }
  0x86   :  { %5351 = vmatpush2.bf16.msra.mxu0 %v12989_v58  ;;  %v13073_v58 = vld [vmem:[#allocation2 + $0x11e0] ss:$52 sps:$4 sm:$0xff]  }
  0x87   :  { %5392 = vmatpush2.bf16.msra.mxu1 %v12990_v59  ;;  %5352 = vmatprep.subr.bf16.mxu0 %v12991_v60  ;;  %v13076_v59 = vld [vmem:[#allocation2 + $0x1860] ss:$52 sps:$4 sm:$0xff]   ;;  %v13081_v60 = vld [vmem:[#allocation2 + $0x117c] ss:$52 sps:$4 sm:$0xff]  }
  0x88   :  { %5393 = vmatprep.subr.bf16.mxu1 %v12993_v61  ;;  %v13084_v61 = vld [vmem:[#allocation2 + $0x17fc] ss:$52 sps:$4 sm:$0xff]  }
  0x8a   :  { %5353 = vmatpush2.bf16.msra.mxu0 %v12995_v62  ;;  %v13079_v62 = vld [vmem:[#allocation2 + $0x1178] ss:$52 sps:$4 sm:$0xff]  }
  0x8b   :  { %5394 = vmatpush2.bf16.msra.mxu1 %v12996_v63  ;;  %5354 = vmatprep.subr.bf16.mxu0 %v12997_v0  ;;  %v13082_v63 = vld [vmem:[#allocation2 + $0x17f8] ss:$52 sps:$4 sm:$0xff]   ;;  %v13087_v0 = vld [vmem:[#allocation2 + $0x1114] ss:$52 sps:$4 sm:$0xff]  }
  0x8c   :  { %5395 = vmatprep.subr.bf16.mxu1 %v12999_v1  ;;  %v13090_v1 = vld [vmem:[#allocation2 + $0x1794] ss:$52 sps:$4 sm:$0xff]  }
  0x8e   :  { %5355 = vmatpush2.bf16.msra.mxu0 %v13001_v2  ;;  %v13085_v2 = vld [vmem:[#allocation2 + $0x1110] ss:$52 sps:$4 sm:$0xff]  }
  0x8f   :  { %5396 = vmatpush2.bf16.msra.mxu1 %v13002_v3  ;;  %5406 = vmatprep.subr.bf16.mxu0 %v13008_v4  ;;  %v13088_v3 = vld [vmem:[#allocation2 + $0x1790] ss:$52 sps:$4 sm:$0xff]   ;;  %v13093_v4 = vld [vmem:[#allocation2 + $0x10ac] ss:$52 sps:$4 sm:$0xff]  }
  0x90   :  { %5447 = vmatprep.subr.bf16.mxu1 %v13011_v5  ;;  %v13096_v5 = vld [vmem:[#allocation2 + $0x172c] ss:$52 sps:$4 sm:$0xff]  }
  0x91   :  { %5357 = vmatmul.mubr.bf16.vlgmr.msra.gmra.mxu0 %v15117_v6 }
  0x92   :  { %5398 = vmatmul.mubr.bf16.vlgmr.msra.gmra.mxu1 %v15119_v7  ;;  %5407 = vmatpush1.bf16.msra.mxu0 %v13006_v8  ;;  %v13091_v8 = vld [vmem:[#allocation2 + $0x10a8] ss:$52 sps:$4 sm:$0xff]  }
  0x93   :  { %5448 = vmatpush1.bf16.msra.mxu1 %v13009_v9  ;;  %5408 = vmatprep.subr.bf16.mxu0 %v13015_v10  ;;  %v13094_v9 = vld [vmem:[#allocation2 + $0x1728] ss:$52 sps:$4 sm:$0xff]   ;;  %v13099_v10 = vld [vmem:[#allocation2 + $0x1044] ss:$52 sps:$4 sm:$0xff]  }
  0x94   :  { %5449 = vmatprep.subr.bf16.mxu1 %v13018_v11  ;;  %5438 = vmatprep.mubr.bf16.mxu0 %v15135_v36  ;;  %v13102_v11 = vld [vmem:[#allocation2 + $0x16c4] ss:$52 sps:$4 sm:$0xff]  }
  0x95   :  { %5479 = vmatprep.mubr.bf16.mxu1 %v15139_v37 }
  0x96   :  { %5409 = vmatpush1.bf16.msra.mxu0 %v13013_v12  ;;  %v13097_v12 = vld [vmem:[#allocation2 + $0x1040] ss:$52 sps:$4 sm:$0xff]  }
  0x97   :  { %5450 = vmatpush1.bf16.msra.mxu1 %v13016_v13  ;;  %5410 = vmatprep.subr.bf16.mxu0 %v13021_v14  ;;  %v13100_v13 = vld [vmem:[#allocation2 + $0x16c0] ss:$52 sps:$4 sm:$0xff]   ;;  %v13108_v14 = vld [vmem:[#allocation2 + $0x2e4] ss:$52 sps:$4 sm:$0xff]  }
  0x98   :  { %5451 = vmatprep.subr.bf16.mxu1 %v13024_v15  ;;  %v13111_v15 = vld [vmem:[#allocation2 + $0x964] ss:$52 sps:$4 sm:$0xff]  }
  0x9a   :  { %5411 = vmatpush1.bf16.msra.mxu0 %v13019_v16  ;;  %v15145_v16 = vcombine.low %v15126_v32, %v15126_v32  ;;  %v13133_v32 = vld [vmem:[#allocation2 + $0x144] ss:$52 sps:$4 sm:$0xff]  }
  0x9b   :  { %5452 = vmatpush1.bf16.msra.mxu1 %v13022_v17  ;;  %5412 = vmatprep.subr.bf16.mxu0 %v13027_v18  ;;  %v13106_v17 = vld [vmem:[#allocation2 + $0x2e0] ss:$52 sps:$4 sm:$0xff]  }
  0x9c   :  { %5453 = vmatprep.subr.bf16.mxu1 %v13030_v19  ;;  %v13109_v18 = vld [vmem:[#allocation2 + $0x960] ss:$52 sps:$4 sm:$0xff]   ;;  %v15149_v19 = vcombine.low %v15131_v33, %v15131_v33  ;;  %v13136_v33 = vld [vmem:[#allocation2 + $0x7c4] ss:$52 sps:$4 sm:$0xff]  }
  0x9e   :  { %5413 = vmatpush1.bf16.msra.mxu0 %v13025_v20  ;;  %v13115_v20 = vld [vmem:[#allocation2 + $0x27c] ss:$52 sps:$4 sm:$0xff]  }
  0x9f   :  { %5454 = vmatpush1.bf16.msra.mxu1 %v13028_v21  ;;  %5414 = vmatprep.subr.bf16.mxu0 %v13033_v22  ;;  %v13118_v21 = vld [vmem:[#allocation2 + $0x8fc] ss:$52 sps:$4 sm:$0xff]   ;;  %v13113_v22 = vld [vmem:[#allocation2 + $0x278] ss:$52 sps:$4 sm:$0xff]  }
  0xa0   :  { %5455 = vmatprep.subr.bf16.mxu1 %v13036_v23  ;;  %v13116_v23 = vld [vmem:[#allocation2 + $0x8f8] ss:$52 sps:$4 sm:$0xff]  }
  0xa2   :  { %5415 = vmatpush1.bf16.msra.mxu0 %v13031_v24  ;;  %v13121_v24 = vld [vmem:[#allocation2 + $0x214] ss:$52 sps:$4 sm:$0xff]  }
  0xa3   :  { %5456 = vmatpush1.bf16.msra.mxu1 %v13034_v25  ;;  %5416 = vmatprep.subr.bf16.mxu0 %v13039_v26  ;;  %v13124_v25 = vld [vmem:[#allocation2 + $0x894] ss:$52 sps:$4 sm:$0xff]   ;;  %v13119_v26 = vld [vmem:[#allocation2 + $0x210] ss:$52 sps:$4 sm:$0xff]  }
  0xa4   :  { %5457 = vmatprep.subr.bf16.mxu1 %v13042_v27  ;;  %v13122_v27 = vld [vmem:[#allocation2 + $0x890] ss:$52 sps:$4 sm:$0xff]  }
  0xa6   :  { %5417 = vmatpush1.bf16.msra.mxu0 %v13037_v28  ;;  %v13127_v28 = vld [vmem:[#allocation2 + $0x1ac] ss:$52 sps:$4 sm:$0xff]  }
  0xa7   :  { %5458 = vmatpush1.bf16.msra.mxu1 %v13040_v29  ;;  %5418 = vmatprep.subr.bf16.mxu0 %v13045_v30  ;;  %v13130_v29 = vld [vmem:[#allocation2 + $0x82c] ss:$52 sps:$4 sm:$0xff]   ;;  %v13125_v30 = vld [vmem:[#allocation2 + $0x1a8] ss:$52 sps:$4 sm:$0xff]  }
  0xa8   :  { %5459 = vmatprep.subr.bf16.mxu1 %v13048_v31  ;;  %v13128_v31 = vld [vmem:[#allocation2 + $0x828] ss:$52 sps:$4 sm:$0xff]  }
  0xaa   :  { %5419 = vmatpush1.bf16.msra.mxu0 %v13043_v34  ;;  %v13131_v34 = vld [vmem:[#allocation2 + $0x140] ss:$52 sps:$4 sm:$0xff]  }
  0xab   :  { %5460 = vmatpush1.bf16.msra.mxu1 %v13046_v35  ;;  %5420 = vmatprep.subr.bf16.mxu0 %v13051_v38  ;;  %v13134_v35 = vld [vmem:[#allocation2 + $0x7c0] ss:$52 sps:$4 sm:$0xff]   ;;  %v13139_v38 = vld [vmem:[#allocation2 + $0xdc] ss:$52 sps:$4 sm:$0xff]  }
  0xac   :  { %5461 = vmatprep.subr.bf16.mxu1 %v13054_v39  ;;  %v13142_v39 = vld [vmem:[#allocation2 + $0x75c] ss:$52 sps:$4 sm:$0xff]  }
  0xae   :  { %5421 = vmatpush1.bf16.msra.mxu0 %v13049_v40  ;;  %v13137_v40 = vld [vmem:[#allocation2 + $0xd8] ss:$52 sps:$4 sm:$0xff]  }
  0xaf   :  { %5462 = vmatpush1.bf16.msra.mxu1 %v13052_v41  ;;  %5422 = vmatprep.subr.bf16.mxu0 %v13057_v42  ;;  %v13140_v41 = vld [vmem:[#allocation2 + $0x758] ss:$52 sps:$4 sm:$0xff]   ;;  %v13145_v42 = vld [vmem:[#allocation2 + $0x74] ss:$52 sps:$4 sm:$0xff]  }
  0xb0   :  { %5463 = vmatprep.subr.bf16.mxu1 %v13060_v43  ;;  %v13148_v43 = vld [vmem:[#allocation2 + $0x6f4] ss:$52 sps:$4 sm:$0xff]  }
  0xb2   :  { %5423 = vmatpush2.bf16.msra.mxu0 %v13055_v44  ;;  %v13143_v44 = vld [vmem:[#allocation2 + $0x70] ss:$52 sps:$4 sm:$0xff]  }
  0xb3   :  { %5464 = vmatpush2.bf16.msra.mxu1 %v13058_v45  ;;  %5424 = vmatprep.subr.bf16.mxu0 %v13063_v46  ;;  %v13146_v45 = vld [vmem:[#allocation2 + $0x6f0] ss:$52 sps:$4 sm:$0xff]   ;;  %v13151_v46 = vld [vmem:[#allocation2 + $0xc] ss:$52 sps:$4 sm:$0xff]  }
  0xb4   :  { %5465 = vmatprep.subr.bf16.mxu1 %v13066_v48  ;;  %v13154_v48 = vld [vmem:[#allocation2 + $0x68c] ss:$52 sps:$4 sm:$0xff]  }
  0xb6   :  { %5425 = vmatpush2.bf16.msra.mxu0 %v13061_v49  ;;  %v13149_v49 = vld [vmem:[#allocation2 + $0x8] ss:$52 sps:$4 sm:$0xff]  }
  0xb7   :  { %5466 = vmatpush2.bf16.msra.mxu1 %v13064_v50  ;;  %5426 = vmatprep.subr.bf16.mxu0 %v13069_v52  ;;  %v13152_v50 = vld [vmem:[#allocation2 + $0x688] ss:$52 sps:$4 sm:$0xff]   ;;  %v13157_v52 = vld [vmem:[#allocation2 + $0x624] ss:$52 sps:$4 sm:$0xff]  }
  0xb8   :  { %5467 = vmatprep.subr.bf16.mxu1 %v13072_v53  ;;  %v13160_v53 = vld [vmem:[#allocation2 + $0xca4] ss:$52 sps:$4 sm:$0xff]  }
  0xba   :  { %5427 = vmatpush2.bf16.msra.mxu0 %v13067_v54  ;;  %v13155_v54 = vld [vmem:[#allocation2 + $0x620] ss:$52 sps:$4 sm:$0xff]  }
  0xbb   :  { %5468 = vmatpush2.bf16.msra.mxu1 %v13070_v55  ;;  %5428 = vmatprep.subr.bf16.mxu0 %v13075_v56  ;;  %v13158_v55 = vld [vmem:[#allocation2 + $0xca0] ss:$52 sps:$4 sm:$0xff]   ;;  %v13163_v56 = vld [vmem:[#allocation2 + $0x5bc] ss:$52 sps:$4 sm:$0xff]  }
  0xbc   :  { %5469 = vmatprep.subr.bf16.mxu1 %v13078_v57  ;;  %v13166_v57 = vld [vmem:[#allocation2 + $0xc3c] ss:$52 sps:$4 sm:$0xff]  }
  0xbe   :  { %5429 = vmatpush2.bf16.msra.mxu0 %v13073_v58  ;;  %v13161_v58 = vld [vmem:[#allocation2 + $0x5b8] ss:$52 sps:$4 sm:$0xff]  }
  0xbf   :  { %5470 = vmatpush2.bf16.msra.mxu1 %v13076_v59  ;;  %5430 = vmatprep.subr.bf16.mxu0 %v13081_v60  ;;  %v13164_v59 = vld [vmem:[#allocation2 + $0xc38] ss:$52 sps:$4 sm:$0xff]   ;;  %v13169_v60 = vld [vmem:[#allocation2 + $0x554] ss:$52 sps:$4 sm:$0xff]  }
  0xc0   :  { %5471 = vmatprep.subr.bf16.mxu1 %v13084_v61  ;;  %v13172_v61 = vld [vmem:[#allocation2 + $0xbd4] ss:$52 sps:$4 sm:$0xff]  }
  0xc2   :  { %5431 = vmatpush2.bf16.msra.mxu0 %v13079_v62  ;;  %v13167_v62 = vld [vmem:[#allocation2 + $0x550] ss:$52 sps:$4 sm:$0xff]  }
  0xc3   :  { %5472 = vmatpush2.bf16.msra.mxu1 %v13082_v63  ;;  %5432 = vmatprep.subr.bf16.mxu0 %v13087_v0  ;;  %v13170_v63 = vld [vmem:[#allocation2 + $0xbd0] ss:$52 sps:$4 sm:$0xff]   ;;  %v13175_v0 = vld [vmem:[#allocation2 + $0x4ec] ss:$52 sps:$4 sm:$0xff]  }
  0xc4   :  { %5473 = vmatprep.subr.bf16.mxu1 %v13090_v1  ;;  %v13178_v1 = vld [vmem:[#allocation2 + $0xb6c] ss:$52 sps:$4 sm:$0xff]  }
  0xc6   :  { %5433 = vmatpush2.bf16.msra.mxu0 %v13085_v2  ;;  %v13173_v2 = vld [vmem:[#allocation2 + $0x4e8] ss:$52 sps:$4 sm:$0xff]  }
  0xc7   :  { %5474 = vmatpush2.bf16.msra.mxu1 %v13088_v3  ;;  %5434 = vmatprep.subr.bf16.mxu0 %v13093_v4  ;;  %v13176_v3 = vld [vmem:[#allocation2 + $0xb68] ss:$52 sps:$4 sm:$0xff]   ;;  %v13181_v4 = vld [vmem:[#allocation2 + $0x484] ss:$52 sps:$4 sm:$0xff]  }
  0xc8   :  { %5475 = vmatprep.subr.bf16.mxu1 %v13096_v5  ;;  %v13184_v5 = vld [vmem:[#allocation2 + $0xb04] ss:$52 sps:$4 sm:$0xff]  }
  0xca   :  { %5435 = vmatpush2.bf16.msra.mxu0 %v13091_v8  ;;  %v13179_v8 = vld [vmem:[#allocation2 + $0x480] ss:$52 sps:$4 sm:$0xff]  }
  0xcb   :  { %5476 = vmatpush2.bf16.msra.mxu1 %v13094_v9  ;;  %5436 = vmatprep.subr.bf16.mxu0 %v13099_v10  ;;  %v13182_v9 = vld [vmem:[#allocation2 + $0xb00] ss:$52 sps:$4 sm:$0xff]   ;;  %v13187_v10 = vld [vmem:[#allocation2 + $0x41c] ss:$52 sps:$4 sm:$0xff]  }
  0xcc   :  { %5477 = vmatprep.subr.bf16.mxu1 %v13102_v11  ;;  %v13190_v11 = vld [vmem:[#allocation2 + $0xa9c] ss:$52 sps:$4 sm:$0xff]  }
  0xce   :  { %5437 = vmatpush2.bf16.msra.mxu0 %v13097_v12  ;;  %v13185_v12 = vld [vmem:[#allocation2 + $0x418] ss:$52 sps:$4 sm:$0xff]  }
  0xcf   :  { %5478 = vmatpush2.bf16.msra.mxu1 %v13100_v13  ;;  %5488 = vmatprep.subr.bf16.mxu0 %v13108_v14  ;;  %v13188_v13 = vld [vmem:[#allocation2 + $0xa98] ss:$52 sps:$4 sm:$0xff]   ;;  %v13193_v14 = vld [vmem:[#allocation2 + $0x3b4] ss:$52 sps:$4 sm:$0xff]  }
  0xd0   :  { %5529 = vmatprep.subr.bf16.mxu1 %v13111_v15  ;;  %v13196_v15 = vld [vmem:[#allocation2 + $0xa34] ss:$52 sps:$4 sm:$0xff]  }
  0xd1   :  { %5439 = vmatmul.mubr.bf16.vlgmr.msra.gmra.mxu0 %v15145_v16 }
  0xd2   :  { %5480 = vmatmul.mubr.bf16.vlgmr.msra.gmra.mxu1 %v15149_v19  ;;  %5489 = vmatpush1.bf16.msra.mxu0 %v13106_v17  ;;  %v13191_v17 = vld [vmem:[#allocation2 + $0x3b0] ss:$52 sps:$4 sm:$0xff]  }
  0xd3   :  { %5530 = vmatpush1.bf16.msra.mxu1 %v13109_v18  ;;  %5490 = vmatprep.subr.bf16.mxu0 %v13115_v20  ;;  %v13194_v18 = vld [vmem:[#allocation2 + $0xa30] ss:$52 sps:$4 sm:$0xff]   ;;  %v13199_v20 = vld [vmem:[#allocation2 + $0x34c] ss:$52 sps:$4 sm:$0xff]  }
  0xd4   :  { %5531 = vmatprep.subr.bf16.mxu1 %v13118_v21  ;;  %5520 = vmatprep.mubr.bf16.mxu0 %v15108_v47  ;;  %v13202_v21 = vld [vmem:[#allocation2 + $0x9cc] ss:$52 sps:$4 sm:$0xff]  }
  0xd5   :  { %5561 = vmatprep.mubr.bf16.mxu1 %v15113_v51 }
  0xd6   :  { %5491 = vmatpush1.bf16.msra.mxu0 %v13113_v22  ;;  %v13197_v22 = vld [vmem:[#allocation2 + $0x348] ss:$52 sps:$4 sm:$0xff]  }
  0xd7   :  { %5532 = vmatpush1.bf16.msra.mxu1 %v13116_v23  ;;  %5492 = vmatprep.subr.bf16.mxu0 %v13121_v24  ;;  %v13200_v23 = vld [vmem:[#allocation2 + $0x9c8] ss:$52 sps:$4 sm:$0xff]   ;;  %v13205_v24 = vld [vmem:[#allocation2 + $0xfe4] ss:$52 sps:$4 sm:$0xff]  }
  0xd8   :  { %5533 = vmatprep.subr.bf16.mxu1 %v13124_v25  ;;  %v13208_v25 = vld [vmem:[#allocation2 + $0x1664] ss:$52 sps:$4 sm:$0xff]  }
  0xda   :  { %5493 = vmatpush1.bf16.msra.mxu0 %v13119_v26  ;;  %v13203_v26 = vld [vmem:[#allocation2 + $0xfe0] ss:$52 sps:$4 sm:$0xff]  }
  0xdb   :  { %5534 = vmatpush1.bf16.msra.mxu1 %v13122_v27  ;;  %5494 = vmatprep.subr.bf16.mxu0 %v13127_v28  ;;  %v13206_v27 = vld [vmem:[#allocation2 + $0x1660] ss:$52 sps:$4 sm:$0xff]   ;;  %v13211_v28 = vld [vmem:[#allocation2 + $0xf7c] ss:$52 sps:$4 sm:$0xff]  }
  0xdc   :  { %5535 = vmatprep.subr.bf16.mxu1 %v13130_v29  ;;  %v13214_v29 = vld [vmem:[#allocation2 + $0x15fc] ss:$52 sps:$4 sm:$0xff]  }
  0xde   :  { %5495 = vmatpush1.bf16.msra.mxu0 %v13125_v30  ;;  %v13209_v30 = vld [vmem:[#allocation2 + $0xf78] ss:$52 sps:$4 sm:$0xff]  }
  0xdf   :  { %5536 = vmatpush1.bf16.msra.mxu1 %v13128_v31  ;;  %5496 = vmatprep.subr.bf16.mxu0 %v13133_v32  ;;  %v13212_v31 = vld [vmem:[#allocation2 + $0x15f8] ss:$52 sps:$4 sm:$0xff]   ;;  %v13217_v32 = vld [vmem:[#allocation2 + $0xf14] ss:$52 sps:$4 sm:$0xff]  }
  0xe0   :  { %5537 = vmatprep.subr.bf16.mxu1 %v13136_v33  ;;  %v13220_v33 = vld [vmem:[#allocation2 + $0x1594] ss:$52 sps:$4 sm:$0xff]  }
  0xe2   :  { %5497 = vmatpush1.bf16.msra.mxu0 %v13131_v34  ;;  %v13215_v34 = vld [vmem:[#allocation2 + $0xf10] ss:$52 sps:$4 sm:$0xff]  }
  0xe3   :  { %5538 = vmatpush1.bf16.msra.mxu1 %v13134_v35  ;;  %5498 = vmatprep.subr.bf16.mxu0 %v13139_v38  ;;  %v13218_v35 = vld [vmem:[#allocation2 + $0x1590] ss:$52 sps:$4 sm:$0xff]   ;;  %v13223_v38 = vld [vmem:[#allocation2 + $0xeac] ss:$52 sps:$4 sm:$0xff]  }
  0xe4   :  { %5539 = vmatprep.subr.bf16.mxu1 %v13142_v39  ;;  %v13226_v39 = vld [vmem:[#allocation2 + $0x152c] ss:$52 sps:$4 sm:$0xff]  }
  0xe6   :  { %5499 = vmatpush1.bf16.msra.mxu0 %v13137_v40  ;;  %v13221_v40 = vld [vmem:[#allocation2 + $0xea8] ss:$52 sps:$4 sm:$0xff]  }
  0xe7   :  { %5540 = vmatpush1.bf16.msra.mxu1 %v13140_v41  ;;  %5500 = vmatprep.subr.bf16.mxu0 %v13145_v42  ;;  %v13224_v41 = vld [vmem:[#allocation2 + $0x1528] ss:$52 sps:$4 sm:$0xff]   ;;  %v13229_v42 = vld [vmem:[#allocation2 + $0xe44] ss:$52 sps:$4 sm:$0xff]  }
  0xe8   :  { %5541 = vmatprep.subr.bf16.mxu1 %v13148_v43  ;;  %v13232_v43 = vld [vmem:[#allocation2 + $0x14c4] ss:$52 sps:$4 sm:$0xff]  }
  0xea   :  { %5501 = vmatpush1.bf16.msra.mxu0 %v13143_v44  ;;  %v13227_v44 = vld [vmem:[#allocation2 + $0xe40] ss:$52 sps:$4 sm:$0xff]  }
  0xeb   :  { %5542 = vmatpush1.bf16.msra.mxu1 %v13146_v45  ;;  %5502 = vmatprep.subr.bf16.mxu0 %v13151_v46  ;;  %v13230_v45 = vld [vmem:[#allocation2 + $0x14c0] ss:$52 sps:$4 sm:$0xff]   ;;  %v13235_v46 = vld [vmem:[#allocation2 + $0xddc] ss:$52 sps:$4 sm:$0xff]  }
  0xec   :  { %5543 = vmatprep.subr.bf16.mxu1 %v13154_v48  ;;  %v13238_v48 = vld [vmem:[#allocation2 + $0x145c] ss:$52 sps:$4 sm:$0xff]  }
  0xee   :  { %5503 = vmatpush1.bf16.msra.mxu0 %v13149_v49  ;;  %v13233_v49 = vld [vmem:[#allocation2 + $0xdd8] ss:$52 sps:$4 sm:$0xff]  }
  0xef   :  { %5544 = vmatpush1.bf16.msra.mxu1 %v13152_v50  ;;  %5504 = vmatprep.subr.bf16.mxu0 %v13157_v52  ;;  %v13236_v50 = vld [vmem:[#allocation2 + $0x1458] ss:$52 sps:$4 sm:$0xff]   ;;  %v13241_v52 = vld [vmem:[#allocation2 + $0xd74] ss:$52 sps:$4 sm:$0xff]  }
  0xf0   :  { %5545 = vmatprep.subr.bf16.mxu1 %v13160_v53  ;;  %v13244_v53 = vld [vmem:[#allocation2 + $0x13f4] ss:$52 sps:$4 sm:$0xff]  }
  0xf2   :  { %5505 = vmatpush2.bf16.msra.mxu0 %v13155_v54  ;;  %v13239_v54 = vld [vmem:[#allocation2 + $0xd70] ss:$52 sps:$4 sm:$0xff]  }
  0xf3   :  { %5546 = vmatpush2.bf16.msra.mxu1 %v13158_v55  ;;  %5506 = vmatprep.subr.bf16.mxu0 %v13163_v56  ;;  %v13242_v55 = vld [vmem:[#allocation2 + $0x13f0] ss:$52 sps:$4 sm:$0xff]   ;;  %v13247_v56 = vld [vmem:[#allocation2 + $0xd0c] ss:$52 sps:$4 sm:$0xff]  }
  0xf4   :  { %5547 = vmatprep.subr.bf16.mxu1 %v13166_v57  ;;  %v13250_v57 = vld [vmem:[#allocation2 + $0x138c] ss:$52 sps:$4 sm:$0xff]  }
  0xf6   :  { %5507 = vmatpush2.bf16.msra.mxu0 %v13161_v58  ;;  %v13245_v58 = vld [vmem:[#allocation2 + $0xd08] ss:$52 sps:$4 sm:$0xff]  }
  0xf7   :  { %5548 = vmatpush2.bf16.msra.mxu1 %v13164_v59  ;;  %5508 = vmatprep.subr.bf16.mxu0 %v13169_v60  ;;  %v13248_v59 = vld [vmem:[#allocation2 + $0x1388] ss:$52 sps:$4 sm:$0xff]   ;;  %v13253_v60 = vld [vmem:[#allocation2 + $0x1324] ss:$52 sps:$4 sm:$0xff]  }
  0xf8   :  { %5549 = vmatprep.subr.bf16.mxu1 %v13172_v61  ;;  %v13256_v61 = vld [vmem:[#allocation2 + $0x19a4] ss:$52 sps:$4 sm:$0xff]  }
  0xfa   :  { %5509 = vmatpush2.bf16.msra.mxu0 %v13167_v62  ;;  %v13251_v62 = vld [vmem:[#allocation2 + $0x1320] ss:$52 sps:$4 sm:$0xff]  }
  0xfb   :  { %5550 = vmatpush2.bf16.msra.mxu1 %v13170_v63  ;;  %5510 = vmatprep.subr.bf16.mxu0 %v13175_v0  ;;  %v13254_v63 = vld [vmem:[#allocation2 + $0x19a0] ss:$52 sps:$4 sm:$0xff]   ;;  %v13259_v0 = vld [vmem:[#allocation2 + $0x12bc] ss:$52 sps:$4 sm:$0xff]  }
  0xfc   :  { %5551 = vmatprep.subr.bf16.mxu1 %v13178_v1  ;;  %v13262_v1 = vld [vmem:[#allocation2 + $0x193c] ss:$52 sps:$4 sm:$0xff]  }
  0xfe   :  { %5511 = vmatpush2.bf16.msra.mxu0 %v13173_v2  ;;  %v13257_v2 = vld [vmem:[#allocation2 + $0x12b8] ss:$52 sps:$4 sm:$0xff]  }
  0xff   :  { %5552 = vmatpush2.bf16.msra.mxu1 %v13176_v3  ;;  %5512 = vmatprep.subr.bf16.mxu0 %v13181_v4  ;;  %v13260_v3 = vld [vmem:[#allocation2 + $0x1938] ss:$52 sps:$4 sm:$0xff]   ;;  %v13265_v4 = vld [vmem:[#allocation2 + $0x1254] ss:$52 sps:$4 sm:$0xff]  }
 0x100   :  { %5553 = vmatprep.subr.bf16.mxu1 %v13184_v5  ;;  %v13268_v5 = vld [vmem:[#allocation2 + $0x18d4] ss:$52 sps:$4 sm:$0xff]  }
 0x102   :  { %5513 = vmatpush2.bf16.msra.mxu0 %v13179_v8  ;;  %v13263_v8 = vld [vmem:[#allocation2 + $0x1250] ss:$52 sps:$4 sm:$0xff]  }
 0x103   :  { %5554 = vmatpush2.bf16.msra.mxu1 %v13182_v9  ;;  %5514 = vmatprep.subr.bf16.mxu0 %v13187_v10  ;;  %v13266_v9 = vld [vmem:[#allocation2 + $0x18d0] ss:$52 sps:$4 sm:$0xff]   ;;  %v13271_v10 = vld [vmem:[#allocation2 + $0x11ec] ss:$52 sps:$4 sm:$0xff]  }
 0x104   :  { %5555 = vmatprep.subr.bf16.mxu1 %v13190_v11  ;;  %v13274_v11 = vld [vmem:[#allocation2 + $0x186c] ss:$52 sps:$4 sm:$0xff]  }
 0x106   :  { %5515 = vmatpush2.bf16.msra.mxu0 %v13185_v12  ;;  %v13269_v12 = vld [vmem:[#allocation2 + $0x11e8] ss:$52 sps:$4 sm:$0xff]  }
 0x107   :  { %5556 = vmatpush2.bf16.msra.mxu1 %v13188_v13  ;;  %5516 = vmatprep.subr.bf16.mxu0 %v13193_v14  ;;  %v13272_v13 = vld [vmem:[#allocation2 + $0x1868] ss:$52 sps:$4 sm:$0xff]   ;;  %v13277_v14 = vld [vmem:[#allocation2 + $0x1184] ss:$52 sps:$4 sm:$0xff]  }
 0x108   :  { %5557 = vmatprep.subr.bf16.mxu1 %v13196_v15  ;;  %v13280_v15 = vld [vmem:[#allocation2 + $0x1804] ss:$52 sps:$4 sm:$0xff]  }
 0x10a   :  { %5517 = vmatpush2.bf16.msra.mxu0 %v13191_v17  ;;  %v13275_v17 = vld [vmem:[#allocation2 + $0x1180] ss:$52 sps:$4 sm:$0xff]  }
 0x10b   :  { %5558 = vmatpush2.bf16.msra.mxu1 %v13194_v18  ;;  %5518 = vmatprep.subr.bf16.mxu0 %v13199_v20  ;;  %v13278_v18 = vld [vmem:[#allocation2 + $0x1800] ss:$52 sps:$4 sm:$0xff]   ;;  %v13283_v20 = vld [vmem:[#allocation2 + $0x111c] ss:$52 sps:$4 sm:$0xff]  }
 0x10c   :  { %5559 = vmatprep.subr.bf16.mxu1 %v13202_v21  ;;  %v13286_v21 = vld [vmem:[#allocation2 + $0x179c] ss:$52 sps:$4 sm:$0xff]  }
 0x10e   :  { %5519 = vmatpush2.bf16.msra.mxu0 %v13197_v22  ;;  %v13281_v22 = vld [vmem:[#allocation2 + $0x1118] ss:$52 sps:$4 sm:$0xff]  }
 0x10f   :  { %5560 = vmatpush2.bf16.msra.mxu1 %v13200_v23  ;;  %5570 = vmatprep.subr.bf16.mxu0 %v13205_v24  ;;  %v13284_v23 = vld [vmem:[#allocation2 + $0x1798] ss:$52 sps:$4 sm:$0xff]   ;;  %v1007_v24 = vlaneseq }
 0x110   :  { %5611 = vmatprep.subr.bf16.mxu1 %v13208_v25  ;;  %v13289_v25 = vld [vmem:[#allocation2 + $0x10b4] ss:$52 sps:$4 sm:$0xff]  }
 0x111   :  { %5521 = vmatmul.mubr.bf16.vlgmr.msra.gmra.mxu0 %v15117_v6 }
 0x112   :  { %5562 = vmatmul.mubr.bf16.vlgmr.msra.gmra.mxu1 %v15119_v7  ;;  %5571 = vmatpush1.bf16.msra.mxu0 %v13203_v26  ;;  %v13292_v26 = vld [vmem:[#allocation2 + $0x1734] ss:$52 sps:$4 sm:$0xff]  }
 0x113   :  { %5612 = vmatpush1.bf16.msra.mxu1 %v13206_v27  ;;  %5572 = vmatprep.subr.bf16.mxu0 %v13211_v28  ;;  %v13287_v27 = vld [vmem:[#allocation2 + $0x10b0] ss:$52 sps:$4 sm:$0xff]  }
 0x114   :  { %5613 = vmatprep.subr.bf16.mxu1 %v13214_v29  ;;  %5602 = vmatprep.mubr.bf16.mxu0 %v15135_v36  ;;  %v13290_v28 = vld [vmem:[#allocation2 + $0x1730] ss:$52 sps:$4 sm:$0xff]   ;;  %v15159_v29 = vshrl.u32 %v1007_v24, 7  ;;  %v13346_v24 = vld [vmem:[#allocation2 + $0x694] ss:$52 sps:$4 sm:$0xff]  }
 0x115   :  { %5643 = vmatprep.mubr.bf16.mxu1 %v15139_v37 }
 0x116   :  { %5573 = vmatpush1.bf16.msra.mxu0 %v13209_v30  ;;  %v13295_v30 = vld [vmem:[#allocation2 + $0x104c] ss:$52 sps:$4 sm:$0xff]  }
 0x117   :  { %5614 = vmatpush1.bf16.msra.mxu1 %v13212_v31  ;;  %5574 = vmatprep.subr.bf16.mxu0 %v13217_v32  ;;  %v13298_v31 = vld [vmem:[#allocation2 + $0x16cc] ss:$52 sps:$4 sm:$0xff]   ;;  %v13293_v32 = vld [vmem:[#allocation2 + $0x1048] ss:$52 sps:$4 sm:$0xff]  }
 0x118   :  { %5615 = vmatprep.subr.bf16.mxu1 %v13220_v33  ;;  %v13296_v33 = vld [vmem:[#allocation2 + $0x16c8] ss:$52 sps:$4 sm:$0xff]  }
 0x11a   :  { %5575 = vmatpush1.bf16.msra.mxu0 %v13215_v34  ;;  %v1003_v34 = vld [vmem:[#allocation4] sm:$0xff] }
 0x11b   :  { %5616 = vmatpush1.bf16.msra.mxu1 %v13218_v35  ;;  %5576 = vmatprep.subr.bf16.mxu0 %v13223_v38  ;;  %v15162_v35 = vsub.s32 0, %v15159_v29  ;;  %v13301_v38 = vld [vmem:[#allocation2 + $0x2ec] ss:$52 sps:$4 sm:$0xff]  }
 0x11c   :  { %5617 = vmatprep.subr.bf16.mxu1 %v13226_v39  ;;  %v13304_v39 = vld [vmem:[#allocation2 + $0x96c] ss:$52 sps:$4 sm:$0xff]  }
 0x11e   :  { %5577 = vmatpush1.bf16.msra.mxu0 %v13221_v40  ;;  %v15165_v40 = vsub.s32 1, %v15159_v29 }
 0x11f   :  { %5618 = vmatpush1.bf16.msra.mxu1 %v13224_v41  ;;  %5578 = vmatprep.subr.bf16.mxu0 %v13229_v42  ;;  %v13299_v41 = vld [vmem:[#allocation2 + $0x2e8] ss:$52 sps:$4 sm:$0xff]   ;;  %v1010_v42 = vrot.slane %v1003_v34, %v15162_v35 }
 0x120   :  { %5619 = vmatprep.subr.bf16.mxu1 %v13232_v43  ;;  %v13302_v43 = vld [vmem:[#allocation2 + $0x968] ss:$52 sps:$4 sm:$0xff]  }
 0x122   :  { %5579 = vmatpush1.bf16.msra.mxu0 %v13227_v44  ;;  %v13307_v44 = vld [vmem:[#allocation2 + $0x284] ss:$52 sps:$4 sm:$0xff]  }
 0x123   :  { %5620 = vmatpush1.bf16.msra.mxu1 %v13230_v45  ;;  %5580 = vmatprep.subr.bf16.mxu0 %v13235_v46  ;;  %v13310_v45 = vld [vmem:[#allocation2 + $0x904] ss:$52 sps:$4 sm:$0xff]   ;;  %v1014_v46 = vrot.slane %v1003_v34, %v15165_v40  ;;  %v13353_v34 = vld [vmem:[#allocation2 + $0x5c0] ss:$52 sps:$4 sm:$0xff]  }
 0x124   :  { %5621 = vmatprep.subr.bf16.mxu1 %v13238_v48  ;;  %v13305_v48 = vld [vmem:[#allocation2 + $0x280] ss:$52 sps:$4 sm:$0xff]  }
 0x126   :  { %5581 = vmatpush1.bf16.msra.mxu0 %v13233_v49 }
 0x127   :  { %5622 = vmatpush1.bf16.msra.mxu1 %v13236_v50  ;;  %5582 = vmatprep.subr.bf16.mxu0 %v13241_v52  ;;  %v13308_v52 = vld [vmem:[#allocation2 + $0x900] ss:$52 sps:$4 sm:$0xff]  }
 0x128   :  { %5623 = vmatprep.subr.bf16.mxu1 %v13244_v53 }
 0x12a   :  { %5583 = vmatpush1.bf16.msra.mxu0 %v13239_v54  ;;  %v13313_v54 = vld [vmem:[#allocation2 + $0x21c] ss:$52 sps:$4 sm:$0xff]  }
 0x12b   :  { %5624 = vmatpush1.bf16.msra.mxu1 %v13242_v55  ;;  %5584 = vmatprep.subr.bf16.mxu0 %v13247_v56 }
 0x12c   :  { %5625 = vmatprep.subr.bf16.mxu1 %v13250_v57  ;;  %v13316_v57 = vld [vmem:[#allocation2 + $0x89c] ss:$52 sps:$4 sm:$0xff]  }
 0x12e   :  { %5585 = vmatpush1.bf16.msra.mxu0 %v13245_v58 }
 0x12f   :  { %5626 = vmatpush1.bf16.msra.mxu1 %v13248_v59  ;;  %5586 = vmatprep.subr.bf16.mxu0 %v13253_v60  ;;  %v13311_v60 = vld [vmem:[#allocation2 + $0x218] ss:$52 sps:$4 sm:$0xff]  }
 0x130   :  { %5627 = vmatprep.subr.bf16.mxu1 %v13256_v61  ;;  %v13314_v61 = vld [vmem:[#allocation2 + $0x898] ss:$52 sps:$4 sm:$0xff]  }
 0x132   :  { %5587 = vmatpush2.bf16.msra.mxu0 %v13251_v62 }
 0x133   :  { %5628 = vmatpush2.bf16.msra.mxu1 %v13254_v63  ;;  %5588 = vmatprep.subr.bf16.mxu0 %v13259_v0 }
 0x134   :  { %5629 = vmatprep.subr.bf16.mxu1 %v13262_v1 }
 0x136   :  { %5589 = vmatpush2.bf16.msra.mxu0 %v13257_v2  ;;  %v13319_v2 = vld [vmem:[#allocation2 + $0x1b4] ss:$52 sps:$4 sm:$0xff]  }
 0x137   :  { %5630 = vmatpush2.bf16.msra.mxu1 %v13260_v3  ;;  %5590 = vmatprep.subr.bf16.mxu0 %v13265_v4  ;;  %v13322_v3 = vld [vmem:[#allocation2 + $0x834] ss:$52 sps:$4 sm:$0xff]  }
 0x138   :  { %5631 = vmatprep.subr.bf16.mxu1 %v13268_v5  ;;  %v13317_v5 = vld [vmem:[#allocation2 + $0x1b0] ss:$52 sps:$4 sm:$0xff]  }
 0x13a   :  { %5591 = vmatpush2.bf16.msra.mxu0 %v13263_v8  ;;  %v13320_v8 = vld [vmem:[#allocation2 + $0x830] ss:$52 sps:$4 sm:$0xff]  }
 0x13b   :  { %5632 = vmatpush2.bf16.msra.mxu1 %v13266_v9  ;;  %5592 = vmatprep.subr.bf16.mxu0 %v13271_v10  ;;  %v13325_v9 = vld [vmem:[#allocation2 + $0x14c] ss:$52 sps:$4 sm:$0xff]  }
 0x13c   :  { %5633 = vmatprep.subr.bf16.mxu1 %v13274_v11  ;;  %v13328_v10 = vld [vmem:[#allocation2 + $0x7cc] ss:$52 sps:$4 sm:$0xff]   ;;  %v13323_v11 = vld [vmem:[#allocation2 + $0x148] ss:$52 sps:$4 sm:$0xff]  }
 0x13e   :  { %5593 = vmatpush2.bf16.msra.mxu0 %v13269_v12  ;;  %v13326_v12 = vld [vmem:[#allocation2 + $0x7c8] ss:$52 sps:$4 sm:$0xff]  }
 0x13f   :  { %5634 = vmatpush2.bf16.msra.mxu1 %v13272_v13  ;;  %5594 = vmatprep.subr.bf16.mxu0 %v13277_v14  ;;  %v13331_v13 = vld [vmem:[#allocation2 + $0xe4] ss:$52 sps:$4 sm:$0xff]  }
 0x140   :  { %5635 = vmatprep.subr.bf16.mxu1 %v13280_v15  ;;  %v13334_v14 = vld [vmem:[#allocation2 + $0x764] ss:$52 sps:$4 sm:$0xff]   ;;  %v13329_v15 = vld [vmem:[#allocation2 + $0xe0] ss:$52 sps:$4 sm:$0xff]  }
 0x142   :  { %5595 = vmatpush2.bf16.msra.mxu0 %v13275_v17  ;;  %v13332_v17 = vld [vmem:[#allocation2 + $0x760] ss:$52 sps:$4 sm:$0xff]  }
 0x143   :  { %5636 = vmatpush2.bf16.msra.mxu1 %v13278_v18  ;;  %5596 = vmatprep.subr.bf16.mxu0 %v13283_v20  ;;  %v13337_v18 = vld [vmem:[#allocation2 + $0x7c] ss:$52 sps:$4 sm:$0xff]  }
 0x144   :  { %5637 = vmatprep.subr.bf16.mxu1 %v13286_v21  ;;  %v13340_v20 = vld [vmem:[#allocation2 + $0x6fc] ss:$52 sps:$4 sm:$0xff]   ;;  %v13335_v21 = vld [vmem:[#allocation2 + $0x78] ss:$52 sps:$4 sm:$0xff]  }
 0x146   :  { %5597 = vmatpush2.bf16.msra.mxu0 %v13281_v22  ;;  %v13338_v22 = vld [vmem:[#allocation2 + $0x6f8] ss:$52 sps:$4 sm:$0xff]  }
 0x147   :  { %5638 = vmatpush2.bf16.msra.mxu1 %v13284_v23  ;;  %5598 = vmatprep.subr.bf16.mxu0 %v13289_v25  ;;  %v13343_v23 = vld [vmem:[#allocation2 + $0x14] ss:$52 sps:$4 sm:$0xff]   ;;  %v13341_v25 = vld [vmem:[#allocation2 + $0x10] ss:$52 sps:$4 sm:$0xff]  }
 0x148   :  { %5639 = vmatprep.subr.bf16.mxu1 %v13292_v26  ;;  %v13344_v26 = vld [vmem:[#allocation2 + $0x690] ss:$52 sps:$4 sm:$0xff]  }
 0x14a   :  { %5599 = vmatpush2.bf16.msra.mxu0 %v13287_v27  ;;  %v13349_v27 = vld [vmem:[#allocation2 + $0x62c] ss:$52 sps:$4 sm:$0xff]  }
 0x14b   :  { %5640 = vmatpush2.bf16.msra.mxu1 %v13290_v28  ;;  %5600 = vmatprep.subr.bf16.mxu0 %v13295_v30  ;;  %v13352_v28 = vld [vmem:[#allocation2 + $0xcac] ss:$52 sps:$4 sm:$0xff]   ;;  %v13347_v30 = vld [vmem:[#allocation2 + $0x628] ss:$52 sps:$4 sm:$0xff]  }
 0x14c   :  { %5641 = vmatprep.subr.bf16.mxu1 %v13298_v31  ;;  %v13350_v31 = vld [vmem:[#allocation2 + $0xca8] ss:$52 sps:$4 sm:$0xff]  }
 0x14e   :  { %5601 = vmatpush2.bf16.msra.mxu0 %v13293_v32  ;;  %v13355_v32 = vld [vmem:[#allocation2 + $0x5c4] ss:$52 sps:$4 sm:$0xff]  }
 0x14f   :  { %5642 = vmatpush2.bf16.msra.mxu1 %v13296_v33  ;;  %5652 = vmatprep.subr.bf16.mxu0 %v13301_v38  ;;  %v13358_v33 = vld [vmem:[#allocation2 + $0xc44] ss:$52 sps:$4 sm:$0xff]   ;;  %v13356_v38 = vld [vmem:[#allocation2 + $0xc40] ss:$52 sps:$4 sm:$0xff]  }
 0x150   :  { %5693 = vmatprep.subr.bf16.mxu1 %v13304_v39  ;;  %v13361_v39 = vld [vmem:[#allocation2 + $0x55c] ss:$52 sps:$4 sm:$0xff]  }
 0x151   :  { %v5358_v49 = vpop.f32.mrf.mxu0  ;;  %5603 = vmatmul.mubr.bf16.vlgmr.msra.gmra.mxu0 %v15145_v16 }
 0x152   :  { %5644 = vmatmul.mubr.bf16.vlgmr.msra.gmra.mxu1 %v15149_v19  ;;  %v5399_v50 = vpop.f32.mrf.mxu1  ;;  %v5359_v53 = vadd.f32 %v5358_v49, %v1010_v42  ;;  %5653 = vmatpush1.bf16.msra.mxu0 %v13299_v41  ;;  %v13364_v41 = vld [vmem:[#allocation2 + $0xbdc] ss:$52 sps:$4 sm:$0xff]   ;;  %v13359_v42 = vld [vmem:[#allocation2 + $0x558] ss:$52 sps:$4 sm:$0xff]  }
 0x153   :  { %5694 = vmatpush1.bf16.msra.mxu1 %v13302_v43  ;;  %v5360_v55 = vpop.f32.mrf.mxu0  ;;  %5654 = vmatprep.subr.bf16.mxu0 %v13307_v44  ;;  %v13362_v43 = vld [vmem:[#allocation2 + $0xbd8] ss:$52 sps:$4 sm:$0xff]   ;;  %v13367_v44 = vld [vmem:[#allocation2 + $0x4f4] ss:$52 sps:$4 sm:$0xff]  }
 0x154   :  { %v5401_v56 = vpop.f32.mrf.mxu1  ;;  %5695 = vmatprep.subr.bf16.mxu1 %v13310_v45  ;;  %v5361_v58 = vadd.f32 %v5360_v55, %v1014_v46  ;;  %v15171_v59 = vadd.f32 %v5399_v50, %v5359_v53  ;;  %5684 = vmatprep.mubr.bf16.mxu0 %v15108_v47  ;;  %v13370_v45 = vld [vmem:[#allocation2 + $0xb74] ss:$52 sps:$4 sm:$0xff]   ;;  %v13365_v46 = vld [vmem:[#allocation2 + $0x4f0] ss:$52 sps:$4 sm:$0xff]   ;;  %v13373_v49 = vld [vmem:[#allocation2 + $0x48c] ss:$52 sps:$4 sm:$0xff]  }
 0x155   :  { %5725 = vmatprep.mubr.bf16.mxu1 %v15113_v51  ;;  %v5362_v62 = vpop.f32.mrf.mxu0  ;;  %v13376_v50 = vld [vmem:[#allocation2 + $0xb0c] ss:$52 sps:$4 sm:$0xff]   ;;  %v13374_v53 = vld [vmem:[#allocation2 + $0xb08] ss:$52 sps:$4 sm:$0xff]   ;;  %v13382_v55 = vld [vmem:[#allocation2 + $0xaa4] ss:$52 sps:$4 sm:$0xff]  }
 0x156   :  { %v5403_v63 = vpop.f32.mrf.mxu1  ;;  %v15175_v0 = vadd.f32 %v5401_v56, %v5361_v58  ;;  %5655 = vmatpush1.bf16.msra.mxu0 %v13305_v48  ;;  %v13368_v48 = vld [vmem:[#allocation2 + $0xb70] ss:$52 sps:$4 sm:$0xff]   ;;  %v13377_v56 = vld [vmem:[#allocation2 + $0x420] ss:$52 sps:$4 sm:$0xff]   ;;  %v13386_v62 = vld [vmem:[#allocation2 + $0xa38] ss:$52 sps:$4 sm:$0xff]  }
 0x157   :  { %5696 = vmatpush1.bf16.msra.mxu1 %v13308_v52  ;;  %v5363_v1 = vpop.f32.mrf.mxu0  ;;  %5656 = vmatprep.subr.bf16.mxu0 %v13313_v54  ;;  %v13371_v52 = vld [vmem:[#allocation2 + $0x488] ss:$52 sps:$4 sm:$0xff]   ;;  %v13379_v54 = vld [vmem:[#allocation2 + $0x424] ss:$52 sps:$4 sm:$0xff]  }
 0x158   :  { %5697 = vmatprep.subr.bf16.mxu1 %v13316_v57  ;;  %v5404_v4 = vpop.f32.mrf.mxu1  ;;  %v13380_v57 = vld [vmem:[#allocation2 + $0xaa0] ss:$52 sps:$4 sm:$0xff]   ;;  %v13385_v58 = vld [vmem:[#allocation2 + $0x3bc] ss:$52 sps:$4 sm:$0xff]  }
 0x159   :  { %v13391_v63 = vld [vmem:[#allocation2 + $0x354] ss:$52 sps:$4 sm:$0xff]   ;;  %v13397_v4 = vld [vmem:[#allocation2 + $0xfec] ss:$52 sps:$4 sm:$0xff]  }
 0x15a   :  { %5657 = vmatpush1.bf16.msra.mxu0 %v13311_v60  ;;  %v13388_v60 = vld [vmem:[#allocation2 + $0xa3c] ss:$52 sps:$4 sm:$0xff]   ;;  %v13394_v1 = vld [vmem:[#allocation2 + $0x9d4] ss:$52 sps:$4 sm:$0xff]  }
 0x15b   :  { %5698 = vmatpush1.bf16.msra.mxu1 %v13314_v61  ;;  %5658 = vmatprep.subr.bf16.mxu0 %v13319_v2  ;;  %v13383_v61 = vld [vmem:[#allocation2 + $0x3b8] ss:$52 sps:$4 sm:$0xff]   ;;  %v13389_v2 = vld [vmem:[#allocation2 + $0x350] ss:$52 sps:$4 sm:$0xff]  }
 0x15c   :  { %5699 = vmatprep.subr.bf16.mxu1 %v13322_v3  ;;  %v13392_v3 = vld [vmem:[#allocation2 + $0x9d0] ss:$52 sps:$4 sm:$0xff]  }
 0x15e   :  { %5659 = vmatpush1.bf16.msra.mxu0 %v13317_v5  ;;  %v13400_v5 = vld [vmem:[#allocation2 + $0x166c] ss:$52 sps:$4 sm:$0xff]  }
 0x15f   :  { %5700 = vmatpush1.bf16.msra.mxu1 %v13320_v8  ;;  %5660 = vmatprep.subr.bf16.mxu0 %v13325_v9  ;;  %v13395_v8 = vld [vmem:[#allocation2 + $0xfe8] ss:$52 sps:$4 sm:$0xff]  }
 0x160   :  { %5701 = vmatprep.subr.bf16.mxu1 %v13328_v10  ;;  %v13398_v9 = vld [vmem:[#allocation2 + $0x1668] ss:$52 sps:$4 sm:$0xff]   ;;  %v13403_v10 = vld [vmem:[#allocation2 + $0xf84] ss:$52 sps:$4 sm:$0xff]  }
 0x162   :  { %5661 = vmatpush1.bf16.msra.mxu0 %v13323_v11  ;;  %v13406_v11 = vld [vmem:[#allocation2 + $0x1604] ss:$52 sps:$4 sm:$0xff]  }
 0x163   :  { %5702 = vmatpush1.bf16.msra.mxu1 %v13326_v12  ;;  %5662 = vmatprep.subr.bf16.mxu0 %v13331_v13  ;;  %v13401_v12 = vld [vmem:[#allocation2 + $0xf80] ss:$52 sps:$4 sm:$0xff]  }
 0x164   :  { %5703 = vmatprep.subr.bf16.mxu1 %v13334_v14  ;;  %v13404_v13 = vld [vmem:[#allocation2 + $0x1600] ss:$52 sps:$4 sm:$0xff]  }
 0x166   :  { %5663 = vmatpush1.bf16.msra.mxu0 %v13329_v15 }
 0x167   :  { %5704 = vmatpush1.bf16.msra.mxu1 %v13332_v17  ;;  %5664 = vmatprep.subr.bf16.mxu0 %v13337_v18 }
 0x168   :  { %5705 = vmatprep.subr.bf16.mxu1 %v13340_v20 }
 0x16a   :  { %5665 = vmatpush1.bf16.msra.mxu0 %v13335_v21  ;;  %v13409_v21 = vld [vmem:[#allocation2 + $0xf1c] ss:$52 sps:$4 sm:$0xff]  }
 0x16b   :  { %5706 = vmatpush1.bf16.msra.mxu1 %v13338_v22  ;;  %5666 = vmatprep.subr.bf16.mxu0 %v13343_v23  ;;  %v13412_v22 = vld [vmem:[#allocation2 + $0x159c] ss:$52 sps:$4 sm:$0xff]  }
 0x16c   :  { %5707 = vmatprep.subr.bf16.mxu1 %v13346_v24 }
 0x16e   :  { %5667 = vmatpush1.bf16.msra.mxu0 %v13341_v25  ;;  %v13407_v25 = vld [vmem:[#allocation2 + $0xf18] ss:$52 sps:$4 sm:$0xff]  }
 0x16f   :  { %5708 = vmatpush1.bf16.msra.mxu1 %v13344_v26  ;;  %5668 = vmatprep.subr.bf16.mxu0 %v13349_v27  ;;  %v13410_v26 = vld [vmem:[#allocation2 + $0x1598] ss:$52 sps:$4 sm:$0xff]  }
 0x170   :  { %5709 = vmatprep.subr.bf16.mxu1 %v13352_v28 }
 0x172   :  { %5669 = vmatpush2.bf16.msra.mxu0 %v13347_v30 }
 0x173   :  { %5710 = vmatpush2.bf16.msra.mxu1 %v13350_v31  ;;  %5670 = vmatprep.subr.bf16.mxu0 %v13355_v32  ;;  %v13415_v31 = vld [vmem:[#allocation2 + $0xeb4] ss:$52 sps:$4 sm:$0xff]  }
 0x174   :  { %5711 = vmatprep.subr.bf16.mxu1 %v13358_v33  ;;  %v13418_v32 = vld [vmem:[#allocation2 + $0x1534] ss:$52 sps:$4 sm:$0xff]   ;;  %v13413_v33 = vld [vmem:[#allocation2 + $0xeb0] ss:$52 sps:$4 sm:$0xff]  }
 0x176   :  { %5671 = vmatpush2.bf16.msra.mxu0 %v13353_v34  ;;  %v13416_v34 = vld [vmem:[#allocation2 + $0x1530] ss:$52 sps:$4 sm:$0xff]  }
 0x177   :  { %5712 = vmatpush2.bf16.msra.mxu1 %v13356_v38  ;;  %5672 = vmatprep.subr.bf16.mxu0 %v13361_v39  ;;  %v13421_v38 = vld [vmem:[#allocation2 + $0xe4c] ss:$52 sps:$4 sm:$0xff]  }
 0x178   :  { %5713 = vmatprep.subr.bf16.mxu1 %v13364_v41  ;;  %v13424_v39 = vld [vmem:[#allocation2 + $0x14cc] ss:$52 sps:$4 sm:$0xff]   ;;  %v13419_v41 = vld [vmem:[#allocation2 + $0xe48] ss:$52 sps:$4 sm:$0xff]  }
 0x17a   :  { %5673 = vmatpush2.bf16.msra.mxu0 %v13359_v42  ;;  %v13422_v42 = vld [vmem:[#allocation2 + $0x14c8] ss:$52 sps:$4 sm:$0xff]  }
 0x17b   :  { %5714 = vmatpush2.bf16.msra.mxu1 %v13362_v43  ;;  %5674 = vmatprep.subr.bf16.mxu0 %v13367_v44  ;;  %v13427_v43 = vld [vmem:[#allocation2 + $0xde4] ss:$52 sps:$4 sm:$0xff]  }
 0x17c   :  { %5715 = vmatprep.subr.bf16.mxu1 %v13370_v45  ;;  %v13430_v44 = vld [vmem:[#allocation2 + $0x1464] ss:$52 sps:$4 sm:$0xff]   ;;  %v13425_v45 = vld [vmem:[#allocation2 + $0xde0] ss:$52 sps:$4 sm:$0xff]  }
 0x17e   :  { %5675 = vmatpush2.bf16.msra.mxu0 %v13365_v46  ;;  %v13428_v46 = vld [vmem:[#allocation2 + $0x1460] ss:$52 sps:$4 sm:$0xff]  }
 0x17f   :  { %5716 = vmatpush2.bf16.msra.mxu1 %v13368_v48  ;;  %5676 = vmatprep.subr.bf16.mxu0 %v13373_v49  ;;  %v13433_v48 = vld [vmem:[#allocation2 + $0xd7c] ss:$52 sps:$4 sm:$0xff]  }
 0x180   :  { %5717 = vmatprep.subr.bf16.mxu1 %v13376_v50  ;;  %v13436_v49 = vld [vmem:[#allocation2 + $0x13fc] ss:$52 sps:$4 sm:$0xff]   ;;  %v13431_v50 = vld [vmem:[#allocation2 + $0xd78] ss:$52 sps:$4 sm:$0xff]  }
 0x182   :  { %5677 = vmatpush2.bf16.msra.mxu0 %v13371_v52  ;;  %v13434_v52 = vld [vmem:[#allocation2 + $0x13f8] ss:$52 sps:$4 sm:$0xff]  }
 0x183   :  { %5718 = vmatpush2.bf16.msra.mxu1 %v13374_v53  ;;  %5678 = vmatprep.subr.bf16.mxu0 %v13379_v54  ;;  %v13439_v53 = vld [vmem:[#allocation2 + $0xd14] ss:$52 sps:$4 sm:$0xff]  }
 0x184   :  { %5719 = vmatprep.subr.bf16.mxu1 %v13382_v55  ;;  %v13442_v54 = vld [vmem:[#allocation2 + $0x1394] ss:$52 sps:$4 sm:$0xff]   ;;  %v13437_v55 = vld [vmem:[#allocation2 + $0xd10] ss:$52 sps:$4 sm:$0xff]  }
 0x186   :  { %5679 = vmatpush2.bf16.msra.mxu0 %v13377_v56  ;;  %v13440_v56 = vld [vmem:[#allocation2 + $0x1390] ss:$52 sps:$4 sm:$0xff]  }
 0x187   :  { %5720 = vmatpush2.bf16.msra.mxu1 %v13380_v57  ;;  %5680 = vmatprep.subr.bf16.mxu0 %v13385_v58  ;;  %v13445_v57 = vld [vmem:[#allocation2 + $0x132c] ss:$52 sps:$4 sm:$0xff]  }
 0x188   :  { %5721 = vmatprep.subr.bf16.mxu1 %v13388_v60  ;;  %v13448_v58 = vld [vmem:[#allocation2 + $0x19ac] ss:$52 sps:$4 sm:$0xff]   ;;  %v13443_v60 = vld [vmem:[#allocation2 + $0x1328] ss:$52 sps:$4 sm:$0xff]  }
 0x18a   :  { %5681 = vmatpush2.bf16.msra.mxu0 %v13383_v61  ;;  %v13446_v61 = vld [vmem:[#allocation2 + $0x19a8] ss:$52 sps:$4 sm:$0xff]  }
 0x18b   :  { %5722 = vmatpush2.bf16.msra.mxu1 %v13386_v62  ;;  %5682 = vmatprep.subr.bf16.mxu0 %v13391_v63  ;;  %v13451_v62 = vld [vmem:[#allocation2 + $0x12c4] ss:$52 sps:$4 sm:$0xff]  }
 0x18c   :  { %5723 = vmatprep.subr.bf16.mxu1 %v13394_v1  ;;  %v13454_v63 = vld [vmem:[#allocation2 + $0x1944] ss:$52 sps:$4 sm:$0xff]   ;;  %v13449_v1 = vld [vmem:[#allocation2 + $0x12c0] ss:$52 sps:$4 sm:$0xff]  }
 0x18e   :  { %5683 = vmatpush2.bf16.msra.mxu0 %v13389_v2  ;;  %v13452_v2 = vld [vmem:[#allocation2 + $0x1940] ss:$52 sps:$4 sm:$0xff]  }
 0x18f   :  { %5724 = vmatpush2.bf16.msra.mxu1 %v13392_v3  ;;  %5734 = vmatprep.subr.bf16.mxu0 %v13397_v4  ;;  %v13457_v3 = vld [vmem:[#allocation2 + $0x125c] ss:$52 sps:$4 sm:$0xff]  }
 0x190   :  { %5775 = vmatprep.subr.bf16.mxu1 %v13400_v5  ;;  %v13460_v4 = vld [vmem:[#allocation2 + $0x18dc] ss:$52 sps:$4 sm:$0xff]   ;;  %v13455_v5 = vld [vmem:[#allocation2 + $0x1258] ss:$52 sps:$4 sm:$0xff]  }
 0x191   :  { %v5440_v14 = vpop.f32.mrf.mxu0  ;;  %5685 = vmatmul.mubr.bf16.vlgmr.msra.gmra.mxu0 %v15117_v6 }
 0x192   :  { %5726 = vmatmul.mubr.bf16.vlgmr.msra.gmra.mxu1 %v15119_v7  ;;  %v5481_v15 = vpop.f32.mrf.mxu1  ;;  %v5441_v17 = vadd.f32 %v5440_v14, %v15171_v59  ;;  %5735 = vmatpush1.bf16.msra.mxu0 %v13395_v8  ;;  %v13458_v8 = vld [vmem:[#allocation2 + $0x18d8] ss:$52 sps:$4 sm:$0xff]  }
 0x193   :  { %5776 = vmatpush1.bf16.msra.mxu1 %v13398_v9  ;;  %v5442_v18 = vpop.f32.mrf.mxu0  ;;  %5736 = vmatprep.subr.bf16.mxu0 %v13403_v10  ;;  %v13463_v9 = vld [vmem:[#allocation2 + $0x11f4] ss:$52 sps:$4 sm:$0xff]   ;;  %v13472_v14 = vld [vmem:[#allocation2 + $0x180c] ss:$52 sps:$4 sm:$0xff]  }
 0x194   :  { %v5483_v20 = vpop.f32.mrf.mxu1  ;;  %5777 = vmatprep.subr.bf16.mxu1 %v13406_v11  ;;  %v5443_v23 = vadd.f32 %v5442_v18, %v15175_v0  ;;  %v15181_v24 = vadd.f32 %v5481_v15, %v5441_v17  ;;  %5766 = vmatprep.mubr.bf16.mxu0 %v15135_v36  ;;  %v13466_v10 = vld [vmem:[#allocation2 + $0x1874] ss:$52 sps:$4 sm:$0xff]   ;;  %v13461_v11 = vld [vmem:[#allocation2 + $0x11f0] ss:$52 sps:$4 sm:$0xff]  }
 0x195   :  { %5807 = vmatprep.mubr.bf16.mxu1 %v15139_v37  ;;  %v5444_v27 = vpop.f32.mrf.mxu0  ;;  %v13467_v15 = vld [vmem:[#allocation2 + $0x1188] ss:$52 sps:$4 sm:$0xff]   ;;  %v13475_v18 = vld [vmem:[#allocation2 + $0x1124] ss:$52 sps:$4 sm:$0xff]  }
 0x196   :  { %v5485_v59 = vpop.f32.mrf.mxu1  ;;  %v15185_v28 = vadd.f32 %v5483_v20, %v5443_v23  ;;  %5737 = vmatpush1.bf16.msra.mxu0 %v13401_v12  ;;  %v13464_v12 = vld [vmem:[#allocation2 + $0x1870] ss:$52 sps:$4 sm:$0xff]   ;;  %v13470_v17 = vld [vmem:[#allocation2 + $0x1808] ss:$52 sps:$4 sm:$0xff]   ;;  %v13482_v27 = vld [vmem:[#allocation2 + $0x1738] ss:$52 sps:$4 sm:$0xff]  }
 0x197   :  { %5778 = vmatpush1.bf16.msra.mxu1 %v13404_v13  ;;  %v5445_v30 = vpop.f32.mrf.mxu0  ;;  %5738 = vmatprep.subr.bf16.mxu0 %v13409_v21  ;;  %v13469_v13 = vld [vmem:[#allocation2 + $0x118c] ss:$52 sps:$4 sm:$0xff]   ;;  %v13478_v20 = vld [vmem:[#allocation2 + $0x17a4] ss:$52 sps:$4 sm:$0xff]   ;;  %v13481_v23 = vld [vmem:[#allocation2 + $0x10bc] ss:$52 sps:$4 sm:$0xff]  }
 0x198   :  { %5779 = vmatprep.subr.bf16.mxu1 %v13412_v22  ;;  %v5486_v0 = vpop.f32.mrf.mxu1  ;;  %v13473_v21 = vld [vmem:[#allocation2 + $0x1120] ss:$52 sps:$4 sm:$0xff]  }
 0x199   :  { %v13476_v22 = vld [vmem:[#allocation2 + $0x17a0] ss:$52 sps:$4 sm:$0xff]   ;;  %v15188_v0 = vsub.s32 2, %v15159_v29 }
 0x19a   :  { %5739 = vmatpush1.bf16.msra.mxu0 %v13407_v25  ;;  %v13484_v25 = vld [vmem:[#allocation2 + $0x173c] ss:$52 sps:$4 sm:$0xff]   ;;  %v13487_v59 = vld [vmem:[#allocation2 + $0x1054] ss:$52 sps:$4 sm:$0xff]  }
 0x19b   :  { %5780 = vmatpush1.bf16.msra.mxu1 %v13410_v26  ;;  %5740 = vmatprep.subr.bf16.mxu0 %v13415_v31  ;;  %v13479_v26 = vld [vmem:[#allocation2 + $0x10b8] ss:$52 sps:$4 sm:$0xff]   ;;  %v13490_v30 = vld [vmem:[#allocation2 + $0x16d4] ss:$52 sps:$4 sm:$0xff]   ;;  %v13485_v31 = vld [vmem:[#allocation2 + $0x1050] ss:$52 sps:$4 sm:$0xff]  }
 0x19c   :  { %5781 = vmatprep.subr.bf16.mxu1 %v13418_v32  ;;  %v13488_v32 = vld [vmem:[#allocation2 + $0x16d0] ss:$52 sps:$4 sm:$0xff]  }
 0x19e   :  { %5741 = vmatpush1.bf16.msra.mxu0 %v13413_v33  ;;  %v13493_v33 = vld [vmem:[#allocation2 + $0x2f4] ss:$52 sps:$4 sm:$0xff]  }
 0x19f   :  { %5782 = vmatpush1.bf16.msra.mxu1 %v13416_v34  ;;  %5742 = vmatprep.subr.bf16.mxu0 %v13421_v38  ;;  %v13496_v34 = vld [vmem:[#allocation2 + $0x974] ss:$52 sps:$4 sm:$0xff]   ;;  %v13491_v38 = vld [vmem:[#allocation2 + $0x2f0] ss:$52 sps:$4 sm:$0xff]  }
 0x1a0   :  { %5783 = vmatprep.subr.bf16.mxu1 %v13424_v39  ;;  %v13494_v39 = vld [vmem:[#allocation2 + $0x970] ss:$52 sps:$4 sm:$0xff]  }
 0x1a2   :  { %5743 = vmatpush1.bf16.msra.mxu0 %v13419_v41  ;;  %v15191_v41 = vsub.s32 3, %v15159_v29 }
 0x1a3   :  { %5784 = vmatpush1.bf16.msra.mxu1 %v13422_v42  ;;  %5744 = vmatprep.subr.bf16.mxu0 %v13427_v43  ;;  %v14899_v42 = vld [vmem:[#allocation4] sm:$0xff] }
 0x1a4   :  { %5785 = vmatprep.subr.bf16.mxu1 %v13430_v44  ;;  %v1018_v43 = vrot.slane %v14899_v42, %v15188_v0  ;;  %v13499_v44 = vld [vmem:[#allocation2 + $0x28c] ss:$52 sps:$4 sm:$0xff]  }
 0x1a6   :  { %5745 = vmatpush1.bf16.msra.mxu0 %v13425_v45  ;;  %v13502_v45 = vld [vmem:[#allocation2 + $0x90c] ss:$52 sps:$4 sm:$0xff]  }
 0x1a7   :  { %5786 = vmatpush1.bf16.msra.mxu1 %v13428_v46  ;;  %5746 = vmatprep.subr.bf16.mxu0 %v13433_v48  ;;  %v1022_v46 = vrot.slane %v14899_v42, %v15191_v41  ;;  %v13497_v48 = vld [vmem:[#allocation2 + $0x288] ss:$52 sps:$4 sm:$0xff]  }
 0x1a8   :  { %5787 = vmatprep.subr.bf16.mxu1 %v13436_v49  ;;  %v13500_v49 = vld [vmem:[#allocation2 + $0x908] ss:$52 sps:$4 sm:$0xff]  }
 0x1a9   :  { %v13545_v42 = vld [vmem:[#allocation2 + $0x5c8] ss:$52 sps:$4 sm:$0xff]  }
 0x1aa   :  { %5747 = vmatpush1.bf16.msra.mxu0 %v13431_v50 }
 0x1ab   :  { %5788 = vmatpush1.bf16.msra.mxu1 %v13434_v52  ;;  %5748 = vmatprep.subr.bf16.mxu0 %v13439_v53 }
 0x1ac   :  { %5789 = vmatprep.subr.bf16.mxu1 %v13442_v54 }
 0x1ae   :  { %5749 = vmatpush1.bf16.msra.mxu0 %v13437_v55 }
 0x1af   :  { %5790 = vmatpush1.bf16.msra.mxu1 %v13440_v56  ;;  %5750 = vmatprep.subr.bf16.mxu0 %v13445_v57  ;;  %v13505_v56 = vld [vmem:[#allocation2 + $0x224] ss:$52 sps:$4 sm:$0xff]  }
 0x1b0   :  { %5791 = vmatprep.subr.bf16.mxu1 %v13448_v58  ;;  %v13508_v57 = vld [vmem:[#allocation2 + $0x8a4] ss:$52 sps:$4 sm:$0xff]  }
 0x1b2   :  { %5751 = vmatpush2.bf16.msra.mxu0 %v13443_v60 }
 0x1b3   :  { %5792 = vmatpush2.bf16.msra.mxu1 %v13446_v61  ;;  %5752 = vmatprep.subr.bf16.mxu0 %v13451_v62  ;;  %v13503_v61 = vld [vmem:[#allocation2 + $0x220] ss:$52 sps:$4 sm:$0xff]  }
 0x1b4   :  { %5793 = vmatprep.subr.bf16.mxu1 %v13454_v63  ;;  %v13506_v62 = vld [vmem:[#allocation2 + $0x8a0] ss:$52 sps:$4 sm:$0xff]  }
 0x1b6   :  { %5753 = vmatpush2.bf16.msra.mxu0 %v13449_v1 }
 0x1b7   :  { %5794 = vmatpush2.bf16.msra.mxu1 %v13452_v2  ;;  %5754 = vmatprep.subr.bf16.mxu0 %v13457_v3 }
 0x1b8   :  { %5795 = vmatprep.subr.bf16.mxu1 %v13460_v4  ;;  %v13511_v4 = vld [vmem:[#allocation2 + $0x1bc] ss:$52 sps:$4 sm:$0xff]  }
 0x1ba   :  { %5755 = vmatpush2.bf16.msra.mxu0 %v13455_v5  ;;  %v13514_v5 = vld [vmem:[#allocation2 + $0x83c] ss:$52 sps:$4 sm:$0xff]  }
 0x1bb   :  { %5796 = vmatpush2.bf16.msra.mxu1 %v13458_v8  ;;  %5756 = vmatprep.subr.bf16.mxu0 %v13463_v9  ;;  %v13509_v9 = vld [vmem:[#allocation2 + $0x1b8] ss:$52 sps:$4 sm:$0xff]  }
 0x1bc   :  { %5797 = vmatprep.subr.bf16.mxu1 %v13466_v10  ;;  %v13512_v10 = vld [vmem:[#allocation2 + $0x838] ss:$52 sps:$4 sm:$0xff]  }
 0x1be   :  { %5757 = vmatpush2.bf16.msra.mxu0 %v13461_v11  ;;  %v13517_v11 = vld [vmem:[#allocation2 + $0x154] ss:$52 sps:$4 sm:$0xff]  }
 0x1bf   :  { %5798 = vmatpush2.bf16.msra.mxu1 %v13464_v12  ;;  %5758 = vmatprep.subr.bf16.mxu0 %v13469_v13  ;;  %v13520_v12 = vld [vmem:[#allocation2 + $0x7d4] ss:$52 sps:$4 sm:$0xff]   ;;  %v13515_v13 = vld [vmem:[#allocation2 + $0x150] ss:$52 sps:$4 sm:$0xff]  }
 0x1c0   :  { %5799 = vmatprep.subr.bf16.mxu1 %v13472_v14  ;;  %v13518_v14 = vld [vmem:[#allocation2 + $0x7d0] ss:$52 sps:$4 sm:$0xff]  }
 0x1c2   :  { %5759 = vmatpush2.bf16.msra.mxu0 %v13467_v15  ;;  %v13523_v15 = vld [vmem:[#allocation2 + $0xec] ss:$52 sps:$4 sm:$0xff]  }
 0x1c3   :  { %5800 = vmatpush2.bf16.msra.mxu1 %v13470_v17  ;;  %5760 = vmatprep.subr.bf16.mxu0 %v13475_v18  ;;  %v13526_v17 = vld [vmem:[#allocation2 + $0x76c] ss:$52 sps:$4 sm:$0xff]   ;;  %v13521_v18 = vld [vmem:[#allocation2 + $0xe8] ss:$52 sps:$4 sm:$0xff]  }
 0x1c4   :  { %5801 = vmatprep.subr.bf16.mxu1 %v13478_v20  ;;  %v13524_v20 = vld [vmem:[#allocation2 + $0x768] ss:$52 sps:$4 sm:$0xff]  }
 0x1c6   :  { %5761 = vmatpush2.bf16.msra.mxu0 %v13473_v21  ;;  %v13529_v21 = vld [vmem:[#allocation2 + $0x84] ss:$52 sps:$4 sm:$0xff]  }
 0x1c7   :  { %5802 = vmatpush2.bf16.msra.mxu1 %v13476_v22  ;;  %5762 = vmatprep.subr.bf16.mxu0 %v13481_v23  ;;  %v13532_v22 = vld [vmem:[#allocation2 + $0x704] ss:$52 sps:$4 sm:$0xff]   ;;  %v13527_v23 = vld [vmem:[#allocation2 + $0x80] ss:$52 sps:$4 sm:$0xff]  }
 0x1c8   :  { %5803 = vmatprep.subr.bf16.mxu1 %v13484_v25  ;;  %v13530_v25 = vld [vmem:[#allocation2 + $0x700] ss:$52 sps:$4 sm:$0xff]  }
 0x1ca   :  { %5763 = vmatpush2.bf16.msra.mxu0 %v13479_v26  ;;  %v13535_v26 = vld [vmem:[#allocation2 + $0x1c] ss:$52 sps:$4 sm:$0xff]  }
 0x1cb   :  { %5804 = vmatpush2.bf16.msra.mxu1 %v13482_v27  ;;  %5764 = vmatprep.subr.bf16.mxu0 %v13487_v59  ;;  %v13538_v27 = vld [vmem:[#allocation2 + $0x69c] ss:$52 sps:$4 sm:$0xff]   ;;  %v13533_v59 = vld [vmem:[#allocation2 + $0x18] ss:$52 sps:$4 sm:$0xff]  }
 0x1cc   :  { %5805 = vmatprep.subr.bf16.mxu1 %v13490_v30  ;;  %v13536_v30 = vld [vmem:[#allocation2 + $0x698] ss:$52 sps:$4 sm:$0xff]  }
 0x1ce   :  { %5765 = vmatpush2.bf16.msra.mxu0 %v13485_v31  ;;  %v13541_v31 = vld [vmem:[#allocation2 + $0x634] ss:$52 sps:$4 sm:$0xff]  }
 0x1cf   :  { %5806 = vmatpush2.bf16.msra.mxu1 %v13488_v32  ;;  %5816 = vmatprep.subr.bf16.mxu0 %v13493_v33  ;;  %v13544_v32 = vld [vmem:[#allocation2 + $0xcb4] ss:$52 sps:$4 sm:$0xff]   ;;  %v13539_v33 = vld [vmem:[#allocation2 + $0x630] ss:$52 sps:$4 sm:$0xff]  }
 0x1d0   :  { %5857 = vmatprep.subr.bf16.mxu1 %v13496_v34  ;;  %v13542_v34 = vld [vmem:[#allocation2 + $0xcb0] ss:$52 sps:$4 sm:$0xff]  }
 0x1d1   :  { %v5522_v50 = vpop.f32.mrf.mxu0  ;;  %5767 = vmatmul.mubr.bf16.vlgmr.msra.gmra.mxu0 %v15145_v16 }
 0x1d2   :  { %5808 = vmatmul.mubr.bf16.vlgmr.msra.gmra.mxu1 %v15149_v19  ;;  %v5563_v52 = vpop.f32.mrf.mxu1  ;;  %v5523_v53 = vadd.f32 %v5522_v50, %v1018_v43  ;;  %5817 = vmatpush1.bf16.msra.mxu0 %v13491_v38  ;;  %v13547_v38 = vld [vmem:[#allocation2 + $0x5cc] ss:$52 sps:$4 sm:$0xff]   ;;  %v13548_v43 = vld [vmem:[#allocation2 + $0xc48] ss:$52 sps:$4 sm:$0xff]  }
 0x1d3   :  { %5858 = vmatpush1.bf16.msra.mxu1 %v13494_v39  ;;  %v5524_v54 = vpop.f32.mrf.mxu0  ;;  %5818 = vmatprep.subr.bf16.mxu0 %v13499_v44  ;;  %v13550_v39 = vld [vmem:[#allocation2 + $0xc4c] ss:$52 sps:$4 sm:$0xff]   ;;  %v13553_v44 = vld [vmem:[#allocation2 + $0x564] ss:$52 sps:$4 sm:$0xff]   ;;  %v13562_v50 = vld [vmem:[#allocation2 + $0xb7c] ss:$52 sps:$4 sm:$0xff]  }
 0x1d4   :  { %v5565_v55 = vpop.f32.mrf.mxu1  ;;  %5859 = vmatprep.subr.bf16.mxu1 %v13502_v45  ;;  %v5525_v58 = vadd.f32 %v5524_v54, %v1022_v46  ;;  %v15197_v60 = vadd.f32 %v5563_v52, %v5523_v53  ;;  %5848 = vmatprep.mubr.bf16.mxu0 %v15108_v47  ;;  %v13556_v45 = vld [vmem:[#allocation2 + $0xbe4] ss:$52 sps:$4 sm:$0xff]   ;;  %v13551_v46 = vld [vmem:[#allocation2 + $0x560] ss:$52 sps:$4 sm:$0xff]  }
 0x1d5   :  { %5889 = vmatprep.mubr.bf16.mxu1 %v15113_v51  ;;  %v5526_v63 = vpop.f32.mrf.mxu0  ;;  %v13557_v52 = vld [vmem:[#allocation2 + $0x4f8] ss:$52 sps:$4 sm:$0xff]   ;;  %v13565_v54 = vld [vmem:[#allocation2 + $0x494] ss:$52 sps:$4 sm:$0xff]  }
 0x1d6   :  { %v5567_v1 = vpop.f32.mrf.mxu1  ;;  %v15201_v2 = vadd.f32 %v5565_v55, %v5525_v58  ;;  %5819 = vmatpush1.bf16.msra.mxu0 %v13497_v48  ;;  %v13554_v48 = vld [vmem:[#allocation2 + $0xbe0] ss:$52 sps:$4 sm:$0xff]   ;;  %v13560_v53 = vld [vmem:[#allocation2 + $0xb78] ss:$52 sps:$4 sm:$0xff]   ;;  %v13572_v63 = vld [vmem:[#allocation2 + $0xaa8] ss:$52 sps:$4 sm:$0xff]  }
 0x1d7   :  { %5860 = vmatpush1.bf16.msra.mxu1 %v13500_v49  ;;  %v5527_v3 = vpop.f32.mrf.mxu0  ;;  %5820 = vmatprep.subr.bf16.mxu0 %v13505_v56  ;;  %v13559_v49 = vld [vmem:[#allocation2 + $0x4fc] ss:$52 sps:$4 sm:$0xff]   ;;  %v13568_v55 = vld [vmem:[#allocation2 + $0xb14] ss:$52 sps:$4 sm:$0xff]   ;;  %v13571_v58 = vld [vmem:[#allocation2 + $0x42c] ss:$52 sps:$4 sm:$0xff]  }
 0x1d8   :  { %5861 = vmatprep.subr.bf16.mxu1 %v13508_v57  ;;  %v5568_v8 = vpop.f32.mrf.mxu1  ;;  %v13563_v56 = vld [vmem:[#allocation2 + $0x490] ss:$52 sps:$4 sm:$0xff]  }
 0x1d9   :  { %v13566_v57 = vld [vmem:[#allocation2 + $0xb10] ss:$52 sps:$4 sm:$0xff]  }
 0x1da   :  { %5821 = vmatpush1.bf16.msra.mxu0 %v13503_v61  ;;  %v13574_v61 = vld [vmem:[#allocation2 + $0xaac] ss:$52 sps:$4 sm:$0xff]   ;;  %v13577_v1 = vld [vmem:[#allocation2 + $0x3c4] ss:$52 sps:$4 sm:$0xff]   ;;  %v13583_v8 = vld [vmem:[#allocation2 + $0x35c] ss:$52 sps:$4 sm:$0xff]  }
 0x1db   :  { %5862 = vmatpush1.bf16.msra.mxu1 %v13506_v62  ;;  %5822 = vmatprep.subr.bf16.mxu0 %v13511_v4  ;;  %v13569_v62 = vld [vmem:[#allocation2 + $0x428] ss:$52 sps:$4 sm:$0xff]   ;;  %v13580_v3 = vld [vmem:[#allocation2 + $0xa44] ss:$52 sps:$4 sm:$0xff]   ;;  %v13575_v4 = vld [vmem:[#allocation2 + $0x3c0] ss:$52 sps:$4 sm:$0xff]  }
 0x1dc   :  { %5863 = vmatprep.subr.bf16.mxu1 %v13514_v5  ;;  %v13578_v5 = vld [vmem:[#allocation2 + $0xa40] ss:$52 sps:$4 sm:$0xff]  }
 0x1de   :  { %5823 = vmatpush1.bf16.msra.mxu0 %v13509_v9  ;;  %v13586_v9 = vld [vmem:[#allocation2 + $0x9dc] ss:$52 sps:$4 sm:$0xff]  }
 0x1df   :  { %5864 = vmatpush1.bf16.msra.mxu1 %v13512_v10  ;;  %5824 = vmatprep.subr.bf16.mxu0 %v13517_v11  ;;  %v13581_v10 = vld [vmem:[#allocation2 + $0x358] ss:$52 sps:$4 sm:$0xff]  }
 0x1e0   :  { %5865 = vmatprep.subr.bf16.mxu1 %v13520_v12  ;;  %v13584_v11 = vld [vmem:[#allocation2 + $0x9d8] ss:$52 sps:$4 sm:$0xff]   ;;  %v13589_v12 = vld [vmem:[#allocation2 + $0xff4] ss:$52 sps:$4 sm:$0xff]  }
 0x1e2   :  { %5825 = vmatpush1.bf16.msra.mxu0 %v13515_v13  ;;  %v13592_v13 = vld [vmem:[#allocation2 + $0x1674] ss:$52 sps:$4 sm:$0xff]  }
 0x1e3   :  { %5866 = vmatpush1.bf16.msra.mxu1 %v13518_v14  ;;  %5826 = vmatprep.subr.bf16.mxu0 %v13523_v15  ;;  %v13587_v14 = vld [vmem:[#allocation2 + $0xff0] ss:$52 sps:$4 sm:$0xff]  }
 0x1e4   :  { %5867 = vmatprep.subr.bf16.mxu1 %v13526_v17  ;;  %v13590_v15 = vld [vmem:[#allocation2 + $0x1670] ss:$52 sps:$4 sm:$0xff]   ;;  %v13595_v17 = vld [vmem:[#allocation2 + $0xf8c] ss:$52 sps:$4 sm:$0xff]  }
 0x1e6   :  { %5827 = vmatpush1.bf16.msra.mxu0 %v13521_v18  ;;  %v13598_v18 = vld [vmem:[#allocation2 + $0x160c] ss:$52 sps:$4 sm:$0xff]  }
 0x1e7   :  { %5868 = vmatpush1.bf16.msra.mxu1 %v13524_v20  ;;  %5828 = vmatprep.subr.bf16.mxu0 %v13529_v21  ;;  %v13593_v20 = vld [vmem:[#allocation2 + $0xf88] ss:$52 sps:$4 sm:$0xff]  }
 0x1e8   :  { %5869 = vmatprep.subr.bf16.mxu1 %v13532_v22  ;;  %v13596_v21 = vld [vmem:[#allocation2 + $0x1608] ss:$52 sps:$4 sm:$0xff]  }
 0x1ea   :  { %5829 = vmatpush1.bf16.msra.mxu0 %v13527_v23 }
 0x1eb   :  { %5870 = vmatpush1.bf16.msra.mxu1 %v13530_v25  ;;  %5830 = vmatprep.subr.bf16.mxu0 %v13535_v26 }
 0x1ec   :  { %5871 = vmatprep.subr.bf16.mxu1 %v13538_v27 }
 0x1ee   :  { %5831 = vmatpush1.bf16.msra.mxu0 %v13533_v59  ;;  %v13601_v59 = vld [vmem:[#allocation2 + $0xf24] ss:$52 sps:$4 sm:$0xff]  }
 0x1ef   :  { %5872 = vmatpush1.bf16.msra.mxu1 %v13536_v30  ;;  %5832 = vmatprep.subr.bf16.mxu0 %v13541_v31  ;;  %v13604_v30 = vld [vmem:[#allocation2 + $0x15a4] ss:$52 sps:$4 sm:$0xff]  }
 0x1f0   :  { %5873 = vmatprep.subr.bf16.mxu1 %v13544_v32 }
 0x1f2   :  { %5833 = vmatpush2.bf16.msra.mxu0 %v13539_v33  ;;  %v13599_v33 = vld [vmem:[#allocation2 + $0xf20] ss:$52 sps:$4 sm:$0xff]  }
 0x1f3   :  { %5874 = vmatpush2.bf16.msra.mxu1 %v13542_v34  ;;  %5834 = vmatprep.subr.bf16.mxu0 %v13547_v38  ;;  %v13602_v34 = vld [vmem:[#allocation2 + $0x15a0] ss:$52 sps:$4 sm:$0xff]  }
 0x1f4   :  { %5875 = vmatprep.subr.bf16.mxu1 %v13550_v39 }
 0x1f6   :  { %5835 = vmatpush2.bf16.msra.mxu0 %v13545_v42 }
 0x1f7   :  { %5876 = vmatpush2.bf16.msra.mxu1 %v13548_v43  ;;  %5836 = vmatprep.subr.bf16.mxu0 %v13553_v44  ;;  %v13607_v43 = vld [vmem:[#allocation2 + $0xebc] ss:$52 sps:$4 sm:$0xff]  }
 0x1f8   :  { %5877 = vmatprep.subr.bf16.mxu1 %v13556_v45  ;;  %v13610_v44 = vld [vmem:[#allocation2 + $0x153c] ss:$52 sps:$4 sm:$0xff]   ;;  %v13605_v45 = vld [vmem:[#allocation2 + $0xeb8] ss:$52 sps:$4 sm:$0xff]  }
 0x1fa   :  { %5837 = vmatpush2.bf16.msra.mxu0 %v13551_v46  ;;  %v13608_v46 = vld [vmem:[#allocation2 + $0x1538] ss:$52 sps:$4 sm:$0xff]  }
 0x1fb   :  { %5878 = vmatpush2.bf16.msra.mxu1 %v13554_v48  ;;  %5838 = vmatprep.subr.bf16.mxu0 %v13559_v49  ;;  %v13613_v48 = vld [vmem:[#allocation2 + $0xe54] ss:$52 sps:$4 sm:$0xff]  }
 0x1fc   :  { %5879 = vmatprep.subr.bf16.mxu1 %v13562_v50  ;;  %v13616_v49 = vld [vmem:[#allocation2 + $0x14d4] ss:$52 sps:$4 sm:$0xff]   ;;  %v13611_v50 = vld [vmem:[#allocation2 + $0xe50] ss:$52 sps:$4 sm:$0xff]  }
 0x1fe   :  { %5839 = vmatpush2.bf16.msra.mxu0 %v13557_v52  ;;  %v13614_v52 = vld [vmem:[#allocation2 + $0x14d0] ss:$52 sps:$4 sm:$0xff]  }
 0x1ff   :  { %5880 = vmatpush2.bf16.msra.mxu1 %v13560_v53  ;;  %5840 = vmatprep.subr.bf16.mxu0 %v13565_v54  ;;  %v13619_v53 = vld [vmem:[#allocation2 + $0xdec] ss:$52 sps:$4 sm:$0xff]  }
 0x200   :  { %5881 = vmatprep.subr.bf16.mxu1 %v13568_v55  ;;  %v13622_v54 = vld [vmem:[#allocation2 + $0x146c] ss:$52 sps:$4 sm:$0xff]   ;;  %v13617_v55 = vld [vmem:[#allocation2 + $0xde8] ss:$52 sps:$4 sm:$0xff]  }
 0x202   :  { %5841 = vmatpush2.bf16.msra.mxu0 %v13563_v56  ;;  %v13620_v56 = vld [vmem:[#allocation2 + $0x1468] ss:$52 sps:$4 sm:$0xff]  }
 0x203   :  { %5882 = vmatpush2.bf16.msra.mxu1 %v13566_v57  ;;  %5842 = vmatprep.subr.bf16.mxu0 %v13571_v58  ;;  %v13625_v57 = vld [vmem:[#allocation2 + $0xd84] ss:$52 sps:$4 sm:$0xff]  }
 0x204   :  { %5883 = vmatprep.subr.bf16.mxu1 %v13574_v61  ;;  %v13628_v58 = vld [vmem:[#allocation2 + $0x1404] ss:$52 sps:$4 sm:$0xff]   ;;  %v13623_v61 = vld [vmem:[#allocation2 + $0xd80] ss:$52 sps:$4 sm:$0xff]  }
 0x206   :  { %5843 = vmatpush2.bf16.msra.mxu0 %v13569_v62  ;;  %v13626_v62 = vld [vmem:[#allocation2 + $0x1400] ss:$52 sps:$4 sm:$0xff]  }
 0x207   :  { %5884 = vmatpush2.bf16.msra.mxu1 %v13572_v63  ;;  %5844 = vmatprep.subr.bf16.mxu0 %v13577_v1  ;;  %v13631_v63 = vld [vmem:[#allocation2 + $0xd1c] ss:$52 sps:$4 sm:$0xff]  }
 0x208   :  { %5885 = vmatprep.subr.bf16.mxu1 %v13580_v3  ;;  %v13634_v1 = vld [vmem:[#allocation2 + $0x139c] ss:$52 sps:$4 sm:$0xff]   ;;  %v13629_v3 = vld [vmem:[#allocation2 + $0xd18] ss:$52 sps:$4 sm:$0xff]  }
 0x20a   :  { %5845 = vmatpush2.bf16.msra.mxu0 %v13575_v4  ;;  %v13632_v4 = vld [vmem:[#allocation2 + $0x1398] ss:$52 sps:$4 sm:$0xff]  }
 0x20b   :  { %5886 = vmatpush2.bf16.msra.mxu1 %v13578_v5  ;;  %5846 = vmatprep.subr.bf16.mxu0 %v13583_v8  ;;  %v13637_v5 = vld [vmem:[#allocation2 + $0x1334] ss:$52 sps:$4 sm:$0xff]  }
 0x20c   :  { %5887 = vmatprep.subr.bf16.mxu1 %v13586_v9  ;;  %v13640_v8 = vld [vmem:[#allocation2 + $0x19b4] ss:$52 sps:$4 sm:$0xff]   ;;  %v13635_v9 = vld [vmem:[#allocation2 + $0x1330] ss:$52 sps:$4 sm:$0xff]  }
 0x20e   :  { %5847 = vmatpush2.bf16.msra.mxu0 %v13581_v10  ;;  %v13638_v10 = vld [vmem:[#allocation2 + $0x19b0] ss:$52 sps:$4 sm:$0xff]  }
 0x20f   :  { %5888 = vmatpush2.bf16.msra.mxu1 %v13584_v11  ;;  %5898 = vmatprep.subr.bf16.mxu0 %v13589_v12  ;;  %v13643_v11 = vld [vmem:[#allocation2 + $0x12cc] ss:$52 sps:$4 sm:$0xff]  }
 0x210   :  { %5939 = vmatprep.subr.bf16.mxu1 %v13592_v13  ;;  %v13646_v12 = vld [vmem:[#allocation2 + $0x194c] ss:$52 sps:$4 sm:$0xff]   ;;  %v13641_v13 = vld [vmem:[#allocation2 + $0x12c8] ss:$52 sps:$4 sm:$0xff]  }
 0x211   :  { %v5604_v22 = vpop.f32.mrf.mxu0  ;;  %5849 = vmatmul.mubr.bf16.vlgmr.msra.gmra.mxu0 %v15117_v6 }
 0x212   :  { %5890 = vmatmul.mubr.bf16.vlgmr.msra.gmra.mxu1 %v15119_v7  ;;  %v5645_v23 = vpop.f32.mrf.mxu1  ;;  %v5605_v25 = vadd.f32 %v5604_v22, %v15197_v60  ;;  %5899 = vmatpush1.bf16.msra.mxu0 %v13587_v14  ;;  %v13644_v14 = vld [vmem:[#allocation2 + $0x1948] ss:$52 sps:$4 sm:$0xff]  }
 0x213   :  { %5940 = vmatpush1.bf16.msra.mxu1 %v13590_v15  ;;  %v5606_v26 = vpop.f32.mrf.mxu0  ;;  %5900 = vmatprep.subr.bf16.mxu0 %v13595_v17  ;;  %v13649_v15 = vld [vmem:[#allocation2 + $0x1264] ss:$52 sps:$4 sm:$0xff]   ;;  %v13658_v22 = vld [vmem:[#allocation2 + $0x187c] ss:$52 sps:$4 sm:$0xff]  }
 0x214   :  { %v5647_v27 = vpop.f32.mrf.mxu1  ;;  %5941 = vmatprep.subr.bf16.mxu1 %v13598_v18  ;;  %v5607_v31 = vadd.f32 %v5606_v26, %v15201_v2  ;;  %v15207_v32 = vadd.f32 %v5645_v23, %v5605_v25  ;;  %5930 = vmatprep.mubr.bf16.mxu0 %v15135_v36  ;;  %v13652_v17 = vld [vmem:[#allocation2 + $0x18e4] ss:$52 sps:$4 sm:$0xff]   ;;  %v13647_v18 = vld [vmem:[#allocation2 + $0x1260] ss:$52 sps:$4 sm:$0xff]  }
 0x215   :  { %5971 = vmatprep.mubr.bf16.mxu1 %v15139_v37  ;;  %v5608_v38 = vpop.f32.mrf.mxu0  ;;  %v13653_v23 = vld [vmem:[#allocation2 + $0x11f8] ss:$52 sps:$4 sm:$0xff]   ;;  %v13661_v26 = vld [vmem:[#allocation2 + $0x1194] ss:$52 sps:$4 sm:$0xff]  }
 0x216   :  { %v5649_v60 = vpop.f32.mrf.mxu1  ;;  %v15211_v39 = vadd.f32 %v5647_v27, %v5607_v31  ;;  %5901 = vmatpush1.bf16.msra.mxu0 %v13593_v20  ;;  %v13650_v20 = vld [vmem:[#allocation2 + $0x18e0] ss:$52 sps:$4 sm:$0xff]   ;;  %v13656_v25 = vld [vmem:[#allocation2 + $0x1878] ss:$52 sps:$4 sm:$0xff]   ;;  %v13668_v38 = vld [vmem:[#allocation2 + $0x17a8] ss:$52 sps:$4 sm:$0xff]  }
 0x217   :  { %5942 = vmatpush1.bf16.msra.mxu1 %v13596_v21  ;;  %v5609_v42 = vpop.f32.mrf.mxu0  ;;  %5902 = vmatprep.subr.bf16.mxu0 %v13601_v59  ;;  %v13655_v21 = vld [vmem:[#allocation2 + $0x11fc] ss:$52 sps:$4 sm:$0xff]   ;;  %v13664_v27 = vld [vmem:[#allocation2 + $0x1814] ss:$52 sps:$4 sm:$0xff]   ;;  %v13667_v31 = vld [vmem:[#allocation2 + $0x112c] ss:$52 sps:$4 sm:$0xff]  }
 0x218   :  { %5943 = vmatprep.subr.bf16.mxu1 %v13604_v30  ;;  %v5650_v2 = vpop.f32.mrf.mxu1  ;;  %v13659_v59 = vld [vmem:[#allocation2 + $0x1190] ss:$52 sps:$4 sm:$0xff]  }
 0x219   :  { %v13662_v30 = vld [vmem:[#allocation2 + $0x1810] ss:$52 sps:$4 sm:$0xff]  }
 0x21a   :  { %5903 = vmatpush1.bf16.msra.mxu0 %v13599_v33  ;;  %v13670_v33 = vld [vmem:[#allocation2 + $0x17ac] ss:$52 sps:$4 sm:$0xff]   ;;  %v13673_v60 = vld [vmem:[#allocation2 + $0x10c4] ss:$52 sps:$4 sm:$0xff]   ;;  %v13679_v2 = vld [vmem:[#allocation2 + $0x105c] ss:$52 sps:$4 sm:$0xff]  }
 0x21b   :  { %5944 = vmatpush1.bf16.msra.mxu1 %v13602_v34  ;;  %5904 = vmatprep.subr.bf16.mxu0 %v13607_v43  ;;  %v13665_v34 = vld [vmem:[#allocation2 + $0x1128] ss:$52 sps:$4 sm:$0xff]   ;;  %v13676_v42 = vld [vmem:[#allocation2 + $0x1744] ss:$52 sps:$4 sm:$0xff]   ;;  %v13671_v43 = vld [vmem:[#allocation2 + $0x10c0] ss:$52 sps:$4 sm:$0xff]  }
 0x21c   :  { %5945 = vmatprep.subr.bf16.mxu1 %v13610_v44  ;;  %v13674_v44 = vld [vmem:[#allocation2 + $0x1740] ss:$52 sps:$4 sm:$0xff]  }
 0x21e   :  { %5905 = vmatpush1.bf16.msra.mxu0 %v13605_v45  ;;  %v13682_v45 = vld [vmem:[#allocation2 + $0x16dc] ss:$52 sps:$4 sm:$0xff]  }
 0x21f   :  { %5946 = vmatpush1.bf16.msra.mxu1 %v13608_v46  ;;  %5906 = vmatprep.subr.bf16.mxu0 %v13613_v48  ;;  %v13677_v46 = vld [vmem:[#allocation2 + $0x1058] ss:$52 sps:$4 sm:$0xff]  }
 0x220   :  { %5947 = vmatprep.subr.bf16.mxu1 %v13616_v49  ;;  %v13680_v48 = vld [vmem:[#allocation2 + $0x16d8] ss:$52 sps:$4 sm:$0xff]   ;;  %v15214_v49 = vsub.s32 4, %v15159_v29 }
 0x222   :  { %5907 = vmatpush1.bf16.msra.mxu0 %v13611_v50  ;;  %v13685_v50 = vld [vmem:[#allocation2 + $0x2fc] ss:$52 sps:$4 sm:$0xff]  }
 0x223   :  { %5948 = vmatpush1.bf16.msra.mxu1 %v13614_v52  ;;  %5908 = vmatprep.subr.bf16.mxu0 %v13619_v53  ;;  %v13688_v52 = vld [vmem:[#allocation2 + $0x97c] ss:$52 sps:$4 sm:$0xff]   ;;  %v1029_v53 = vsub.s32 5, %v15159_v29 }
 0x224   :  { %5949 = vmatprep.subr.bf16.mxu1 %v13622_v54  ;;  %v13683_v54 = vld [vmem:[#allocation2 + $0x2f8] ss:$52 sps:$4 sm:$0xff]  }
 0x226   :  { %5909 = vmatpush1.bf16.msra.mxu0 %v13617_v55  ;;  %v13686_v55 = vld [vmem:[#allocation2 + $0x978] ss:$52 sps:$4 sm:$0xff]  }
 0x227   :  { %5950 = vmatpush1.bf16.msra.mxu1 %v13620_v56  ;;  %5910 = vmatprep.subr.bf16.mxu0 %v13625_v57  ;;  %v14900_v56 = vld [vmem:[#allocation4] sm:$0xff] }
 0x228   :  { %5951 = vmatprep.subr.bf16.mxu1 %v13628_v58  ;;  %v1026_v57 = vrot.slane %v14900_v56, %v15214_v49  ;;  %v13691_v58 = vld [vmem:[#allocation2 + $0x294] ss:$52 sps:$4 sm:$0xff]  }
 0x22a   :  { %5911 = vmatpush1.bf16.msra.mxu0 %v13623_v61  ;;  %v13694_v61 = vld [vmem:[#allocation2 + $0x914] ss:$52 sps:$4 sm:$0xff]  }
 0x22b   :  { %5952 = vmatpush1.bf16.msra.mxu1 %v13626_v62  ;;  %5912 = vmatprep.subr.bf16.mxu0 %v13631_v63  ;;  %v1030_v62 = vrot.slane %v14900_v56, %v1029_v53  ;;  %v13689_v63 = vld [vmem:[#allocation2 + $0x290] ss:$52 sps:$4 sm:$0xff]   ;;  %v13734_v56 = vld [vmem:[#allocation2 + $0xcb8] ss:$52 sps:$4 sm:$0xff]  }
 0x22c   :  { %5953 = vmatprep.subr.bf16.mxu1 %v13634_v1  ;;  %v13692_v1 = vld [vmem:[#allocation2 + $0x910] ss:$52 sps:$4 sm:$0xff]  }
 0x22d   :  { %v13733_v53 = vld [vmem:[#allocation2 + $0x63c] ss:$52 sps:$4 sm:$0xff]  }
 0x22e   :  { %5913 = vmatpush1.bf16.msra.mxu0 %v13629_v3 }
 0x22f   :  { %5954 = vmatpush1.bf16.msra.mxu1 %v13632_v4  ;;  %5914 = vmatprep.subr.bf16.mxu0 %v13637_v5 }
 0x230   :  { %5955 = vmatprep.subr.bf16.mxu1 %v13640_v8 }
 0x232   :  { %5915 = vmatpush2.bf16.msra.mxu0 %v13635_v9 }
 0x233   :  { %5956 = vmatpush2.bf16.msra.mxu1 %v13638_v10  ;;  %5916 = vmatprep.subr.bf16.mxu0 %v13643_v11  ;;  %v13697_v10 = vld [vmem:[#allocation2 + $0x22c] ss:$52 sps:$4 sm:$0xff]  }
 0x234   :  { %5957 = vmatprep.subr.bf16.mxu1 %v13646_v12  ;;  %v13700_v11 = vld [vmem:[#allocation2 + $0x8ac] ss:$52 sps:$4 sm:$0xff]  }
 0x236   :  { %5917 = vmatpush2.bf16.msra.mxu0 %v13641_v13 }
 0x237   :  { %5958 = vmatpush2.bf16.msra.mxu1 %v13644_v14  ;;  %5918 = vmatprep.subr.bf16.mxu0 %v13649_v15  ;;  %v13695_v14 = vld [vmem:[#allocation2 + $0x228] ss:$52 sps:$4 sm:$0xff]  }
 0x238   :  { %5959 = vmatprep.subr.bf16.mxu1 %v13652_v17  ;;  %v13698_v15 = vld [vmem:[#allocation2 + $0x8a8] ss:$52 sps:$4 sm:$0xff]  }
 0x23a   :  { %5919 = vmatpush2.bf16.msra.mxu0 %v13647_v18 }
 0x23b   :  { %5960 = vmatpush2.bf16.msra.mxu1 %v13650_v20  ;;  %5920 = vmatprep.subr.bf16.mxu0 %v13655_v21 }
 0x23c   :  { %5961 = vmatprep.subr.bf16.mxu1 %v13658_v22  ;;  %v13703_v22 = vld [vmem:[#allocation2 + $0x1c4] ss:$52 sps:$4 sm:$0xff]  }
 0x23e   :  { %5921 = vmatpush2.bf16.msra.mxu0 %v13653_v23  ;;  %v13706_v23 = vld [vmem:[#allocation2 + $0x844] ss:$52 sps:$4 sm:$0xff]  }
 0x23f   :  { %5962 = vmatpush2.bf16.msra.mxu1 %v13656_v25  ;;  %5922 = vmatprep.subr.bf16.mxu0 %v13661_v26  ;;  %v13701_v26 = vld [vmem:[#allocation2 + $0x1c0] ss:$52 sps:$4 sm:$0xff]  }
 0x240   :  { %5963 = vmatprep.subr.bf16.mxu1 %v13664_v27  ;;  %v13704_v27 = vld [vmem:[#allocation2 + $0x840] ss:$52 sps:$4 sm:$0xff]  }
 0x242   :  { %5923 = vmatpush2.bf16.msra.mxu0 %v13659_v59  ;;  %v13709_v59 = vld [vmem:[#allocation2 + $0x15c] ss:$52 sps:$4 sm:$0xff]  }
 0x243   :  { %5964 = vmatpush2.bf16.msra.mxu1 %v13662_v30  ;;  %5924 = vmatprep.subr.bf16.mxu0 %v13667_v31  ;;  %v13712_v30 = vld [vmem:[#allocation2 + $0x7dc] ss:$52 sps:$4 sm:$0xff]   ;;  %v13707_v31 = vld [vmem:[#allocation2 + $0x158] ss:$52 sps:$4 sm:$0xff]  }
 0x244   :  { %5965 = vmatprep.subr.bf16.mxu1 %v13670_v33  ;;  %v13710_v33 = vld [vmem:[#allocation2 + $0x7d8] ss:$52 sps:$4 sm:$0xff]  }
 0x246   :  { %5925 = vmatpush2.bf16.msra.mxu0 %v13665_v34  ;;  %v13715_v34 = vld [vmem:[#allocation2 + $0xf4] ss:$52 sps:$4 sm:$0xff]  }
 0x247   :  { %5966 = vmatpush2.bf16.msra.mxu1 %v13668_v38  ;;  %5926 = vmatprep.subr.bf16.mxu0 %v13673_v60  ;;  %v13718_v38 = vld [vmem:[#allocation2 + $0x774] ss:$52 sps:$4 sm:$0xff]   ;;  %v13713_v60 = vld [vmem:[#allocation2 + $0xf0] ss:$52 sps:$4 sm:$0xff]  }
 0x248   :  { %5967 = vmatprep.subr.bf16.mxu1 %v13676_v42  ;;  %v13716_v42 = vld [vmem:[#allocation2 + $0x770] ss:$52 sps:$4 sm:$0xff]  }
 0x24a   :  { %5927 = vmatpush2.bf16.msra.mxu0 %v13671_v43  ;;  %v13721_v43 = vld [vmem:[#allocation2 + $0x8c] ss:$52 sps:$4 sm:$0xff]  }
 0x24b   :  { %5968 = vmatpush2.bf16.msra.mxu1 %v13674_v44  ;;  %5928 = vmatprep.subr.bf16.mxu0 %v13679_v2  ;;  %v13724_v44 = vld [vmem:[#allocation2 + $0x70c] ss:$52 sps:$4 sm:$0xff]   ;;  %v13719_v2 = vld [vmem:[#allocation2 + $0x88] ss:$52 sps:$4 sm:$0xff]  }
 0x24c   :  { %5969 = vmatprep.subr.bf16.mxu1 %v13682_v45  ;;  %v13722_v45 = vld [vmem:[#allocation2 + $0x708] ss:$52 sps:$4 sm:$0xff]  }
 0x24e   :  { %5929 = vmatpush2.bf16.msra.mxu0 %v13677_v46  ;;  %v13727_v46 = vld [vmem:[#allocation2 + $0x24] ss:$52 sps:$4 sm:$0xff]  }
 0x24f   :  { %5970 = vmatpush2.bf16.msra.mxu1 %v13680_v48  ;;  %5980 = vmatprep.subr.bf16.mxu0 %v13685_v50  ;;  %v13730_v48 = vld [vmem:[#allocation2 + $0x6a4] ss:$52 sps:$4 sm:$0xff]   ;;  %v13725_v50 = vld [vmem:[#allocation2 + $0x20] ss:$52 sps:$4 sm:$0xff]  }
 0x250   :  { %6021 = vmatprep.subr.bf16.mxu1 %v13688_v52  ;;  %v13728_v52 = vld [vmem:[#allocation2 + $0x6a0] ss:$52 sps:$4 sm:$0xff]  }
 0x251   :  { %v5686_v3 = vpop.f32.mrf.mxu0  ;;  %5931 = vmatmul.mubr.bf16.vlgmr.msra.gmra.mxu0 %v15145_v16 }
 0x252   :  { %5972 = vmatmul.mubr.bf16.vlgmr.msra.gmra.mxu1 %v15149_v19  ;;  %v5727_v4 = vpop.f32.mrf.mxu1  ;;  %v5687_v5 = vadd.f32 %v5686_v3, %v1026_v57  ;;  %5981 = vmatpush1.bf16.msra.mxu0 %v13683_v54  ;;  %v13736_v54 = vld [vmem:[#allocation2 + $0xcbc] ss:$52 sps:$4 sm:$0xff]   ;;  %v13739_v57 = vld [vmem:[#allocation2 + $0x5d4] ss:$52 sps:$4 sm:$0xff]  }
 0x253   :  { %6022 = vmatpush1.bf16.msra.mxu1 %v13686_v55  ;;  %v5688_v8 = vpop.f32.mrf.mxu0  ;;  %5982 = vmatprep.subr.bf16.mxu0 %v13691_v58  ;;  %v13731_v55 = vld [vmem:[#allocation2 + $0x638] ss:$52 sps:$4 sm:$0xff]   ;;  %v13742_v58 = vld [vmem:[#allocation2 + $0xc54] ss:$52 sps:$4 sm:$0xff]  }
 0x254   :  { %v5729_v9 = vpop.f32.mrf.mxu1  ;;  %6023 = vmatprep.subr.bf16.mxu1 %v13694_v61  ;;  %v5689_v12 = vadd.f32 %v5688_v8, %v1030_v62  ;;  %v15220_v13 = vadd.f32 %v5727_v4, %v5687_v5  ;;  %6012 = vmatprep.mubr.bf16.mxu0 %v15108_v47  ;;  %v13737_v61 = vld [vmem:[#allocation2 + $0x5d0] ss:$52 sps:$4 sm:$0xff]   ;;  %v13743_v3 = vld [vmem:[#allocation2 + $0x568] ss:$52 sps:$4 sm:$0xff]  }
 0x255   :  { %6053 = vmatprep.mubr.bf16.mxu1 %v15113_v51  ;;  %v5690_v17 = vpop.f32.mrf.mxu0  ;;  %v13740_v62 = vld [vmem:[#allocation2 + $0xc50] ss:$52 sps:$4 sm:$0xff]   ;;  %v13746_v4 = vld [vmem:[#allocation2 + $0xbe8] ss:$52 sps:$4 sm:$0xff]  }
 0x256   :  { %v5731_v18 = vpop.f32.mrf.mxu1  ;;  %v15224_v20 = vadd.f32 %v5729_v9, %v5689_v12  ;;  %5983 = vmatpush1.bf16.msra.mxu0 %v13689_v63  ;;  %v13745_v63 = vld [vmem:[#allocation2 + $0x56c] ss:$52 sps:$4 sm:$0xff]   ;;  %v13751_v5 = vld [vmem:[#allocation2 + $0x504] ss:$52 sps:$4 sm:$0xff]   ;;  %v13760_v12 = vld [vmem:[#allocation2 + $0xb1c] ss:$52 sps:$4 sm:$0xff]  }
 0x257   :  { %6024 = vmatpush1.bf16.msra.mxu1 %v13692_v1  ;;  %v5691_v21 = vpop.f32.mrf.mxu0  ;;  %5984 = vmatprep.subr.bf16.mxu0 %v13697_v10  ;;  %v13748_v1 = vld [vmem:[#allocation2 + $0xbec] ss:$52 sps:$4 sm:$0xff]   ;;  %v13754_v8 = vld [vmem:[#allocation2 + $0xb84] ss:$52 sps:$4 sm:$0xff]   ;;  %v13763_v17 = vld [vmem:[#allocation2 + $0x434] ss:$52 sps:$4 sm:$0xff]  }
 0x258   :  { %6025 = vmatprep.subr.bf16.mxu1 %v13700_v11  ;;  %v5732_v25 = vpop.f32.mrf.mxu1  ;;  %v13749_v9 = vld [vmem:[#allocation2 + $0x500] ss:$52 sps:$4 sm:$0xff]   ;;  %v13757_v11 = vld [vmem:[#allocation2 + $0x49c] ss:$52 sps:$4 sm:$0xff]  }
 0x259   :  { %v13752_v10 = vld [vmem:[#allocation2 + $0xb80] ss:$52 sps:$4 sm:$0xff]   ;;  %v13761_v21 = vld [vmem:[#allocation2 + $0x430] ss:$52 sps:$4 sm:$0xff]  }
 0x25a   :  { %5985 = vmatpush1.bf16.msra.mxu0 %v13695_v14  ;;  %v13755_v14 = vld [vmem:[#allocation2 + $0x498] ss:$52 sps:$4 sm:$0xff]   ;;  %v13766_v18 = vld [vmem:[#allocation2 + $0xab4] ss:$52 sps:$4 sm:$0xff]  }
 0x25b   :  { %6026 = vmatpush1.bf16.msra.mxu1 %v13698_v15  ;;  %5986 = vmatprep.subr.bf16.mxu0 %v13703_v22  ;;  %v13758_v15 = vld [vmem:[#allocation2 + $0xb18] ss:$52 sps:$4 sm:$0xff]   ;;  %v13764_v22 = vld [vmem:[#allocation2 + $0xab0] ss:$52 sps:$4 sm:$0xff]  }
 0x25c   :  { %6027 = vmatprep.subr.bf16.mxu1 %v13706_v23  ;;  %v13769_v23 = vld [vmem:[#allocation2 + $0x3cc] ss:$52 sps:$4 sm:$0xff]  }
 0x25d   :  { %v13772_v25 = vld [vmem:[#allocation2 + $0xa4c] ss:$52 sps:$4 sm:$0xff]  }
 0x25e   :  { %5987 = vmatpush1.bf16.msra.mxu0 %v13701_v26  ;;  %v13767_v26 = vld [vmem:[#allocation2 + $0x3c8] ss:$52 sps:$4 sm:$0xff]  }
 0x25f   :  { %6028 = vmatpush1.bf16.msra.mxu1 %v13704_v27  ;;  %5988 = vmatprep.subr.bf16.mxu0 %v13709_v59  ;;  %v13770_v27 = vld [vmem:[#allocation2 + $0xa48] ss:$52 sps:$4 sm:$0xff]   ;;  %v13775_v59 = vld [vmem:[#allocation2 + $0x364] ss:$52 sps:$4 sm:$0xff]  }
 0x260   :  { %6029 = vmatprep.subr.bf16.mxu1 %v13712_v30  ;;  %v13778_v30 = vld [vmem:[#allocation2 + $0x9e4] ss:$52 sps:$4 sm:$0xff]  }
 0x262   :  { %5989 = vmatpush1.bf16.msra.mxu0 %v13707_v31  ;;  %v13773_v31 = vld [vmem:[#allocation2 + $0x360] ss:$52 sps:$4 sm:$0xff]  }
 0x263   :  { %6030 = vmatpush1.bf16.msra.mxu1 %v13710_v33  ;;  %5990 = vmatprep.subr.bf16.mxu0 %v13715_v34  ;;  %v13776_v33 = vld [vmem:[#allocation2 + $0x9e0] ss:$52 sps:$4 sm:$0xff]   ;;  %v13781_v34 = vld [vmem:[#allocation2 + $0xffc] ss:$52 sps:$4 sm:$0xff]  }
 0x264   :  { %6031 = vmatprep.subr.bf16.mxu1 %v13718_v38  ;;  %v13784_v38 = vld [vmem:[#allocation2 + $0x167c] ss:$52 sps:$4 sm:$0xff]  }
 0x266   :  { %5991 = vmatpush1.bf16.msra.mxu0 %v13713_v60  ;;  %v13779_v60 = vld [vmem:[#allocation2 + $0xff8] ss:$52 sps:$4 sm:$0xff]  }
 0x267   :  { %6032 = vmatpush1.bf16.msra.mxu1 %v13716_v42  ;;  %5992 = vmatprep.subr.bf16.mxu0 %v13721_v43  ;;  %v13782_v42 = vld [vmem:[#allocation2 + $0x1678] ss:$52 sps:$4 sm:$0xff]   ;;  %v13787_v43 = vld [vmem:[#allocation2 + $0xf94] ss:$52 sps:$4 sm:$0xff]  }
 0x268   :  { %6033 = vmatprep.subr.bf16.mxu1 %v13724_v44  ;;  %v13790_v44 = vld [vmem:[#allocation2 + $0x1614] ss:$52 sps:$4 sm:$0xff]  }
 0x26a   :  { %5993 = vmatpush1.bf16.msra.mxu0 %v13719_v2  ;;  %v13785_v2 = vld [vmem:[#allocation2 + $0xf90] ss:$52 sps:$4 sm:$0xff]  }
 0x26b   :  { %6034 = vmatpush1.bf16.msra.mxu1 %v13722_v45  ;;  %5994 = vmatprep.subr.bf16.mxu0 %v13727_v46  ;;  %v13788_v45 = vld [vmem:[#allocation2 + $0x1610] ss:$52 sps:$4 sm:$0xff]  }
 0x26c   :  { %6035 = vmatprep.subr.bf16.mxu1 %v13730_v48 }
 0x26e   :  { %5995 = vmatpush1.bf16.msra.mxu0 %v13725_v50 }
 0x26f   :  { %6036 = vmatpush1.bf16.msra.mxu1 %v13728_v52  ;;  %5996 = vmatprep.subr.bf16.mxu0 %v13733_v53 }
 0x270   :  { %6037 = vmatprep.subr.bf16.mxu1 %v13736_v54  ;;  %v13793_v54 = vld [vmem:[#allocation2 + $0xf2c] ss:$52 sps:$4 sm:$0xff]  }
 0x272   :  { %5997 = vmatpush2.bf16.msra.mxu0 %v13731_v55  ;;  %v13796_v55 = vld [vmem:[#allocation2 + $0x15ac] ss:$52 sps:$4 sm:$0xff]  }
 0x273   :  { %6038 = vmatpush2.bf16.msra.mxu1 %v13734_v56  ;;  %5998 = vmatprep.subr.bf16.mxu0 %v13739_v57 }
 0x274   :  { %6039 = vmatprep.subr.bf16.mxu1 %v13742_v58  ;;  %v13791_v58 = vld [vmem:[#allocation2 + $0xf28] ss:$52 sps:$4 sm:$0xff]  }
 0x276   :  { %5999 = vmatpush2.bf16.msra.mxu0 %v13737_v61  ;;  %v13794_v61 = vld [vmem:[#allocation2 + $0x15a8] ss:$52 sps:$4 sm:$0xff]  }
 0x277   :  { %6040 = vmatpush2.bf16.msra.mxu1 %v13740_v62  ;;  %6000 = vmatprep.subr.bf16.mxu0 %v13745_v63 }
 0x278   :  { %6041 = vmatprep.subr.bf16.mxu1 %v13748_v1 }
 0x27a   :  { %6001 = vmatpush2.bf16.msra.mxu0 %v13743_v3  ;;  %v13799_v3 = vld [vmem:[#allocation2 + $0xec4] ss:$52 sps:$4 sm:$0xff]  }
 0x27b   :  { %6042 = vmatpush2.bf16.msra.mxu1 %v13746_v4  ;;  %6002 = vmatprep.subr.bf16.mxu0 %v13751_v5  ;;  %v13802_v4 = vld [vmem:[#allocation2 + $0x1544] ss:$52 sps:$4 sm:$0xff]   ;;  %v13797_v5 = vld [vmem:[#allocation2 + $0xec0] ss:$52 sps:$4 sm:$0xff]  }
 0x27c   :  { %6043 = vmatprep.subr.bf16.mxu1 %v13754_v8  ;;  %v13800_v8 = vld [vmem:[#allocation2 + $0x1540] ss:$52 sps:$4 sm:$0xff]  }
 0x27e   :  { %6003 = vmatpush2.bf16.msra.mxu0 %v13749_v9  ;;  %v13805_v9 = vld [vmem:[#allocation2 + $0xe5c] ss:$52 sps:$4 sm:$0xff]  }
 0x27f   :  { %6044 = vmatpush2.bf16.msra.mxu1 %v13752_v10  ;;  %6004 = vmatprep.subr.bf16.mxu0 %v13757_v11  ;;  %v13808_v10 = vld [vmem:[#allocation2 + $0x14dc] ss:$52 sps:$4 sm:$0xff]   ;;  %v13803_v11 = vld [vmem:[#allocation2 + $0xe58] ss:$52 sps:$4 sm:$0xff]  }
 0x280   :  { %6045 = vmatprep.subr.bf16.mxu1 %v13760_v12  ;;  %v13806_v12 = vld [vmem:[#allocation2 + $0x14d8] ss:$52 sps:$4 sm:$0xff]  }
 0x282   :  { %6005 = vmatpush2.bf16.msra.mxu0 %v13755_v14  ;;  %v13811_v14 = vld [vmem:[#allocation2 + $0xdf4] ss:$52 sps:$4 sm:$0xff]  }
 0x283   :  { %6046 = vmatpush2.bf16.msra.mxu1 %v13758_v15  ;;  %6006 = vmatprep.subr.bf16.mxu0 %v13763_v17  ;;  %v13814_v15 = vld [vmem:[#allocation2 + $0x1474] ss:$52 sps:$4 sm:$0xff]   ;;  %v13809_v17 = vld [vmem:[#allocation2 + $0xdf0] ss:$52 sps:$4 sm:$0xff]  }
 0x284   :  { %6047 = vmatprep.subr.bf16.mxu1 %v13766_v18  ;;  %v13812_v18 = vld [vmem:[#allocation2 + $0x1470] ss:$52 sps:$4 sm:$0xff]  }
 0x286   :  { %6007 = vmatpush2.bf16.msra.mxu0 %v13761_v21  ;;  %v13817_v21 = vld [vmem:[#allocation2 + $0xd8c] ss:$52 sps:$4 sm:$0xff]  }
 0x287   :  { %6048 = vmatpush2.bf16.msra.mxu1 %v13764_v22  ;;  %6008 = vmatprep.subr.bf16.mxu0 %v13769_v23  ;;  %v13820_v22 = vld [vmem:[#allocation2 + $0x140c] ss:$52 sps:$4 sm:$0xff]   ;;  %v13815_v23 = vld [vmem:[#allocation2 + $0xd88] ss:$52 sps:$4 sm:$0xff]  }
 0x288   :  { %6049 = vmatprep.subr.bf16.mxu1 %v13772_v25  ;;  %v13818_v25 = vld [vmem:[#allocation2 + $0x1408] ss:$52 sps:$4 sm:$0xff]  }
 0x28a   :  { %6009 = vmatpush2.bf16.msra.mxu0 %v13767_v26  ;;  %v13823_v26 = vld [vmem:[#allocation2 + $0xd24] ss:$52 sps:$4 sm:$0xff]  }
 0x28b   :  { %6050 = vmatpush2.bf16.msra.mxu1 %v13770_v27  ;;  %6010 = vmatprep.subr.bf16.mxu0 %v13775_v59  ;;  %v13826_v27 = vld [vmem:[#allocation2 + $0x13a4] ss:$52 sps:$4 sm:$0xff]   ;;  %v13821_v59 = vld [vmem:[#allocation2 + $0xd20] ss:$52 sps:$4 sm:$0xff]  }
 0x28c   :  { %6051 = vmatprep.subr.bf16.mxu1 %v13778_v30  ;;  %v13824_v30 = vld [vmem:[#allocation2 + $0x13a0] ss:$52 sps:$4 sm:$0xff]  }
 0x28e   :  { %6011 = vmatpush2.bf16.msra.mxu0 %v13773_v31  ;;  %v13829_v31 = vld [vmem:[#allocation2 + $0x133c] ss:$52 sps:$4 sm:$0xff]  }
 0x28f   :  { %6052 = vmatpush2.bf16.msra.mxu1 %v13776_v33  ;;  %6062 = vmatprep.subr.bf16.mxu0 %v13781_v34  ;;  %v13832_v33 = vld [vmem:[#allocation2 + $0x19bc] ss:$52 sps:$4 sm:$0xff]   ;;  %v13827_v34 = vld [vmem:[#allocation2 + $0x1338] ss:$52 sps:$4 sm:$0xff]  }
 0x290   :  { %6103 = vmatprep.subr.bf16.mxu1 %v13784_v38  ;;  %v13830_v38 = vld [vmem:[#allocation2 + $0x19b8] ss:$52 sps:$4 sm:$0xff]  }
 0x291   :  { %v5768_v46 = vpop.f32.mrf.mxu0  ;;  %6013 = vmatmul.mubr.bf16.vlgmr.msra.gmra.mxu0 %v15117_v6 }
 0x292   :  { %6054 = vmatmul.mubr.bf16.vlgmr.msra.gmra.mxu1 %v15119_v7  ;;  %v5809_v48 = vpop.f32.mrf.mxu1  ;;  %v5769_v50 = vadd.f32 %v5768_v46, %v15220_v13  ;;  %6063 = vmatpush1.bf16.msra.mxu0 %v13779_v60  ;;  %v13835_v60 = vld [vmem:[#allocation2 + $0x12d4] ss:$52 sps:$4 sm:$0xff]  }
 0x293   :  { %6104 = vmatpush1.bf16.msra.mxu1 %v13782_v42  ;;  %v5770_v52 = vpop.f32.mrf.mxu0  ;;  %6064 = vmatprep.subr.bf16.mxu0 %v13787_v43  ;;  %v13838_v42 = vld [vmem:[#allocation2 + $0x1954] ss:$52 sps:$4 sm:$0xff]   ;;  %v13833_v43 = vld [vmem:[#allocation2 + $0x12d0] ss:$52 sps:$4 sm:$0xff]  }
 0x294   :  { %v5811_v53 = vpop.f32.mrf.mxu1  ;;  %6105 = vmatprep.subr.bf16.mxu1 %v13790_v44  ;;  %v5771_v56 = vadd.f32 %v5770_v52, %v15224_v20  ;;  %v15230_v57 = vadd.f32 %v5809_v48, %v5769_v50  ;;  %6094 = vmatprep.mubr.bf16.mxu0 %v15135_v36  ;;  %v13836_v44 = vld [vmem:[#allocation2 + $0x1950] ss:$52 sps:$4 sm:$0xff]   ;;  %v13839_v46 = vld [vmem:[#allocation2 + $0x1268] ss:$52 sps:$4 sm:$0xff]  }
 0x295   :  { %6135 = vmatprep.mubr.bf16.mxu1 %v15139_v37  ;;  %v5772_v62 = vpop.f32.mrf.mxu0  ;;  %v13842_v48 = vld [vmem:[#allocation2 + $0x18e8] ss:$52 sps:$4 sm:$0xff]   ;;  %v13847_v50 = vld [vmem:[#allocation2 + $0x1204] ss:$52 sps:$4 sm:$0xff]  }
 0x296   :  { %v5813_v13 = vpop.f32.mrf.mxu1  ;;  %v15234_v63 = vadd.f32 %v5811_v53, %v5771_v56  ;;  %6065 = vmatpush1.bf16.msra.mxu0 %v13785_v2  ;;  %v13841_v2 = vld [vmem:[#allocation2 + $0x126c] ss:$52 sps:$4 sm:$0xff]   ;;  %v13850_v52 = vld [vmem:[#allocation2 + $0x1884] ss:$52 sps:$4 sm:$0xff]   ;;  %v13856_v56 = vld [vmem:[#allocation2 + $0x181c] ss:$52 sps:$4 sm:$0xff]  }
 0x297   :  { %6106 = vmatpush1.bf16.msra.mxu1 %v13788_v45  ;;  %v5773_v1 = vpop.f32.mrf.mxu0  ;;  %6066 = vmatprep.subr.bf16.mxu0 %v13793_v54  ;;  %v13844_v45 = vld [vmem:[#allocation2 + $0x18ec] ss:$52 sps:$4 sm:$0xff]   ;;  %v13859_v62 = vld [vmem:[#allocation2 + $0x1134] ss:$52 sps:$4 sm:$0xff]  }
 0x298   :  { %6107 = vmatprep.subr.bf16.mxu1 %v13796_v55  ;;  %v5814_v20 = vpop.f32.mrf.mxu1  ;;  %v13845_v53 = vld [vmem:[#allocation2 + $0x1200] ss:$52 sps:$4 sm:$0xff]   ;;  %v13853_v55 = vld [vmem:[#allocation2 + $0x119c] ss:$52 sps:$4 sm:$0xff]  }
 0x299   :  { %v13848_v54 = vld [vmem:[#allocation2 + $0x1880] ss:$52 sps:$4 sm:$0xff]   ;;  %v13857_v1 = vld [vmem:[#allocation2 + $0x1130] ss:$52 sps:$4 sm:$0xff]  }
 0x29a   :  { %6067 = vmatpush1.bf16.msra.mxu0 %v13791_v58  ;;  %v13851_v58 = vld [vmem:[#allocation2 + $0x1198] ss:$52 sps:$4 sm:$0xff]   ;;  %v13862_v13 = vld [vmem:[#allocation2 + $0x17b4] ss:$52 sps:$4 sm:$0xff]  }
 0x29b   :  { %6108 = vmatpush1.bf16.msra.mxu1 %v13794_v61  ;;  %6068 = vmatprep.subr.bf16.mxu0 %v13799_v3  ;;  %v13854_v61 = vld [vmem:[#allocation2 + $0x1818] ss:$52 sps:$4 sm:$0xff]   ;;  %v13860_v3 = vld [vmem:[#allocation2 + $0x17b0] ss:$52 sps:$4 sm:$0xff]  }
 0x29c   :  { %6109 = vmatprep.subr.bf16.mxu1 %v13802_v4  ;;  %v13865_v4 = vld [vmem:[#allocation2 + $0x10cc] ss:$52 sps:$4 sm:$0xff]  }
 0x29d   :  { %v13868_v20 = vld [vmem:[#allocation2 + $0x174c] ss:$52 sps:$4 sm:$0xff]  }
 0x29e   :  { %6069 = vmatpush1.bf16.msra.mxu0 %v13797_v5  ;;  %v13863_v5 = vld [vmem:[#allocation2 + $0x10c8] ss:$52 sps:$4 sm:$0xff]  }
 0x29f   :  { %6110 = vmatpush1.bf16.msra.mxu1 %v13800_v8  ;;  %6070 = vmatprep.subr.bf16.mxu0 %v13805_v9  ;;  %v13866_v8 = vld [vmem:[#allocation2 + $0x1748] ss:$52 sps:$4 sm:$0xff]   ;;  %v13871_v9 = vld [vmem:[#allocation2 + $0x1064] ss:$52 sps:$4 sm:$0xff]  }
 0x2a0   :  { %6111 = vmatprep.subr.bf16.mxu1 %v13808_v10  ;;  %v13874_v10 = vld [vmem:[#allocation2 + $0x16e4] ss:$52 sps:$4 sm:$0xff]  }
 0x2a2   :  { %6071 = vmatpush1.bf16.msra.mxu0 %v13803_v11  ;;  %v13869_v11 = vld [vmem:[#allocation2 + $0x1060] ss:$52 sps:$4 sm:$0xff]  }
 0x2a3   :  { %6112 = vmatpush1.bf16.msra.mxu1 %v13806_v12  ;;  %6072 = vmatprep.subr.bf16.mxu0 %v13811_v14  ;;  %v13872_v12 = vld [vmem:[#allocation2 + $0x16e0] ss:$52 sps:$4 sm:$0xff]   ;;  %v1033_v14 = vsub.s32 6, %v15159_v29 }
 0x2a4   :  { %6113 = vmatprep.subr.bf16.mxu1 %v13814_v15  ;;  %v13877_v15 = vld [vmem:[#allocation2 + $0x304] ss:$52 sps:$4 sm:$0xff]  }
 0x2a6   :  { %6073 = vmatpush1.bf16.msra.mxu0 %v13809_v17  ;;  %v13880_v17 = vld [vmem:[#allocation2 + $0x984] ss:$52 sps:$4 sm:$0xff]  }
 0x2a7   :  { %6114 = vmatpush1.bf16.msra.mxu1 %v13812_v18  ;;  %6074 = vmatprep.subr.bf16.mxu0 %v13817_v21  ;;  %v13875_v18 = vld [vmem:[#allocation2 + $0x300] ss:$52 sps:$4 sm:$0xff]   ;;  %v1037_v21 = vsub.s32 7, %v15159_v29 }
 0x2a8   :  { %6115 = vmatprep.subr.bf16.mxu1 %v13820_v22  ;;  %v14901_v22 = vld [vmem:[#allocation4] sm:$0xff] }
 0x2aa   :  { %6075 = vmatpush1.bf16.msra.mxu0 %v13815_v23  ;;  %v1034_v23 = vrot.slane %v14901_v22, %v1033_v14  ;;  %v13919_v14 = vld [vmem:[#allocation2 + $0x2c] ss:$52 sps:$4 sm:$0xff]  }
 0x2ab   :  { %6116 = vmatpush1.bf16.msra.mxu1 %v13818_v25  ;;  %6076 = vmatprep.subr.bf16.mxu0 %v13823_v26  ;;  %v13878_v25 = vld [vmem:[#allocation2 + $0x980] ss:$52 sps:$4 sm:$0xff]   ;;  %v13883_v26 = vld [vmem:[#allocation2 + $0x29c] ss:$52 sps:$4 sm:$0xff]  }
 0x2ac   :  { %6117 = vmatprep.subr.bf16.mxu1 %v13826_v27  ;;  %v13886_v27 = vld [vmem:[#allocation2 + $0x91c] ss:$52 sps:$4 sm:$0xff]  }
 0x2ae   :  { %6077 = vmatpush1.bf16.msra.mxu0 %v13821_v59  ;;  %v1038_v59 = vrot.slane %v14901_v22, %v1037_v21  ;;  %v13925_v21 = vld [vmem:[#allocation2 + $0x644] ss:$52 sps:$4 sm:$0xff]  }
 0x2af   :  { %6118 = vmatpush1.bf16.msra.mxu1 %v13824_v30  ;;  %6078 = vmatprep.subr.bf16.mxu0 %v13829_v31  ;;  %v13881_v30 = vld [vmem:[#allocation2 + $0x298] ss:$52 sps:$4 sm:$0xff]  }
 0x2b0   :  { %6119 = vmatprep.subr.bf16.mxu1 %v13832_v33  ;;  %v13884_v31 = vld [vmem:[#allocation2 + $0x918] ss:$52 sps:$4 sm:$0xff]  }
 0x2b1   :  { %v13928_v22 = vld [vmem:[#allocation2 + $0xcc4] ss:$52 sps:$4 sm:$0xff]  }
 0x2b2   :  { %6079 = vmatpush2.bf16.msra.mxu0 %v13827_v34 }
 0x2b3   :  { %6120 = vmatpush2.bf16.msra.mxu1 %v13830_v38  ;;  %6080 = vmatprep.subr.bf16.mxu0 %v13835_v60 }
 0x2b4   :  { %6121 = vmatprep.subr.bf16.mxu1 %v13838_v42  ;;  %v13889_v42 = vld [vmem:[#allocation2 + $0x234] ss:$52 sps:$4 sm:$0xff]  }
 0x2b6   :  { %6081 = vmatpush2.bf16.msra.mxu0 %v13833_v43  ;;  %v13892_v43 = vld [vmem:[#allocation2 + $0x8b4] ss:$52 sps:$4 sm:$0xff]  }
 0x2b7   :  { %6122 = vmatpush2.bf16.msra.mxu1 %v13836_v44  ;;  %6082 = vmatprep.subr.bf16.mxu0 %v13841_v2 }
 0x2b8   :  { %6123 = vmatprep.subr.bf16.mxu1 %v13844_v45  ;;  %v13887_v45 = vld [vmem:[#allocation2 + $0x230] ss:$52 sps:$4 sm:$0xff]  }
 0x2ba   :  { %6083 = vmatpush2.bf16.msra.mxu0 %v13839_v46  ;;  %v13890_v46 = vld [vmem:[#allocation2 + $0x8b0] ss:$52 sps:$4 sm:$0xff]  }
 0x2bb   :  { %6124 = vmatpush2.bf16.msra.mxu1 %v13842_v48  ;;  %6084 = vmatprep.subr.bf16.mxu0 %v13847_v50 }
 0x2bc   :  { %6125 = vmatprep.subr.bf16.mxu1 %v13850_v52 }
 0x2be   :  { %6085 = vmatpush2.bf16.msra.mxu0 %v13845_v53 }
 0x2bf   :  { %6126 = vmatpush2.bf16.msra.mxu1 %v13848_v54  ;;  %6086 = vmatprep.subr.bf16.mxu0 %v13853_v55  ;;  %v13895_v54 = vld [vmem:[#allocation2 + $0x1cc] ss:$52 sps:$4 sm:$0xff]  }
 0x2c0   :  { %6127 = vmatprep.subr.bf16.mxu1 %v13856_v56  ;;  %v13898_v55 = vld [vmem:[#allocation2 + $0x84c] ss:$52 sps:$4 sm:$0xff]  }
 0x2c2   :  { %6087 = vmatpush2.bf16.msra.mxu0 %v13851_v58  ;;  %v13893_v58 = vld [vmem:[#allocation2 + $0x1c8] ss:$52 sps:$4 sm:$0xff]  }
 0x2c3   :  { %6128 = vmatpush2.bf16.msra.mxu1 %v13854_v61  ;;  %6088 = vmatprep.subr.bf16.mxu0 %v13859_v62  ;;  %v13896_v61 = vld [vmem:[#allocation2 + $0x848] ss:$52 sps:$4 sm:$0xff]   ;;  %v13901_v62 = vld [vmem:[#allocation2 + $0x164] ss:$52 sps:$4 sm:$0xff]  }
 0x2c4   :  { %6129 = vmatprep.subr.bf16.mxu1 %v13862_v13  ;;  %v13904_v13 = vld [vmem:[#allocation2 + $0x7e4] ss:$52 sps:$4 sm:$0xff]  }
 0x2c6   :  { %6089 = vmatpush2.bf16.msra.mxu0 %v13857_v1  ;;  %v13899_v1 = vld [vmem:[#allocation2 + $0x160] ss:$52 sps:$4 sm:$0xff]  }
 0x2c7   :  { %6130 = vmatpush2.bf16.msra.mxu1 %v13860_v3  ;;  %6090 = vmatprep.subr.bf16.mxu0 %v13865_v4  ;;  %v13902_v3 = vld [vmem:[#allocation2 + $0x7e0] ss:$52 sps:$4 sm:$0xff]   ;;  %v13907_v4 = vld [vmem:[#allocation2 + $0xfc] ss:$52 sps:$4 sm:$0xff]  }
 0x2c8   :  { %6131 = vmatprep.subr.bf16.mxu1 %v13868_v20  ;;  %v13910_v20 = vld [vmem:[#allocation2 + $0x77c] ss:$52 sps:$4 sm:$0xff]  }
 0x2ca   :  { %6091 = vmatpush2.bf16.msra.mxu0 %v13863_v5  ;;  %v13905_v5 = vld [vmem:[#allocation2 + $0xf8] ss:$52 sps:$4 sm:$0xff]  }
 0x2cb   :  { %6132 = vmatpush2.bf16.msra.mxu1 %v13866_v8  ;;  %6092 = vmatprep.subr.bf16.mxu0 %v13871_v9  ;;  %v13908_v8 = vld [vmem:[#allocation2 + $0x778] ss:$52 sps:$4 sm:$0xff]   ;;  %v13913_v9 = vld [vmem:[#allocation2 + $0x94] ss:$52 sps:$4 sm:$0xff]  }
 0x2cc   :  { %6133 = vmatprep.subr.bf16.mxu1 %v13874_v10  ;;  %v13916_v10 = vld [vmem:[#allocation2 + $0x714] ss:$52 sps:$4 sm:$0xff]  }
 0x2ce   :  { %6093 = vmatpush2.bf16.msra.mxu0 %v13869_v11  ;;  %v13911_v11 = vld [vmem:[#allocation2 + $0x90] ss:$52 sps:$4 sm:$0xff]  }
 0x2cf   :  { %6134 = vmatpush2.bf16.msra.mxu1 %v13872_v12  ;;  %6144 = vmatprep.subr.bf16.mxu0 %v13877_v15  ;;  %v13914_v12 = vld [vmem:[#allocation2 + $0x710] ss:$52 sps:$4 sm:$0xff]   ;;  %v13922_v15 = vld [vmem:[#allocation2 + $0x6ac] ss:$52 sps:$4 sm:$0xff]  }
 0x2d0   :  { %6185 = vmatprep.subr.bf16.mxu1 %v13880_v17  ;;  %v13917_v17 = vld [vmem:[#allocation2 + $0x28] ss:$52 sps:$4 sm:$0xff]  }
 0x2d1   :  { %v5850_v33 = vpop.f32.mrf.mxu0  ;;  %6095 = vmatmul.mubr.bf16.vlgmr.msra.gmra.mxu0 %v15145_v16 }
 0x2d2   :  { %6136 = vmatmul.mubr.bf16.vlgmr.msra.gmra.mxu1 %v15149_v19  ;;  %v5891_v34 = vpop.f32.mrf.mxu1  ;;  %v5851_v38 = vadd.f32 %v5850_v33, %v1034_v23  ;;  %6145 = vmatpush1.bf16.msra.mxu0 %v13875_v18  ;;  %v13920_v18 = vld [vmem:[#allocation2 + $0x6a8] ss:$52 sps:$4 sm:$0xff]   ;;  %v13923_v23 = vld [vmem:[#allocation2 + $0x640] ss:$52 sps:$4 sm:$0xff]  }
 0x2d3   :  { %6186 = vmatpush1.bf16.msra.mxu1 %v13878_v25  ;;  %v5852_v29 = vpop.f32.mrf.mxu0  ;;  %6146 = vmatprep.subr.bf16.mxu0 %v13883_v26  ;;  %v13926_v25 = vld [vmem:[#allocation2 + $0xcc0] ss:$52 sps:$4 sm:$0xff]   ;;  %v13931_v26 = vld [vmem:[#allocation2 + $0x5dc] ss:$52 sps:$4 sm:$0xff]  }
 0x2d4   :  { %v5893_v60 = vpop.f32.mrf.mxu1  ;;  %6187 = vmatprep.subr.bf16.mxu1 %v13886_v27  ;;  %v5853_v44 = vadd.f32 %v5852_v29, %v1038_v59  ;;  %v15240_v2 = vadd.f32 %v5891_v34, %v5851_v38  ;;  %6176 = vmatprep.mubr.bf16.mxu0 %v15108_v47  ;;  %v13934_v27 = vld [vmem:[#allocation2 + $0xc5c] ss:$52 sps:$4 sm:$0xff]   ;;  %v13929_v59 = vld [vmem:[#allocation2 + $0x5d8] ss:$52 sps:$4 sm:$0xff]   ;;  %v13940_v33 = vld [vmem:[#allocation2 + $0xbf4] ss:$52 sps:$4 sm:$0xff]  }
 0x2d5   :  { %6217 = vmatprep.mubr.bf16.mxu1 %v15113_v51  ;;  %v5854_v48 = vpop.f32.mrf.mxu0  ;;  %v13935_v34 = vld [vmem:[#allocation2 + $0x570] ss:$52 sps:$4 sm:$0xff]   ;;  %v13943_v29 = vld [vmem:[#allocation2 + $0x50c] ss:$52 sps:$4 sm:$0xff]  }
 0x2d6   :  { %v5895_v50 = vpop.f32.mrf.mxu1  ;;  %v15244_v52 = vadd.f32 %v5893_v60, %v5853_v44  ;;  %6147 = vmatpush1.bf16.msra.mxu0 %v13881_v30  ;;  %v13932_v30 = vld [vmem:[#allocation2 + $0xc58] ss:$52 sps:$4 sm:$0xff]   ;;  %v13938_v38 = vld [vmem:[#allocation2 + $0xbf0] ss:$52 sps:$4 sm:$0xff]   ;;  %v13950_v48 = vld [vmem:[#allocation2 + $0xb20] ss:$52 sps:$4 sm:$0xff]  }
 0x2d7   :  { %6188 = vmatpush1.bf16.msra.mxu1 %v13884_v31  ;;  %v5855_v53 = vpop.f32.mrf.mxu0  ;;  %6148 = vmatprep.subr.bf16.mxu0 %v13889_v42  ;;  %v13937_v31 = vld [vmem:[#allocation2 + $0x574] ss:$52 sps:$4 sm:$0xff]   ;;  %v13946_v60 = vld [vmem:[#allocation2 + $0xb8c] ss:$52 sps:$4 sm:$0xff]   ;;  %v13949_v44 = vld [vmem:[#allocation2 + $0x4a4] ss:$52 sps:$4 sm:$0xff]  }
 0x2d8   :  { %6189 = vmatprep.subr.bf16.mxu1 %v13892_v43  ;;  %v5896_v56 = vpop.f32.mrf.mxu1  ;;  %v13941_v42 = vld [vmem:[#allocation2 + $0x508] ss:$52 sps:$4 sm:$0xff]  }
 0x2d9   :  { %v13944_v43 = vld [vmem:[#allocation2 + $0xb88] ss:$52 sps:$4 sm:$0xff]  }
 0x2da   :  { %6149 = vmatpush1.bf16.msra.mxu0 %v13887_v45  ;;  %v13952_v45 = vld [vmem:[#allocation2 + $0xb24] ss:$52 sps:$4 sm:$0xff]   ;;  %v13955_v50 = vld [vmem:[#allocation2 + $0x43c] ss:$52 sps:$4 sm:$0xff]   ;;  %v13961_v56 = vld [vmem:[#allocation2 + $0x3d4] ss:$52 sps:$4 sm:$0xff]  }
 0x2db   :  { %6190 = vmatpush1.bf16.msra.mxu1 %v13890_v46  ;;  %6150 = vmatprep.subr.bf16.mxu0 %v13895_v54  ;;  %v13947_v46 = vld [vmem:[#allocation2 + $0x4a0] ss:$52 sps:$4 sm:$0xff]   ;;  %v13958_v53 = vld [vmem:[#allocation2 + $0xabc] ss:$52 sps:$4 sm:$0xff]   ;;  %v13953_v54 = vld [vmem:[#allocation2 + $0x438] ss:$52 sps:$4 sm:$0xff]  }
 0x2dc   :  { %6191 = vmatprep.subr.bf16.mxu1 %v13898_v55  ;;  %v13956_v55 = vld [vmem:[#allocation2 + $0xab8] ss:$52 sps:$4 sm:$0xff]  }
 0x2de   :  { %6151 = vmatpush1.bf16.msra.mxu0 %v13893_v58  ;;  %v13964_v58 = vld [vmem:[#allocation2 + $0xa54] ss:$52 sps:$4 sm:$0xff]  }
 0x2df   :  { %6192 = vmatpush1.bf16.msra.mxu1 %v13896_v61  ;;  %6152 = vmatprep.subr.bf16.mxu0 %v13901_v62  ;;  %v13959_v61 = vld [vmem:[#allocation2 + $0x3d0] ss:$52 sps:$4 sm:$0xff]  }
 0x2e0   :  { %6193 = vmatprep.subr.bf16.mxu1 %v13904_v13  ;;  %v13962_v62 = vld [vmem:[#allocation2 + $0xa50] ss:$52 sps:$4 sm:$0xff]   ;;  %v13967_v13 = vld [vmem:[#allocation2 + $0x36c] ss:$52 sps:$4 sm:$0xff]  }
 0x2e2   :  { %6153 = vmatpush1.bf16.msra.mxu0 %v13899_v1  ;;  %v13970_v1 = vld [vmem:[#allocation2 + $0x9ec] ss:$52 sps:$4 sm:$0xff]  }
 0x2e3   :  { %6194 = vmatpush1.bf16.msra.mxu1 %v13902_v3  ;;  %6154 = vmatprep.subr.bf16.mxu0 %v13907_v4  ;;  %v13965_v3 = vld [vmem:[#allocation2 + $0x368] ss:$52 sps:$4 sm:$0xff]  }
 0x2e4   :  { %6195 = vmatprep.subr.bf16.mxu1 %v13910_v20  ;;  %v13968_v4 = vld [vmem:[#allocation2 + $0x9e8] ss:$52 sps:$4 sm:$0xff]   ;;  %v13973_v20 = vld [vmem:[#allocation2 + $0x1004] ss:$52 sps:$4 sm:$0xff]  }
 0x2e6   :  { %6155 = vmatpush1.bf16.msra.mxu0 %v13905_v5  ;;  %v13976_v5 = vld [vmem:[#allocation2 + $0x1684] ss:$52 sps:$4 sm:$0xff]  }
 0x2e7   :  { %6196 = vmatpush1.bf16.msra.mxu1 %v13908_v8  ;;  %6156 = vmatprep.subr.bf16.mxu0 %v13913_v9  ;;  %v13971_v8 = vld [vmem:[#allocation2 + $0x1000] ss:$52 sps:$4 sm:$0xff]  }
 0x2e8   :  { %6197 = vmatprep.subr.bf16.mxu1 %v13916_v10  ;;  %v13974_v9 = vld [vmem:[#allocation2 + $0x1680] ss:$52 sps:$4 sm:$0xff]   ;;  %v13979_v10 = vld [vmem:[#allocation2 + $0xf9c] ss:$52 sps:$4 sm:$0xff]  }
 0x2ea   :  { %6157 = vmatpush1.bf16.msra.mxu0 %v13911_v11  ;;  %v13982_v11 = vld [vmem:[#allocation2 + $0x161c] ss:$52 sps:$4 sm:$0xff]  }
 0x2eb   :  { %6198 = vmatpush1.bf16.msra.mxu1 %v13914_v12  ;;  %6158 = vmatprep.subr.bf16.mxu0 %v13919_v14  ;;  %v13977_v12 = vld [vmem:[#allocation2 + $0xf98] ss:$52 sps:$4 sm:$0xff]  }
 0x2ec   :  { %6199 = vmatprep.subr.bf16.mxu1 %v13922_v15  ;;  %v13980_v14 = vld [vmem:[#allocation2 + $0x1618] ss:$52 sps:$4 sm:$0xff]  }
 0x2ee   :  { %6159 = vmatpush1.bf16.msra.mxu0 %v13917_v17 }
 0x2ef   :  { %6200 = vmatpush1.bf16.msra.mxu1 %v13920_v18  ;;  %6160 = vmatprep.subr.bf16.mxu0 %v13925_v21  ;;  %v13985_v18 = vld [vmem:[#allocation2 + $0xf34] ss:$52 sps:$4 sm:$0xff]  }
 0x2f0   :  { %6201 = vmatprep.subr.bf16.mxu1 %v13928_v22  ;;  %v13988_v21 = vld [vmem:[#allocation2 + $0x15b4] ss:$52 sps:$4 sm:$0xff]  }
 0x2f2   :  { %6161 = vmatpush2.bf16.msra.mxu0 %v13923_v23 }
 0x2f3   :  { %6202 = vmatpush2.bf16.msra.mxu1 %v13926_v25  ;;  %6162 = vmatprep.subr.bf16.mxu0 %v13931_v26 }
 0x2f4   :  { %6203 = vmatprep.subr.bf16.mxu1 %v13934_v27 }
 0x2f6   :  { %6163 = vmatpush2.bf16.msra.mxu0 %v13929_v59  ;;  %v13983_v59 = vld [vmem:[#allocation2 + $0xf30] ss:$52 sps:$4 sm:$0xff]  }
 0x2f7   :  { %6204 = vmatpush2.bf16.msra.mxu1 %v13932_v30  ;;  %6164 = vmatprep.subr.bf16.mxu0 %v13937_v31  ;;  %v13986_v30 = vld [vmem:[#allocation2 + $0x15b0] ss:$52 sps:$4 sm:$0xff]  }
 0x2f8   :  { %6205 = vmatprep.subr.bf16.mxu1 %v13940_v33  ;;  %v13991_v33 = vld [vmem:[#allocation2 + $0xecc] ss:$52 sps:$4 sm:$0xff]  }
 0x2fa   :  { %6165 = vmatpush2.bf16.msra.mxu0 %v13935_v34  ;;  %v13994_v34 = vld [vmem:[#allocation2 + $0x154c] ss:$52 sps:$4 sm:$0xff]  }
 0x2fb   :  { %6206 = vmatpush2.bf16.msra.mxu1 %v13938_v38  ;;  %6166 = vmatprep.subr.bf16.mxu0 %v13943_v29 }
 0x2fc   :  { %6207 = vmatprep.subr.bf16.mxu1 %v13946_v60  ;;  %v13989_v60 = vld [vmem:[#allocation2 + $0xec8] ss:$52 sps:$4 sm:$0xff]  }
 0x2fe   :  { %6167 = vmatpush2.bf16.msra.mxu0 %v13941_v42  ;;  %v13992_v42 = vld [vmem:[#allocation2 + $0x1548] ss:$52 sps:$4 sm:$0xff]  }
 0x2ff   :  { %6208 = vmatpush2.bf16.msra.mxu1 %v13944_v43  ;;  %6168 = vmatprep.subr.bf16.mxu0 %v13949_v44  ;;  %v13997_v43 = vld [vmem:[#allocation2 + $0xe64] ss:$52 sps:$4 sm:$0xff]  }
 0x300   :  { %6209 = vmatprep.subr.bf16.mxu1 %v13952_v45  ;;  %v14000_v44 = vld [vmem:[#allocation2 + $0x14e4] ss:$52 sps:$4 sm:$0xff]   ;;  %v13995_v45 = vld [vmem:[#allocation2 + $0xe60] ss:$52 sps:$4 sm:$0xff]  }
 0x302   :  { %6169 = vmatpush2.bf16.msra.mxu0 %v13947_v46  ;;  %v13998_v46 = vld [vmem:[#allocation2 + $0x14e0] ss:$52 sps:$4 sm:$0xff]  }
 0x303   :  { %6210 = vmatpush2.bf16.msra.mxu1 %v13950_v48  ;;  %6170 = vmatprep.subr.bf16.mxu0 %v13955_v50  ;;  %v14003_v48 = vld [vmem:[#allocation2 + $0xdfc] ss:$52 sps:$4 sm:$0xff]  }
 0x304   :  { %6211 = vmatprep.subr.bf16.mxu1 %v13958_v53  ;;  %v14006_v50 = vld [vmem:[#allocation2 + $0x147c] ss:$52 sps:$4 sm:$0xff]   ;;  %v14001_v53 = vld [vmem:[#allocation2 + $0xdf8] ss:$52 sps:$4 sm:$0xff]  }
 0x306   :  { %6171 = vmatpush2.bf16.msra.mxu0 %v13953_v54  ;;  %v14004_v54 = vld [vmem:[#allocation2 + $0x1478] ss:$52 sps:$4 sm:$0xff]  }
 0x307   :  { %6212 = vmatpush2.bf16.msra.mxu1 %v13956_v55  ;;  %6172 = vmatprep.subr.bf16.mxu0 %v13961_v56  ;;  %v14009_v55 = vld [vmem:[#allocation2 + $0xd94] ss:$52 sps:$4 sm:$0xff]  }
 0x308   :  { %6213 = vmatprep.subr.bf16.mxu1 %v13964_v58  ;;  %v14012_v56 = vld [vmem:[#allocation2 + $0x1414] ss:$52 sps:$4 sm:$0xff]   ;;  %v14007_v58 = vld [vmem:[#allocation2 + $0xd90] ss:$52 sps:$4 sm:$0xff]  }
 0x30a   :  { %6173 = vmatpush2.bf16.msra.mxu0 %v13959_v61  ;;  %v14010_v61 = vld [vmem:[#allocation2 + $0x1410] ss:$52 sps:$4 sm:$0xff]  }
 0x30b   :  { %6214 = vmatpush2.bf16.msra.mxu1 %v13962_v62  ;;  %6174 = vmatprep.subr.bf16.mxu0 %v13967_v13  ;;  %v14015_v62 = vld [vmem:[#allocation2 + $0xd2c] ss:$52 sps:$4 sm:$0xff]  }
 0x30c   :  { %6215 = vmatprep.subr.bf16.mxu1 %v13970_v1  ;;  %v14018_v13 = vld [vmem:[#allocation2 + $0x13ac] ss:$52 sps:$4 sm:$0xff]   ;;  %v14013_v1 = vld [vmem:[#allocation2 + $0xd28] ss:$52 sps:$4 sm:$0xff]  }
 0x30e   :  { %6175 = vmatpush2.bf16.msra.mxu0 %v13965_v3  ;;  %v14016_v3 = vld [vmem:[#allocation2 + $0x13a8] ss:$52 sps:$4 sm:$0xff]  }
 0x30f   :  { %6216 = vmatpush2.bf16.msra.mxu1 %v13968_v4  ;;  %6226 = vmatprep.subr.bf16.mxu0 %v13973_v20  ;;  %v14021_v4 = vld [vmem:[#allocation2 + $0x1344] ss:$52 sps:$4 sm:$0xff]  }
 0x310   :  { %6267 = vmatprep.subr.bf16.mxu1 %v13976_v5  ;;  %v14024_v20 = vld [vmem:[#allocation2 + $0x19c4] ss:$52 sps:$4 sm:$0xff]   ;;  %v14019_v5 = vld [vmem:[#allocation2 + $0x1340] ss:$52 sps:$4 sm:$0xff]  }
 0x311   :  { %v5932_v15 = vpop.f32.mrf.mxu0  ;;  %6177 = vmatmul.mubr.bf16.vlgmr.msra.gmra.mxu0 %v15117_v6 }
 0x312   :  { %6218 = vmatmul.mubr.bf16.vlgmr.msra.gmra.mxu1 %v15119_v7  ;;  %v5973_v17 = vpop.f32.mrf.mxu1  ;;  %v5933_v22 = vadd.f32 %v5932_v15, %v15240_v2  ;;  %6227 = vmatpush1.bf16.msra.mxu0 %v13971_v8  ;;  %v14022_v8 = vld [vmem:[#allocation2 + $0x19c0] ss:$52 sps:$4 sm:$0xff]  }
 0x313   :  { %6268 = vmatpush1.bf16.msra.mxu1 %v13974_v9  ;;  %v5934_v23 = vpop.f32.mrf.mxu0  ;;  %6228 = vmatprep.subr.bf16.mxu0 %v13979_v10  ;;  %v14027_v9 = vld [vmem:[#allocation2 + $0x12dc] ss:$52 sps:$4 sm:$0xff]   ;;  %v14036_v15 = vld [vmem:[#allocation2 + $0x18f4] ss:$52 sps:$4 sm:$0xff]  }
 0x314   :  { %v5975_v25 = vpop.f32.mrf.mxu1  ;;  %6269 = vmatprep.subr.bf16.mxu1 %v13982_v11  ;;  %v5935_v26 = vadd.f32 %v5934_v23, %v15244_v52  ;;  %v15250_v27 = vadd.f32 %v5973_v17, %v5933_v22  ;;  %6258 = vmatprep.mubr.bf16.mxu0 %v15135_v36  ;;  %v14030_v10 = vld [vmem:[#allocation2 + $0x195c] ss:$52 sps:$4 sm:$0xff]   ;;  %v14025_v11 = vld [vmem:[#allocation2 + $0x12d8] ss:$52 sps:$4 sm:$0xff]  }
 0x315   :  { %6299 = vmatprep.mubr.bf16.mxu1 %v15139_v37  ;;  %v5936_v31 = vpop.f32.mrf.mxu0  ;;  %v14031_v17 = vld [vmem:[#allocation2 + $0x1270] ss:$52 sps:$4 sm:$0xff]   ;;  %v14042_v22 = vld [vmem:[#allocation2 + $0x188c] ss:$52 sps:$4 sm:$0xff]   ;;  %v14037_v23 = vld [vmem:[#allocation2 + $0x1208] ss:$52 sps:$4 sm:$0xff]  }
 0x316   :  { %v5977_v2 = vpop.f32.mrf.mxu1  ;;  %v15254_v38 = vadd.f32 %v5975_v25, %v5935_v26  ;;  %6229 = vmatpush1.bf16.msra.mxu0 %v13977_v12  ;;  %v14028_v12 = vld [vmem:[#allocation2 + $0x1958] ss:$52 sps:$4 sm:$0xff]   ;;  %v14040_v25 = vld [vmem:[#allocation2 + $0x1888] ss:$52 sps:$4 sm:$0xff]   ;;  %v14046_v31 = vld [vmem:[#allocation2 + $0x1820] ss:$52 sps:$4 sm:$0xff]  }
 0x317   :  { %6270 = vmatpush1.bf16.msra.mxu1 %v13980_v14  ;;  %v5937_v29 = vpop.f32.mrf.mxu0  ;;  %6230 = vmatprep.subr.bf16.mxu0 %v13985_v18  ;;  %v14033_v14 = vld [vmem:[#allocation2 + $0x1274] ss:$52 sps:$4 sm:$0xff]   ;;  %v14034_v18 = vld [vmem:[#allocation2 + $0x18f0] ss:$52 sps:$4 sm:$0xff]   ;;  %v14049_v2 = vld [vmem:[#allocation2 + $0x1138] ss:$52 sps:$4 sm:$0xff]  }
 0x318   :  { %6271 = vmatprep.subr.bf16.mxu1 %v13988_v21  ;;  %v5978_v52 = vpop.f32.mrf.mxu1  ;;  %v14039_v21 = vld [vmem:[#allocation2 + $0x120c] ss:$52 sps:$4 sm:$0xff]   ;;  %v14045_v26 = vld [vmem:[#allocation2 + $0x11a4] ss:$52 sps:$4 sm:$0xff]  }
 0x319   :  { %v14052_v29 = vld [vmem:[#allocation2 + $0x17b8] ss:$52 sps:$4 sm:$0xff]   ;;  %v14057_v52 = vld [vmem:[#allocation2 + $0x10d4] ss:$52 sps:$4 sm:$0xff]  }
 0x31a   :  { %6231 = vmatpush1.bf16.msra.mxu0 %v13983_v59  ;;  %v14048_v59 = vld [vmem:[#allocation2 + $0x1824] ss:$52 sps:$4 sm:$0xff]  }
 0x31b   :  { %6272 = vmatpush1.bf16.msra.mxu1 %v13986_v30  ;;  %6232 = vmatprep.subr.bf16.mxu0 %v13991_v33  ;;  %v14043_v30 = vld [vmem:[#allocation2 + $0x11a0] ss:$52 sps:$4 sm:$0xff]   ;;  %v14051_v33 = vld [vmem:[#allocation2 + $0x113c] ss:$52 sps:$4 sm:$0xff]  }
 0x31c   :  { %6273 = vmatprep.subr.bf16.mxu1 %v13994_v34  ;;  %v14054_v34 = vld [vmem:[#allocation2 + $0x17bc] ss:$52 sps:$4 sm:$0xff]  }
 0x31e   :  { %6233 = vmatpush1.bf16.msra.mxu0 %v13989_v60  ;;  %v14060_v60 = vld [vmem:[#allocation2 + $0x1754] ss:$52 sps:$4 sm:$0xff]  }
 0x31f   :  { %6274 = vmatpush1.bf16.msra.mxu1 %v13992_v42  ;;  %6234 = vmatprep.subr.bf16.mxu0 %v13997_v43  ;;  %v14055_v42 = vld [vmem:[#allocation2 + $0x10d0] ss:$52 sps:$4 sm:$0xff]  }
 0x320   :  { %6275 = vmatprep.subr.bf16.mxu1 %v14000_v44  ;;  %v14058_v43 = vld [vmem:[#allocation2 + $0x1750] ss:$52 sps:$4 sm:$0xff]   ;;  %v14063_v44 = vld [vmem:[#allocation2 + $0x106c] ss:$52 sps:$4 sm:$0xff]  }
 0x322   :  { %6235 = vmatpush1.bf16.msra.mxu0 %v13995_v45  ;;  %v14066_v45 = vld [vmem:[#allocation2 + $0x16ec] ss:$52 sps:$4 sm:$0xff]  }
 0x323   :  { %6276 = vmatpush1.bf16.msra.mxu1 %v13998_v46  ;;  %6236 = vmatprep.subr.bf16.mxu0 %v14003_v48  ;;  %v14061_v46 = vld [vmem:[#allocation2 + $0x1068] ss:$52 sps:$4 sm:$0xff]  }
 0x324   :  { %6277 = vmatprep.subr.bf16.mxu1 %v14006_v50  ;;  %v14064_v48 = vld [vmem:[#allocation2 + $0x16e8] ss:$52 sps:$4 sm:$0xff]  }
 0x325   :  { %v15256_v50 = vld [vmem:[#allocation4 + $0x8] sm:$0x1f] }
 0x326   :  { %6237 = vmatpush1.bf16.msra.mxu0 %v14001_v53  ;;  %v14067_v53 = vld [vmem:[#allocation2 + $0x648] ss:$52 sps:$4 sm:$0xff]  }
 0x327   :  { %6278 = vmatpush1.bf16.msra.mxu1 %v14004_v54  ;;  %6238 = vmatprep.subr.bf16.mxu0 %v14009_v55  ;;  %v14068_v54 = vld [vmem:[#allocation2 + $0xcc8] ss:$52 sps:$4 sm:$0xff]  }
 0x328   :  { %6279 = vmatprep.subr.bf16.mxu1 %v14012_v56  ;;  %v14069_v55 = vld [vmem:[#allocation2 + $0x308] ss:$52 sps:$4 sm:$0xff]  }
 0x329   :  { %v14070_v56 = vld [vmem:[#allocation2 + $0x988] ss:$52 sps:$4 sm:$0xff]  }
 0x32a   :  { %6239 = vmatpush1.bf16.msra.mxu0 %v14007_v58  ;;  %v14071_v58 = vld [vmem:[#allocation2 + $0x5e0] ss:$52 sps:$4 sm:$0xff]  }
 0x32b   :  { %6280 = vmatpush1.bf16.msra.mxu1 %v14010_v61  ;;  %6240 = vmatprep.subr.bf16.mxu0 %v14015_v62  ;;  %v14072_v61 = vld [vmem:[#allocation2 + $0xc60] ss:$52 sps:$4 sm:$0xff]   ;;  %v1042_v62 = vrot.slane %v15256_v50, %v15162_v35 }
 0x32c   :  { %6281 = vmatprep.subr.bf16.mxu1 %v14018_v13  ;;  %v1046_v13 = vrot.slane %v15256_v50, %v15165_v40 }
 0x32e   :  { %6241 = vmatpush1.bf16.msra.mxu0 %v14013_v1  ;;  %v14073_v1 = vld [vmem:[#allocation2 + $0x2a0] ss:$52 sps:$4 sm:$0xff]  }
 0x32f   :  { %6282 = vmatpush1.bf16.msra.mxu1 %v14016_v3  ;;  %6242 = vmatprep.subr.bf16.mxu0 %v14021_v4  ;;  %v14074_v3 = vld [vmem:[#allocation2 + $0x920] ss:$52 sps:$4 sm:$0xff]  }
 0x330   :  { %6283 = vmatprep.subr.bf16.mxu1 %v14024_v20 }
 0x332   :  { %6243 = vmatpush2.bf16.msra.mxu0 %v14019_v5  ;;  %v14075_v5 = vld [vmem:[#allocation2 + $0x578] ss:$52 sps:$4 sm:$0xff]  }
 0x333   :  { %6284 = vmatpush2.bf16.msra.mxu1 %v14022_v8  ;;  %6244 = vmatprep.subr.bf16.mxu0 %v14027_v9  ;;  %v14076_v8 = vld [vmem:[#allocation2 + $0xbf8] ss:$52 sps:$4 sm:$0xff]  }
 0x334   :  { %6285 = vmatprep.subr.bf16.mxu1 %v14030_v10 }
 0x336   :  { %6245 = vmatpush2.bf16.msra.mxu0 %v14025_v11 }
 0x337   :  { %6286 = vmatpush2.bf16.msra.mxu1 %v14028_v12  ;;  %6246 = vmatprep.subr.bf16.mxu0 %v14033_v14 }
 0x338   :  { %6287 = vmatprep.subr.bf16.mxu1 %v14036_v15 }
 0x33a   :  { %6247 = vmatpush2.bf16.msra.mxu0 %v14031_v17 }
 0x33b   :  { %6288 = vmatpush2.bf16.msra.mxu1 %v14034_v18  ;;  %6248 = vmatprep.subr.bf16.mxu0 %v14039_v21  ;;  %v14077_v21 = vld [vmem:[#allocation2 + $0x238] ss:$52 sps:$4 sm:$0xff]  }
 0x33c   :  { %6289 = vmatprep.subr.bf16.mxu1 %v14042_v22  ;;  %v14078_v22 = vld [vmem:[#allocation2 + $0x8b8] ss:$52 sps:$4 sm:$0xff]  }
 0x33e   :  { %6249 = vmatpush2.bf16.msra.mxu0 %v14037_v23 }
 0x33f   :  { %6290 = vmatpush2.bf16.msra.mxu1 %v14040_v25  ;;  %6250 = vmatprep.subr.bf16.mxu0 %v14045_v26  ;;  %v14079_v25 = vld [vmem:[#allocation2 + $0x510] ss:$52 sps:$4 sm:$0xff]  }
 0x340   :  { %6291 = vmatprep.subr.bf16.mxu1 %v14048_v59  ;;  %v14080_v26 = vld [vmem:[#allocation2 + $0xb90] ss:$52 sps:$4 sm:$0xff]  }
 0x342   :  { %6251 = vmatpush2.bf16.msra.mxu0 %v14043_v30  ;;  %v14081_v30 = vld [vmem:[#allocation2 + $0x1d0] ss:$52 sps:$4 sm:$0xff]  }
 0x343   :  { %6292 = vmatpush2.bf16.msra.mxu1 %v14046_v31  ;;  %6252 = vmatprep.subr.bf16.mxu0 %v14051_v33  ;;  %v14082_v31 = vld [vmem:[#allocation2 + $0x850] ss:$52 sps:$4 sm:$0xff]   ;;  %v14085_v33 = vld [vmem:[#allocation2 + $0x168] ss:$52 sps:$4 sm:$0xff]  }
 0x344   :  { %6293 = vmatprep.subr.bf16.mxu1 %v14054_v34  ;;  %v14086_v34 = vld [vmem:[#allocation2 + $0x7e8] ss:$52 sps:$4 sm:$0xff]  }
 0x346   :  { %6253 = vmatpush2.bf16.msra.mxu0 %v14049_v2  ;;  %v14087_v2 = vld [vmem:[#allocation2 + $0x440] ss:$52 sps:$4 sm:$0xff]  }
 0x347   :  { %6294 = vmatpush2.bf16.msra.mxu1 %v14052_v29  ;;  %6254 = vmatprep.subr.bf16.mxu0 %v14057_v52  ;;  %v14088_v29 = vld [vmem:[#allocation2 + $0xac0] ss:$52 sps:$4 sm:$0xff]  }
 0x348   :  { %6295 = vmatprep.subr.bf16.mxu1 %v14060_v60  ;;  %v14089_v52 = vld [vmem:[#allocation2 + $0x100] ss:$52 sps:$4 sm:$0xff]  }
 0x349   :  { %v14090_v60 = vld [vmem:[#allocation2 + $0x780] ss:$52 sps:$4 sm:$0xff]  }
 0x34a   :  { %6255 = vmatpush2.bf16.msra.mxu0 %v14055_v42  ;;  %v14091_v42 = vld [vmem:[#allocation2 + $0x3d8] ss:$52 sps:$4 sm:$0xff]  }
 0x34b   :  { %6296 = vmatpush2.bf16.msra.mxu1 %v14058_v43  ;;  %6256 = vmatprep.subr.bf16.mxu0 %v14063_v44  ;;  %v14092_v43 = vld [vmem:[#allocation2 + $0xa58] ss:$52 sps:$4 sm:$0xff]  }
 0x34c   :  { %6297 = vmatprep.subr.bf16.mxu1 %v14066_v45  ;;  %v14093_v44 = vld [vmem:[#allocation2 + $0x98] ss:$52 sps:$4 sm:$0xff]  }
 0x34d   :  { %v14094_v45 = vld [vmem:[#allocation2 + $0x718] ss:$52 sps:$4 sm:$0xff]  }
 0x34e   :  { %6257 = vmatpush2.bf16.msra.mxu0 %v14061_v46  ;;  %v14095_v46 = vld [vmem:[#allocation2 + $0x370] ss:$52 sps:$4 sm:$0xff]  }
 0x34f   :  { %6298 = vmatpush2.bf16.msra.mxu1 %v14064_v48  ;;  %12570 = vmatprep.subr.bf16.mxu0 %v14067_v53  ;;  %v14096_v48 = vld [vmem:[#allocation2 + $0x9f0] ss:$52 sps:$4 sm:$0xff]  }
 0x350   :  { %12592 = vmatprep.subr.bf16.mxu1 %v14068_v54  ;;  %v14097_v53 = vld [vmem:[#allocation2 + $0x30] ss:$52 sps:$4 sm:$0xff]  }
 0x351   :  { %v6014_v4 = vpop.f32.mrf.mxu0  ;;  %6259 = vmatmul.mubr.bf16.vlgmr.msra.gmra.mxu0 %v15145_v16  ;;  %v14098_v54 = vld [vmem:[#allocation2 + $0x6b0] ss:$52 sps:$4 sm:$0xff]  }
 0x352   :  { %6300 = vmatmul.mubr.bf16.vlgmr.msra.gmra.mxu1 %v15149_v19  ;;  %v6055_v20 = vpop.f32.mrf.mxu1  ;;  %v6015_v9 = vadd.f32 %v6014_v4, %v1042_v62  ;;  %12571 = vmatpush3.bf16.msra.mxu0 %v14069_v55  ;;  %v14099_v55 = vld [vmem:[#allocation2 + $0x1348] ss:$52 sps:$4 sm:$0xff]   ;;  %v14103_v62 = vld [vmem:[#allocation2 + $0x12e0] ss:$52 sps:$4 sm:$0xff]   ;;  %v14107_v4 = vld [vmem:[#allocation2 + $0x1278] ss:$52 sps:$4 sm:$0xff]  }
 0x353   :  { %12593 = vmatpush3.bf16.msra.mxu1 %v14070_v56  ;;  %v6016_v10 = vpop.f32.mrf.mxu0  ;;  %12572 = vmatprep.subr.bf16.mxu0 %v14071_v58  ;;  %v14100_v56 = vld [vmem:[#allocation2 + $0x19c8] ss:$52 sps:$4 sm:$0xff]  }
 0x354   :  { %v6057_v11 = vpop.f32.mrf.mxu1  ;;  %12594 = vmatprep.subr.bf16.mxu1 %v14072_v61  ;;  %v6017_v12 = vadd.f32 %v6016_v10, %v1046_v13  ;;  %v15264_v14 = vadd.f32 %v6055_v20, %v6015_v9  ;;  %6340 = vmatprep.mubr.bf16.mxu0 %v15108_v47  ;;  %v14083_v47 = vld [vmem:[#allocation2 + $0x4a8] ss:$52 sps:$4 sm:$0xff]   ;;  %v14104_v13 = vld [vmem:[#allocation2 + $0x1960] ss:$52 sps:$4 sm:$0xff]   ;;  %v14108_v20 = vld [vmem:[#allocation2 + $0x18f8] ss:$52 sps:$4 sm:$0xff]  }
 0x355   :  { %6380 = vmatprep.mubr.bf16.mxu1 %v15113_v51  ;;  %v6018_v15 = vpop.f32.mrf.mxu0  ;;  %v14084_v51 = vld [vmem:[#allocation2 + $0xb28] ss:$52 sps:$4 sm:$0xff]   ;;  %v14111_v9 = vld [vmem:[#allocation2 + $0x1210] ss:$52 sps:$4 sm:$0xff]  }
 0x356   :  { %v6059_v17 = vpop.f32.mrf.mxu1  ;;  %v15268_v18 = vadd.f32 %v6057_v11, %v6017_v12  ;;  %12573 = vmatpush3.bf16.msra.mxu0 %v14073_v1  ;;  %v14101_v58 = vld [vmem:[#allocation2 + $0x1008] ss:$52 sps:$4 sm:$0xff]   ;;  %v14105_v1 = vld [vmem:[#allocation2 + $0xfa0] ss:$52 sps:$4 sm:$0xff]   ;;  %v14113_v10 = vld [vmem:[#allocation2 + $0xed0] ss:$52 sps:$4 sm:$0xff]  }
 0x357   :  { %12595 = vmatpush3.bf16.msra.mxu1 %v14074_v3  ;;  %v6019_v23 = vpop.f32.mrf.mxu0  ;;  %12574 = vmatprep.subr.bf16.mxu0 %v14075_v5  ;;  %v14102_v61 = vld [vmem:[#allocation2 + $0x1688] ss:$52 sps:$4 sm:$0xff]   ;;  %v14106_v3 = vld [vmem:[#allocation2 + $0x1620] ss:$52 sps:$4 sm:$0xff]   ;;  %v14109_v5 = vld [vmem:[#allocation2 + $0xf38] ss:$52 sps:$4 sm:$0xff]  }
 0x358   :  { %12596 = vmatprep.subr.bf16.mxu1 %v14076_v8  ;;  %v6060_v59 = vpop.f32.mrf.mxu1  ;;  %v14110_v8 = vld [vmem:[#allocation2 + $0x15b8] ss:$52 sps:$4 sm:$0xff]   ;;  %v14115_v11 = vld [vmem:[#allocation2 + $0x11a8] ss:$52 sps:$4 sm:$0xff]  }
 0x359   :  { %v14116_v12 = vld [vmem:[#allocation2 + $0x1828] ss:$52 sps:$4 sm:$0xff]   ;;  %v14123_v23 = vld [vmem:[#allocation2 + $0x10d8] ss:$52 sps:$4 sm:$0xff]  }
 0x35a   :  { %12575 = vmatpush3.bf16.msra.mxu0 %v14077_v21  ;;  %v14117_v15 = vld [vmem:[#allocation2 + $0xe68] ss:$52 sps:$4 sm:$0xff]   ;;  %v14121_v21 = vld [vmem:[#allocation2 + $0xe00] ss:$52 sps:$4 sm:$0xff]   ;;  %v14126_v59 = vld [vmem:[#allocation2 + $0x1418] ss:$52 sps:$4 sm:$0xff]  }
 0x35b   :  { %12597 = vmatpush3.bf16.msra.mxu1 %v14078_v22  ;;  %12576 = vmatprep.subr.bf16.mxu0 %v14079_v25  ;;  %v14118_v17 = vld [vmem:[#allocation2 + $0x14e8] ss:$52 sps:$4 sm:$0xff]   ;;  %v14122_v22 = vld [vmem:[#allocation2 + $0x1480] ss:$52 sps:$4 sm:$0xff]   ;;  %v14124_v25 = vld [vmem:[#allocation2 + $0x1758] ss:$52 sps:$4 sm:$0xff]  }
 0x35c   :  { %12598 = vmatprep.subr.bf16.mxu1 %v14080_v26  ;;  %v14125_v26 = vld [vmem:[#allocation2 + $0xd98] ss:$52 sps:$4 sm:$0xff]  }
 0x35e   :  { %12577 = vmatpush3.bf16.msra.mxu0 %v14081_v30  ;;  %v14127_v30 = vld [vmem:[#allocation2 + $0x1070] ss:$52 sps:$4 sm:$0xff]  }
 0x35f   :  { %12599 = vmatpush3.bf16.msra.mxu1 %v14082_v31  ;;  %12578 = vmatprep.subr.bf16.mxu0 %v14083_v47  ;;  %v14128_v31 = vld [vmem:[#allocation2 + $0x16f0] ss:$52 sps:$4 sm:$0xff]  }
 0x360   :  { %12600 = vmatprep.subr.bf16.mxu1 %v14084_v51  ;;  %v14129_v47 = vld [vmem:[#allocation2 + $0xd30] ss:$52 sps:$4 sm:$0xff]  }
 0x361   :  { %v14130_v51 = vld [vmem:[#allocation2 + $0x13b0] ss:$52 sps:$4 sm:$0xff]  }
 0x362   :  { %12579 = vmatpush3.bf16.msra.mxu0 %v14085_v33  ;;  %v6469_v33 = vmax.f32 %v15185_v28, 0.0 }
 0x363   :  { %12601 = vmatpush3.bf16.msra.mxu1 %v14086_v34  ;;  %12580 = vmatprep.subr.bf16.mxu0 %v14087_v2  ;;  %v6471_v34 = vmax.f32 %v15211_v39, 0.0  ;;  %v14133_v2 = vld [vmem:[#allocation6 + $0x11c] ss:$20 sps:$4 sm:$0xff]  }
 0x364   :  { %12602 = vmatprep.subr.bf16.mxu1 %v14088_v29  ;;  %v14136_v29 = vld [vmem:[#allocation6 + $0x39c] ss:$20 sps:$4 sm:$0xff]  }
 0x365   :  { %v14137_v39 = vld [vmem:[#allocation6 + $0xf0] ss:$20 sps:$4 sm:$0xff]  }
 0x366   :  { %12581 = vmatpush3.bf16.msra.mxu0 %v14089_v52  ;;  %v14131_v52 = vld [vmem:[#allocation6 + $0x118] ss:$20 sps:$4 sm:$0xff]  }
 0x367   :  { %12603 = vmatpush3.bf16.msra.mxu1 %v14090_v60  ;;  %12582 = vmatprep.subr.bf16.mxu0 %v14091_v42  ;;  %v14134_v60 = vld [vmem:[#allocation6 + $0x398] ss:$20 sps:$4 sm:$0xff]   ;;  %v14139_v42 = vld [vmem:[#allocation6 + $0xf4] ss:$20 sps:$4 sm:$0xff]  }
 0x368   :  { %12604 = vmatprep.subr.bf16.mxu1 %v14092_v43  ;;  %v14142_v43 = vld [vmem:[#allocation6 + $0x374] ss:$20 sps:$4 sm:$0xff]  }
 0x36a   :  { %12583 = vmatpush3.bf16.msra.mxu0 %v14093_v44  ;;  %v15276_v44 = vpack.c.bf16 %v6469_v33, %v6469_v33  ;;  %v14187_v33 = vld [vmem:[#allocation6 + $0x234] ss:$20 sps:$4 sm:$0xff]  }
 0x36b   :  { %12605 = vmatpush3.bf16.msra.mxu1 %v14094_v45  ;;  %12584 = vmatprep.subr.bf16.mxu0 %v14095_v46  ;;  %v15278_v45 = vpack.c.bf16 %v6471_v34, %v6471_v34  ;;  %v14190_v34 = vld [vmem:[#allocation6 + $0x4b4] ss:$20 sps:$4 sm:$0xff]  }
 0x36c   :  { %12606 = vmatprep.subr.bf16.mxu1 %v14096_v48  ;;  %v14140_v48 = vld [vmem:[#allocation6 + $0x370] ss:$20 sps:$4 sm:$0xff]  }
 0x36e   :  { %12585 = vmatpush3.bf16.msra.mxu0 %v14097_v53 }
 0x36f   :  { %12607 = vmatpush3.bf16.msra.mxu1 %v14098_v54  ;;  %12614 = vmatprep.subr.bf16.mxu0 %v14099_v55  ;;  %v14145_v54 = vld [vmem:[#allocation6 + $0xcc] ss:$20 sps:$4 sm:$0xff]  }
 0x370   :  { %12636 = vmatprep.subr.bf16.mxu1 %v14100_v56  ;;  %v14148_v55 = vld [vmem:[#allocation6 + $0x34c] ss:$20 sps:$4 sm:$0xff]  }
 0x371   :  { %6341 = vmatmul.mubr.bf16.vlgmr.msra.gmra.mxu0 %v15117_v6  ;;  %v14112_v6 = vld [vmem:[#allocation2 + $0x1890] ss:$52 sps:$4 sm:$0xff]  }
 0x372   :  { %6381 = vmatmul.mubr.bf16.vlgmr.msra.gmra.mxu1 %v15119_v7  ;;  %12615 = vmatpush3.bf16.msra.mxu0 %v14101_v58  ;;  %v14114_v7 = vld [vmem:[#allocation2 + $0x1550] ss:$52 sps:$4 sm:$0xff]  }
 0x373   :  { %12637 = vmatpush3.bf16.msra.mxu1 %v14102_v61  ;;  %12616 = vmatprep.subr.bf16.mxu0 %v14103_v62 }
 0x374   :  { %12638 = vmatprep.subr.bf16.mxu1 %v14104_v13  ;;  %6420 = vmatprep.mubr.bf16.mxu0 %v15135_v36  ;;  %v14119_v36 = vld [vmem:[#allocation2 + $0x1140] ss:$52 sps:$4 sm:$0xff]  }
 0x375   :  { %6460 = vmatprep.mubr.bf16.mxu1 %v15139_v37  ;;  %v14120_v37 = vld [vmem:[#allocation2 + $0x17c0] ss:$52 sps:$4 sm:$0xff]  }
 0x376   :  { %12617 = vmatpush3.bf16.msra.mxu0 %v14105_v1  ;;  %v14146_v1 = vld [vmem:[#allocation6 + $0x348] ss:$20 sps:$4 sm:$0xff]  }
 0x377   :  { %12639 = vmatpush3.bf16.msra.mxu1 %v14106_v3  ;;  %12618 = vmatprep.subr.bf16.mxu0 %v14107_v4  ;;  %v14151_v3 = vld [vmem:[#allocation6 + $0xa4] ss:$20 sps:$4 sm:$0xff]  }
 0x378   :  { %12640 = vmatprep.subr.bf16.mxu1 %v14108_v20 }
 0x37a   :  { %12619 = vmatpush3.bf16.msra.mxu0 %v14109_v5  ;;  %v14154_v5 = vld [vmem:[#allocation6 + $0x324] ss:$20 sps:$4 sm:$0xff]  }
 0x37b   :  { %12641 = vmatpush3.bf16.msra.mxu1 %v14110_v8  ;;  %12620 = vmatprep.subr.bf16.mxu0 %v14111_v9  ;;  %v14149_v8 = vld [vmem:[#allocation6 + $0xa0] ss:$20 sps:$4 sm:$0xff]   ;;  %v14157_v9 = vld [vmem:[#allocation6 + $0x7c] ss:$20 sps:$4 sm:$0xff]  }
 0x37c   :  { %12642 = vmatprep.subr.bf16.mxu1 %v14112_v6  ;;  %v14160_v6 = vld [vmem:[#allocation6 + $0x2fc] ss:$20 sps:$4 sm:$0xff]  }
 0x37e   :  { %12621 = vmatpush3.bf16.msra.mxu0 %v14113_v10  ;;  %v14155_v10 = vld [vmem:[#allocation6 + $0x78] ss:$20 sps:$4 sm:$0xff]  }
 0x37f   :  { %12643 = vmatpush3.bf16.msra.mxu1 %v14114_v7  ;;  %12622 = vmatprep.subr.bf16.mxu0 %v14115_v11  ;;  %v14158_v7 = vld [vmem:[#allocation6 + $0x2f8] ss:$20 sps:$4 sm:$0xff]   ;;  %v14163_v11 = vld [vmem:[#allocation6 + $0x54] ss:$20 sps:$4 sm:$0xff]  }
 0x380   :  { %12644 = vmatprep.subr.bf16.mxu1 %v14116_v12  ;;  %v14161_v12 = vld [vmem:[#allocation6 + $0x50] ss:$20 sps:$4 sm:$0xff]  }
 0x382   :  { %12623 = vmatpush3.bf16.msra.mxu0 %v14117_v15  ;;  %v14166_v15 = vld [vmem:[#allocation6 + $0x2d4] ss:$20 sps:$4 sm:$0xff]  }
 0x383   :  { %12645 = vmatpush3.bf16.msra.mxu1 %v14118_v17  ;;  %12624 = vmatprep.subr.bf16.mxu0 %v14119_v36  ;;  %v14164_v17 = vld [vmem:[#allocation6 + $0x2d0] ss:$20 sps:$4 sm:$0xff]   ;;  %v14169_v36 = vld [vmem:[#allocation6 + $0x2c] ss:$20 sps:$4 sm:$0xff]  }
 0x384   :  { %12646 = vmatprep.subr.bf16.mxu1 %v14120_v37  ;;  %v14167_v37 = vld [vmem:[#allocation6 + $0x28] ss:$20 sps:$4 sm:$0xff]  }
 0x386   :  { %12625 = vmatpush3.bf16.msra.mxu0 %v14121_v21  ;;  %v14172_v21 = vld [vmem:[#allocation6 + $0x2ac] ss:$20 sps:$4 sm:$0xff]  }
 0x387   :  { %12647 = vmatpush3.bf16.msra.mxu1 %v14122_v22  ;;  %12626 = vmatprep.subr.bf16.mxu0 %v14123_v23  ;;  %v14170_v22 = vld [vmem:[#allocation6 + $0x2a8] ss:$20 sps:$4 sm:$0xff]   ;;  %v14175_v23 = vld [vmem:[#allocation6 + $0x4] ss:$20 sps:$4 sm:$0xff]  }
 0x388   :  { %12648 = vmatprep.subr.bf16.mxu1 %v14124_v25  ;;  %v14173_v25 = vld [vmem:[#allocation6] ss:$20 sps:$4 sm:$0xff]  }
 0x38a   :  { %12627 = vmatpush3.bf16.msra.mxu0 %v14125_v26  ;;  %v14178_v26 = vld [vmem:[#allocation6 + $0x284] ss:$20 sps:$4 sm:$0xff]  }
 0x38b   :  { %12649 = vmatpush3.bf16.msra.mxu1 %v14126_v59  ;;  %12628 = vmatprep.subr.bf16.mxu0 %v14127_v30  ;;  %v14176_v59 = vld [vmem:[#allocation6 + $0x280] ss:$20 sps:$4 sm:$0xff]   ;;  %v14181_v30 = vld [vmem:[#allocation6 + $0x25c] ss:$20 sps:$4 sm:$0xff]  }
 0x38c   :  { %12650 = vmatprep.subr.bf16.mxu1 %v14128_v31  ;;  %v14179_v31 = vld [vmem:[#allocation6 + $0x258] ss:$20 sps:$4 sm:$0xff]  }
 0x38e   :  { %12629 = vmatpush3.bf16.msra.mxu0 %v14129_v47  ;;  %v14184_v47 = vld [vmem:[#allocation6 + $0x4dc] ss:$20 sps:$4 sm:$0xff]  }
 0x38f   :  { %12651 = vmatpush3.bf16.msra.mxu1 %v14130_v51  ;;  %9849 = vmatprep.subr.bf16.mxu0 %v14133_v2  ;;  %v14182_v51 = vld [vmem:[#allocation6 + $0x4d8] ss:$20 sps:$4 sm:$0xff]   ;;  %v14185_v2 = vld [vmem:[#allocation6 + $0x230] ss:$20 sps:$4 sm:$0xff]  }
 0x390   :  { %9890 = vmatprep.subr.bf16.mxu1 %v14136_v29  ;;  %v14188_v29 = vld [vmem:[#allocation6 + $0x4b0] ss:$20 sps:$4 sm:$0xff]  }
 0x391   :  { %v6096_v46 = vpop.f32.mrf.mxu0  ;;  %6421 = vmatmul.mubr.bf16.vlgmr.msra.gmra.mxu0 %v15145_v16 }
 0x392   :  { %6461 = vmatmul.mubr.bf16.vlgmr.msra.gmra.mxu1 %v15149_v19  ;;  %v6137_v28 = vpop.f32.mrf.mxu1  ;;  %v6097_v53 = vadd.f32 %v6096_v46, %v15264_v14  ;;  %9850 = vmatpush1.bf16.msra.mxu0 %v14131_v52  ;;  %v14143_v14 = vld [vmem:[#allocation6 + $0xc8] ss:$20 sps:$4 sm:$0xff]   ;;  %v14193_v52 = vld [vmem:[#allocation6 + $0x20c] ss:$20 sps:$4 sm:$0xff]   ;;  %v14199_v46 = vld [vmem:[#allocation6 + $0x1e4] ss:$20 sps:$4 sm:$0xff]  }
 0x393   :  { %9881 = vmatprep.mubr.bf16.mxu0 %v15276_v44  ;;  %9891 = vmatpush1.bf16.msra.mxu1 %v14134_v60  ;;  %v6098_v56 = vpop.f32.mrf.mxu0  ;;  %v14196_v60 = vld [vmem:[#allocation6 + $0x48c] ss:$20 sps:$4 sm:$0xff]  }
 0x394   :  { %9922 = vmatprep.mubr.bf16.mxu1 %v15278_v45  ;;  %v6139_v58 = vpop.f32.mrf.mxu1  ;;  %v6099_v61 = vadd.f32 %v6098_v56, %v15268_v18  ;;  %v15286_v16 = vadd.f32 %v6137_v28, %v6097_v53  ;;  %9851 = vmatprep.subr.bf16.mxu0 %v14139_v42  ;;  %v14152_v18 = vld [vmem:[#allocation6 + $0x320] ss:$20 sps:$4 sm:$0xff]   ;;  %v14191_v42 = vld [vmem:[#allocation6 + $0x208] ss:$20 sps:$4 sm:$0xff]   ;;  %v14202_v28 = vld [vmem:[#allocation6 + $0x464] ss:$20 sps:$4 sm:$0xff]  }
 0x395   :  { %9892 = vmatprep.subr.bf16.mxu1 %v14142_v43  ;;  %v6100_v19 = vpop.f32.mrf.mxu0  ;;  %v14194_v43 = vld [vmem:[#allocation6 + $0x488] ss:$20 sps:$4 sm:$0xff]   ;;  %v14206_v56 = vld [vmem:[#allocation6 + $0x438] ss:$20 sps:$4 sm:$0xff]  }
 0x396   :  { %v6141_v62 = vpop.f32.mrf.mxu1  ;;  %v15288_v13 = vadd.f32 %v6139_v58, %v6099_v61  ;;  %9852 = vmatpush1.bf16.msra.mxu0 %v14137_v39  ;;  %v14197_v39 = vld [vmem:[#allocation6 + $0x1e0] ss:$20 sps:$4 sm:$0xff]   ;;  %v14205_v53 = vld [vmem:[#allocation6 + $0x1bc] ss:$20 sps:$4 sm:$0xff]  }
 0x397   :  { %9893 = vmatpush1.bf16.msra.mxu1 %v14140_v48  ;;  %v6101_v4 = vpop.f32.mrf.mxu0  ;;  %9853 = vmatprep.subr.bf16.mxu0 %v14145_v54  ;;  %v14200_v48 = vld [vmem:[#allocation6 + $0x460] ss:$20 sps:$4 sm:$0xff]   ;;  %v14208_v54 = vld [vmem:[#allocation6 + $0x43c] ss:$20 sps:$4 sm:$0xff]  }
 0x398   :  { %v6142_v20 = vpop.f32.mrf.mxu1  ;;  %9894 = vmatprep.subr.bf16.mxu1 %v14148_v55  ;;  %v14203_v55 = vld [vmem:[#allocation6 + $0x1b8] ss:$20 sps:$4 sm:$0xff]   ;;  %v14211_v58 = vld [vmem:[#allocation6 + $0x194] ss:$20 sps:$4 sm:$0xff]   ;;  %v14209_v19 = vld [vmem:[#allocation6 + $0x190] ss:$20 sps:$4 sm:$0xff]  }
 0x399   :  { %v14214_v61 = vld [vmem:[#allocation6 + $0x414] ss:$20 sps:$4 sm:$0xff]   ;;  %v14212_v62 = vld [vmem:[#allocation6 + $0x410] ss:$20 sps:$4 sm:$0xff]  }
 0x39a   :  { %9854 = vmatpush1.bf16.msra.mxu0 %v14143_v14  ;;  %v14217_v14 = vld [vmem:[#allocation6 + $0x16c] ss:$20 sps:$4 sm:$0xff]   ;;  %v14218_v4 = vld [vmem:[#allocation6 + $0x3e8] ss:$20 sps:$4 sm:$0xff]   ;;  %v14223_v20 = vld [vmem:[#allocation6 + $0x144] ss:$20 sps:$4 sm:$0xff]  }
 0x39b   :  { %9895 = vmatpush1.bf16.msra.mxu1 %v14146_v1  ;;  %9855 = vmatprep.subr.bf16.mxu0 %v14151_v3  ;;  %v14220_v1 = vld [vmem:[#allocation6 + $0x3ec] ss:$20 sps:$4 sm:$0xff]   ;;  %v14215_v3 = vld [vmem:[#allocation6 + $0x168] ss:$20 sps:$4 sm:$0xff]  }
 0x39c   :  { %9896 = vmatprep.subr.bf16.mxu1 %v14154_v5  ;;  %v14226_v5 = vld [vmem:[#allocation6 + $0x3c4] ss:$20 sps:$4 sm:$0xff]  }
 0x39e   :  { %9856 = vmatpush1.bf16.msra.mxu0 %v14149_v8  ;;  %v14221_v8 = vld [vmem:[#allocation6 + $0x140] ss:$20 sps:$4 sm:$0xff]  }
 0x39f   :  { %9897 = vmatpush1.bf16.msra.mxu1 %v14152_v18  ;;  %9857 = vmatprep.subr.bf16.mxu0 %v14157_v9  ;;  %v6468_v18 = vmax.f32 %v15181_v24, 0.0  ;;  %v14224_v9 = vld [vmem:[#allocation6 + $0x3c0] ss:$20 sps:$4 sm:$0xff]   ;;  %v14230_v24 = vld [vmem:[#allocation6 + $0x898] ss:$20 sps:$4 sm:$0xff]  }
 0x3a0   :  { %9898 = vmatprep.subr.bf16.mxu1 %v14160_v6  ;;  %v14229_v6 = vld [vmem:[#allocation6 + $0x61c] ss:$20 sps:$4 sm:$0xff]  }
 0x3a2   :  { %9858 = vmatpush1.bf16.msra.mxu0 %v14155_v10  ;;  %v6470_v10 = vmax.f32 %v15207_v32, 0.0  ;;  %v14235_v32 = vld [vmem:[#allocation6 + $0x5f4] ss:$20 sps:$4 sm:$0xff]  }
 0x3a3   :  { %9899 = vmatpush1.bf16.msra.mxu1 %v14158_v7  ;;  %9859 = vmatprep.subr.bf16.mxu0 %v14163_v11  ;;  %v14232_v7 = vld [vmem:[#allocation6 + $0x89c] ss:$20 sps:$4 sm:$0xff]   ;;  %v6473_v11 = vmax.f32 %v15234_v63, 0.0 }
 0x3a4   :  { %9900 = vmatprep.subr.bf16.mxu1 %v14166_v15  ;;  %v1050_v15 = vrot.slane %v15256_v50, %v15188_v0 }
 0x3a6   :  { %9860 = vmatpush1.bf16.msra.mxu0 %v14161_v12  ;;  %v6475_v12 = vmax.f32 %v15254_v38, 0.0  ;;  %v14238_v38 = vld [vmem:[#allocation6 + $0x874] ss:$20 sps:$4 sm:$0xff]  }
 0x3a7   :  { %9901 = vmatpush1.bf16.msra.mxu1 %v14164_v17  ;;  %9861 = vmatprep.subr.bf16.mxu0 %v14169_v36  ;;  %v14227_v17 = vld [vmem:[#allocation6 + $0x618] ss:$20 sps:$4 sm:$0xff]   ;;  %v15296_v36 = vpack.c.bf16 %v6468_v18, %v6468_v18  ;;  %v14280_v18 = vld [vmem:[#allocation6 + $0x9dc] ss:$20 sps:$4 sm:$0xff]  }
 0x3a8   :  { %9902 = vmatprep.subr.bf16.mxu1 %v14172_v21  ;;  %v15300_v21 = vpack.c.bf16 %v6473_v11, %v6473_v11  ;;  %v14281_v11 = vld [vmem:[#allocation6 + $0x730] ss:$20 sps:$4 sm:$0xff]  }
 0x3aa   :  { %9862 = vmatpush1.bf16.msra.mxu0 %v14167_v37  ;;  %v15298_v37 = vpack.c.bf16 %v6470_v10, %v6470_v10  ;;  %v14283_v10 = vld [vmem:[#allocation6 + $0x734] ss:$20 sps:$4 sm:$0xff]  }
 0x3ab   :  { %9903 = vmatpush1.bf16.msra.mxu1 %v14170_v22  ;;  %9863 = vmatprep.subr.bf16.mxu0 %v14175_v23  ;;  %v15303_v23 = vpack.c.bf16 %v6475_v12, %v6475_v12  ;;  %v14284_v12 = vld [vmem:[#allocation6 + $0x9b0] ss:$20 sps:$4 sm:$0xff]  }
 0x3ac   :  { %9904 = vmatprep.subr.bf16.mxu1 %v14178_v26 }
 0x3ae   :  { %9864 = vmatpush1.bf16.msra.mxu0 %v14173_v25  ;;  %v14233_v25 = vld [vmem:[#allocation6 + $0x5f0] ss:$20 sps:$4 sm:$0xff]  }
 0x3af   :  { %9905 = vmatpush1.bf16.msra.mxu1 %v14176_v59  ;;  %9865 = vmatprep.subr.bf16.mxu0 %v14181_v30  ;;  %v14236_v30 = vld [vmem:[#allocation6 + $0x870] ss:$20 sps:$4 sm:$0xff]  }
 0x3b0   :  { %9906 = vmatprep.subr.bf16.mxu1 %v14184_v47 }
 0x3b2   :  { %9866 = vmatpush2.bf16.msra.mxu0 %v14179_v31  ;;  %v14241_v31 = vld [vmem:[#allocation6 + $0x5cc] ss:$20 sps:$4 sm:$0xff]  }
 0x3b3   :  { %9907 = vmatpush2.bf16.msra.mxu1 %v14182_v51  ;;  %9867 = vmatprep.subr.bf16.mxu0 %v14187_v33  ;;  %v14244_v51 = vld [vmem:[#allocation6 + $0x84c] ss:$20 sps:$4 sm:$0xff]  }
 0x3b4   :  { %9908 = vmatprep.subr.bf16.mxu1 %v14190_v34 }
 0x3b6   :  { %9868 = vmatpush2.bf16.msra.mxu0 %v14185_v2  ;;  %v14239_v2 = vld [vmem:[#allocation6 + $0x5c8] ss:$20 sps:$4 sm:$0xff]  }
 0x3b7   :  { %9909 = vmatpush2.bf16.msra.mxu1 %v14188_v29  ;;  %9869 = vmatprep.subr.bf16.mxu0 %v14193_v52  ;;  %v14242_v52 = vld [vmem:[#allocation6 + $0x848] ss:$20 sps:$4 sm:$0xff]  }
 0x3b8   :  { %9910 = vmatprep.subr.bf16.mxu1 %v14196_v60  ;;  %v14247_v60 = vld [vmem:[#allocation6 + $0x5a4] ss:$20 sps:$4 sm:$0xff]  }
 0x3ba   :  { %9870 = vmatpush2.bf16.msra.mxu0 %v14191_v42 }
 0x3bb   :  { %9911 = vmatpush2.bf16.msra.mxu1 %v14194_v43  ;;  %9871 = vmatprep.subr.bf16.mxu0 %v14199_v46  ;;  %v14250_v43 = vld [vmem:[#allocation6 + $0x824] ss:$20 sps:$4 sm:$0xff]   ;;  %v14245_v46 = vld [vmem:[#allocation6 + $0x5a0] ss:$20 sps:$4 sm:$0xff]  }
 0x3bc   :  { %9912 = vmatprep.subr.bf16.mxu1 %v14202_v28  ;;  %v14248_v28 = vld [vmem:[#allocation6 + $0x820] ss:$20 sps:$4 sm:$0xff]  }
 0x3be   :  { %9872 = vmatpush2.bf16.msra.mxu0 %v14197_v39  ;;  %v14253_v39 = vld [vmem:[#allocation6 + $0x57c] ss:$20 sps:$4 sm:$0xff]  }
 0x3bf   :  { %9913 = vmatpush2.bf16.msra.mxu1 %v14200_v48  ;;  %9873 = vmatprep.subr.bf16.mxu0 %v14205_v53  ;;  %v14256_v48 = vld [vmem:[#allocation6 + $0x7fc] ss:$20 sps:$4 sm:$0xff]   ;;  %v14251_v53 = vld [vmem:[#allocation6 + $0x578] ss:$20 sps:$4 sm:$0xff]  }
 0x3c0   :  { %9914 = vmatprep.subr.bf16.mxu1 %v14208_v54  ;;  %v14254_v54 = vld [vmem:[#allocation6 + $0x7f8] ss:$20 sps:$4 sm:$0xff]  }
 0x3c2   :  { %9874 = vmatpush2.bf16.msra.mxu0 %v14203_v55  ;;  %v14259_v55 = vld [vmem:[#allocation6 + $0x554] ss:$20 sps:$4 sm:$0xff]  }
 0x3c3   :  { %9915 = vmatpush2.bf16.msra.mxu1 %v14206_v56  ;;  %9875 = vmatprep.subr.bf16.mxu0 %v14211_v58  ;;  %v14262_v56 = vld [vmem:[#allocation6 + $0x7d4] ss:$20 sps:$4 sm:$0xff]   ;;  %v14257_v58 = vld [vmem:[#allocation6 + $0x550] ss:$20 sps:$4 sm:$0xff]  }
 0x3c4   :  { %9916 = vmatprep.subr.bf16.mxu1 %v14214_v61  ;;  %v14260_v61 = vld [vmem:[#allocation6 + $0x7d0] ss:$20 sps:$4 sm:$0xff]  }
 0x3c6   :  { %9876 = vmatpush2.bf16.msra.mxu0 %v14209_v19  ;;  %v14265_v19 = vld [vmem:[#allocation6 + $0x52c] ss:$20 sps:$4 sm:$0xff]  }
 0x3c7   :  { %9917 = vmatpush2.bf16.msra.mxu1 %v14212_v62  ;;  %9877 = vmatprep.subr.bf16.mxu0 %v14217_v14  ;;  %v14268_v62 = vld [vmem:[#allocation6 + $0x7ac] ss:$20 sps:$4 sm:$0xff]   ;;  %v14263_v14 = vld [vmem:[#allocation6 + $0x528] ss:$20 sps:$4 sm:$0xff]  }
 0x3c8   :  { %9918 = vmatprep.subr.bf16.mxu1 %v14220_v1  ;;  %v14266_v1 = vld [vmem:[#allocation6 + $0x7a8] ss:$20 sps:$4 sm:$0xff]  }
 0x3ca   :  { %9878 = vmatpush2.bf16.msra.mxu0 %v14215_v3  ;;  %v14271_v3 = vld [vmem:[#allocation6 + $0x504] ss:$20 sps:$4 sm:$0xff]  }
 0x3cb   :  { %9919 = vmatpush2.bf16.msra.mxu1 %v14218_v4  ;;  %9879 = vmatprep.subr.bf16.mxu0 %v14223_v20  ;;  %v14274_v4 = vld [vmem:[#allocation6 + $0x784] ss:$20 sps:$4 sm:$0xff]   ;;  %v14269_v20 = vld [vmem:[#allocation6 + $0x500] ss:$20 sps:$4 sm:$0xff]  }
 0x3cc   :  { %9920 = vmatprep.subr.bf16.mxu1 %v14226_v5  ;;  %v14272_v5 = vld [vmem:[#allocation6 + $0x780] ss:$20 sps:$4 sm:$0xff]  }
 0x3ce   :  { %9880 = vmatpush2.bf16.msra.mxu0 %v14221_v8  ;;  %v14277_v8 = vld [vmem:[#allocation6 + $0x75c] ss:$20 sps:$4 sm:$0xff]  }
 0x3cf   :  { %9921 = vmatpush2.bf16.msra.mxu1 %v14224_v9  ;;  %9931 = vmatprep.subr.bf16.mxu0 %v14229_v6  ;;  %v14275_v9 = vld [vmem:[#allocation6 + $0x758] ss:$20 sps:$4 sm:$0xff]  }
 0x3d0   :  { %9972 = vmatprep.subr.bf16.mxu1 %v14232_v7  ;;  %v14278_v6 = vld [vmem:[#allocation6 + $0x9d8] ss:$20 sps:$4 sm:$0xff]   ;;  %v14286_v7 = vld [vmem:[#allocation6 + $0x9b4] ss:$20 sps:$4 sm:$0xff]  }
 0x3d1   :  { %v6178_v22 = vpop.f32.mrf.mxu0  ;;  %9882 = vmatmul.mubr.bf16.vlgmr.msra.gmra.mxu0 %v15296_v36 }
 0x3d2   :  { %v6219_v63 = vpop.f32.mrf.mxu1  ;;  %v6179_v50 = vadd.f32 %v6178_v22, %v1050_v15  ;;  %9923 = vmatmul.mubr.bf16.vlgmr.msra.gmra.mxu1 %v15298_v37  ;;  %9932 = vmatpush1.bf16.msra.mxu0 %v14227_v17  ;;  %v14289_v15 = vld [vmem:[#allocation6 + $0x70c] ss:$20 sps:$4 sm:$0xff]   ;;  %v14295_v22 = vld [vmem:[#allocation6 + $0x6e4] ss:$20 sps:$4 sm:$0xff]  }
 0x3d3   :  { %9963 = vmatprep.mubr.bf16.mxu0 %v15300_v21  ;;  %9973 = vmatpush1.bf16.msra.mxu1 %v14230_v24  ;;  %v15307_v26 = vpop.f32.mrf.mxu0  ;;  %v14292_v17 = vld [vmem:[#allocation6 + $0x98c] ss:$20 sps:$4 sm:$0xff]   ;;  %v14287_v24 = vld [vmem:[#allocation6 + $0x708] ss:$20 sps:$4 sm:$0xff]  }
 0x3d4   :  { %v15309_v59 = vpop.f32.mrf.mxu1  ;;  %10004 = vmatprep.mubr.bf16.mxu1 %v15303_v23  ;;  %v15312_v47 = vadd.f32 %v6219_v63, %v6179_v50  ;;  %9933 = vmatprep.subr.bf16.mxu0 %v14235_v32  ;;  %v14290_v32 = vld [vmem:[#allocation6 + $0x988] ss:$20 sps:$4 sm:$0xff]   ;;  %v14298_v63 = vld [vmem:[#allocation6 + $0x964] ss:$20 sps:$4 sm:$0xff]   ;;  %v14296_v50 = vld [vmem:[#allocation6 + $0x960] ss:$20 sps:$4 sm:$0xff]  }
 0x3d5   :  { %v6182_v33 = vpop.f32.mrf.mxu0  ;;  %9974 = vmatprep.subr.bf16.mxu1 %v14238_v38  ;;  %v14293_v38 = vld [vmem:[#allocation6 + $0x6e0] ss:$20 sps:$4 sm:$0xff]  }
 0x3d6   :  { %v6223_v34 = vpop.f32.mrf.mxu1  ;;  %9934 = vmatpush1.bf16.msra.mxu0 %v14233_v25  ;;  %v14301_v25 = vld [vmem:[#allocation6 + $0x6bc] ss:$20 sps:$4 sm:$0xff]   ;;  %v14307_v33 = vld [vmem:[#allocation6 + $0x694] ss:$20 sps:$4 sm:$0xff]  }
 0x3d7   :  { %9975 = vmatpush1.bf16.msra.mxu1 %v14236_v30  ;;  %v6183_v29 = vpop.f32.mrf.mxu0  ;;  %9935 = vmatprep.subr.bf16.mxu0 %v14241_v31  ;;  %v14304_v30 = vld [vmem:[#allocation6 + $0x93c] ss:$20 sps:$4 sm:$0xff]   ;;  %v14299_v31 = vld [vmem:[#allocation6 + $0x6b8] ss:$20 sps:$4 sm:$0xff]   ;;  %v14310_v34 = vld [vmem:[#allocation6 + $0x914] ss:$20 sps:$4 sm:$0xff]  }
 0x3d8   :  { %v6224_v42 = vpop.f32.mrf.mxu1  ;;  %9976 = vmatprep.subr.bf16.mxu1 %v14244_v51  ;;  %v14302_v51 = vld [vmem:[#allocation6 + $0x938] ss:$20 sps:$4 sm:$0xff]   ;;  %v14308_v29 = vld [vmem:[#allocation6 + $0x910] ss:$20 sps:$4 sm:$0xff]  }
 0x3d9   :  { %v14311_v42 = vld [vmem:[#allocation6 + $0x668] ss:$20 sps:$4 sm:$0xff]  }
 0x3da   :  { %9936 = vmatpush1.bf16.msra.mxu0 %v14239_v2  ;;  %v14305_v2 = vld [vmem:[#allocation6 + $0x690] ss:$20 sps:$4 sm:$0xff]  }
 0x3db   :  { %9977 = vmatpush1.bf16.msra.mxu1 %v14242_v52  ;;  %9937 = vmatprep.subr.bf16.mxu0 %v14247_v60  ;;  %v14313_v52 = vld [vmem:[#allocation6 + $0x66c] ss:$20 sps:$4 sm:$0xff]  }
 0x3dc   :  { %9978 = vmatprep.subr.bf16.mxu1 %v14250_v43  ;;  %v14316_v60 = vld [vmem:[#allocation6 + $0x8ec] ss:$20 sps:$4 sm:$0xff]   ;;  %v14314_v43 = vld [vmem:[#allocation6 + $0x8e8] ss:$20 sps:$4 sm:$0xff]  }
 0x3de   :  { %9938 = vmatpush1.bf16.msra.mxu0 %v14245_v46  ;;  %v14319_v46 = vld [vmem:[#allocation6 + $0x644] ss:$20 sps:$4 sm:$0xff]  }
 0x3df   :  { %9979 = vmatpush1.bf16.msra.mxu1 %v14248_v28  ;;  %9939 = vmatprep.subr.bf16.mxu0 %v14253_v39  ;;  %v14322_v28 = vld [vmem:[#allocation6 + $0x8c4] ss:$20 sps:$4 sm:$0xff]  }
 0x3e0   :  { %9980 = vmatprep.subr.bf16.mxu1 %v14256_v48  ;;  %v15314_v39 = vld [vmem:[#allocation4 + $0x8] sm:$0x1f] }
 0x3e1   :  { %v1054_v48 = vrot.slane %v15314_v39, %v15191_v41 }
 0x3e2   :  { %9940 = vmatpush1.bf16.msra.mxu0 %v14251_v53  ;;  %v14317_v53 = vld [vmem:[#allocation6 + $0x640] ss:$20 sps:$4 sm:$0xff]  }
 0x3e3   :  { %9981 = vmatpush1.bf16.msra.mxu1 %v14254_v54  ;;  %9941 = vmatprep.subr.bf16.mxu0 %v14259_v55  ;;  %v6472_v54 = vmax.f32 %v15230_v57, 0.0  ;;  %v14320_v55 = vld [vmem:[#allocation6 + $0x8c0] ss:$20 sps:$4 sm:$0xff]  }
 0x3e4   :  { %9982 = vmatprep.subr.bf16.mxu1 %v14262_v56  ;;  %v14325_v56 = vld [vmem:[#allocation6 + $0xb1c] ss:$20 sps:$4 sm:$0xff]  }
 0x3e6   :  { %9942 = vmatpush1.bf16.msra.mxu0 %v14257_v58  ;;  %v6474_v58 = vmax.f32 %v15250_v27, 0.0 }
 0x3e7   :  { %9983 = vmatpush1.bf16.msra.mxu1 %v14260_v61  ;;  %9943 = vmatprep.subr.bf16.mxu0 %v14265_v19  ;;  %v14328_v61 = vld [vmem:[#allocation6 + $0xd9c] ss:$20 sps:$4 sm:$0xff]   ;;  %v6477_v19 = vmax.f32 %v15288_v13, 0.0 }
 0x3e8   :  { %9984 = vmatprep.subr.bf16.mxu1 %v14268_v62  ;;  %v6181_v62 = vadd.f32 %v15307_v26, %v1054_v48  ;;  %v15324_v57 = vpack.c.bf16 %v6474_v58, %v6474_v58  ;;  %v14362_v48 = vld [vmem:[#allocation6 + $0xca8] ss:$20 sps:$4 sm:$0xff]  }
 0x3e9   :  { %v14373_v58 = vld [vmem:[#allocation6 + $0xc5c] ss:$20 sps:$4 sm:$0xff]  }
 0x3ea   :  { %9944 = vmatpush1.bf16.msra.mxu0 %v14263_v14  ;;  %v14323_v14 = vld [vmem:[#allocation6 + $0xb18] ss:$20 sps:$4 sm:$0xff]   ;;  %v6222_v26 = vadd.f32 %v15309_v59, %v6181_v62  ;;  %v14335_v59 = vld [vmem:[#allocation6 + $0xac8] ss:$20 sps:$4 sm:$0xff]  }
 0x3eb   :  { %9985 = vmatpush1.bf16.msra.mxu1 %v14266_v1  ;;  %9945 = vmatprep.subr.bf16.mxu0 %v14271_v3  ;;  %v15322_v1 = vpack.c.bf16 %v6472_v54, %v6472_v54  ;;  %v14326_v3 = vld [vmem:[#allocation6 + $0xd98] ss:$20 sps:$4 sm:$0xff]  }
 0x3ec   :  { %9986 = vmatprep.subr.bf16.mxu1 %v14274_v4  ;;  %v14331_v4 = vld [vmem:[#allocation6 + $0xaf4] ss:$20 sps:$4 sm:$0xff]   ;;  %v14370_v54 = vld [vmem:[#allocation6 + $0xc84] ss:$20 sps:$4 sm:$0xff]  }
 0x3ed   :  { %v14374_v62 = vld [vmem:[#allocation6 + $0xed8] ss:$20 sps:$4 sm:$0xff]  }
 0x3ee   :  { %9946 = vmatpush1.bf16.msra.mxu0 %v14269_v20  ;;  %v14334_v20 = vld [vmem:[#allocation6 + $0xd74] ss:$20 sps:$4 sm:$0xff]  }
 0x3ef   :  { %9987 = vmatpush1.bf16.msra.mxu1 %v14272_v5  ;;  %9947 = vmatprep.subr.bf16.mxu0 %v14277_v8  ;;  %v15326_v5 = vpack.c.bf16 %v6477_v19, %v6477_v19  ;;  %v14329_v8 = vld [vmem:[#allocation6 + $0xaf0] ss:$20 sps:$4 sm:$0xff]   ;;  %v14371_v19 = vld [vmem:[#allocation6 + $0xc58] ss:$20 sps:$4 sm:$0xff]  }
 0x3f0   :  { %9988 = vmatprep.subr.bf16.mxu1 %v14280_v18 }
 0x3f2   :  { %9948 = vmatpush2.bf16.msra.mxu0 %v14275_v9 }
 0x3f3   :  { %9989 = vmatpush2.bf16.msra.mxu1 %v14278_v6  ;;  %9949 = vmatprep.subr.bf16.mxu0 %v14283_v10  ;;  %v14332_v6 = vld [vmem:[#allocation6 + $0xd70] ss:$20 sps:$4 sm:$0xff]   ;;  %v14337_v10 = vld [vmem:[#allocation6 + $0xacc] ss:$20 sps:$4 sm:$0xff]  }
 0x3f4   :  { %9990 = vmatprep.subr.bf16.mxu1 %v14286_v7 }
 0x3f6   :  { %9950 = vmatpush2.bf16.msra.mxu0 %v14281_v11  ;;  %v14340_v11 = vld [vmem:[#allocation6 + $0xd4c] ss:$20 sps:$4 sm:$0xff]  }
 0x3f7   :  { %9991 = vmatpush2.bf16.msra.mxu1 %v14284_v12  ;;  %9951 = vmatprep.subr.bf16.mxu0 %v14289_v15 }
 0x3f8   :  { %9992 = vmatprep.subr.bf16.mxu1 %v14292_v17 }
 0x3fa   :  { %9952 = vmatpush2.bf16.msra.mxu0 %v14287_v24 }
 0x3fb   :  { %9993 = vmatpush2.bf16.msra.mxu1 %v14290_v32  ;;  %9953 = vmatprep.subr.bf16.mxu0 %v14295_v22  ;;  %v14338_v32 = vld [vmem:[#allocation6 + $0xd48] ss:$20 sps:$4 sm:$0xff]   ;;  %v14343_v22 = vld [vmem:[#allocation6 + $0xaa4] ss:$20 sps:$4 sm:$0xff]  }
 0x3fc   :  { %9994 = vmatprep.subr.bf16.mxu1 %v14298_v63 }
 0x3fe   :  { %9954 = vmatpush2.bf16.msra.mxu0 %v14293_v38 }
 0x3ff   :  { %9995 = vmatpush2.bf16.msra.mxu1 %v14296_v50  ;;  %9955 = vmatprep.subr.bf16.mxu0 %v14301_v25  ;;  %v14346_v50 = vld [vmem:[#allocation6 + $0xd24] ss:$20 sps:$4 sm:$0xff]  }
 0x400   :  { %9996 = vmatprep.subr.bf16.mxu1 %v14304_v30  ;;  %v14341_v30 = vld [vmem:[#allocation6 + $0xaa0] ss:$20 sps:$4 sm:$0xff]  }
 0x402   :  { %9956 = vmatpush2.bf16.msra.mxu0 %v14299_v31  ;;  %v14344_v31 = vld [vmem:[#allocation6 + $0xd20] ss:$20 sps:$4 sm:$0xff]  }
 0x403   :  { %9997 = vmatpush2.bf16.msra.mxu1 %v14302_v51  ;;  %9957 = vmatprep.subr.bf16.mxu0 %v14307_v33  ;;  %v14349_v51 = vld [vmem:[#allocation6 + $0xa7c] ss:$20 sps:$4 sm:$0xff]  }
 0x404   :  { %9998 = vmatprep.subr.bf16.mxu1 %v14310_v34  ;;  %v14352_v33 = vld [vmem:[#allocation6 + $0xcfc] ss:$20 sps:$4 sm:$0xff]   ;;  %v14347_v34 = vld [vmem:[#allocation6 + $0xa78] ss:$20 sps:$4 sm:$0xff]  }
 0x406   :  { %9958 = vmatpush2.bf16.msra.mxu0 %v14305_v2  ;;  %v14350_v2 = vld [vmem:[#allocation6 + $0xcf8] ss:$20 sps:$4 sm:$0xff]  }
 0x407   :  { %9999 = vmatpush2.bf16.msra.mxu1 %v14308_v29  ;;  %9959 = vmatprep.subr.bf16.mxu0 %v14313_v52  ;;  %v14355_v29 = vld [vmem:[#allocation6 + $0xa54] ss:$20 sps:$4 sm:$0xff]  }
 0x408   :  { %10000 = vmatprep.subr.bf16.mxu1 %v14316_v60  ;;  %v14358_v52 = vld [vmem:[#allocation6 + $0xcd4] ss:$20 sps:$4 sm:$0xff]   ;;  %v14353_v60 = vld [vmem:[#allocation6 + $0xa50] ss:$20 sps:$4 sm:$0xff]  }
 0x40a   :  { %9960 = vmatpush2.bf16.msra.mxu0 %v14311_v42  ;;  %v14356_v42 = vld [vmem:[#allocation6 + $0xcd0] ss:$20 sps:$4 sm:$0xff]  }
 0x40b   :  { %10001 = vmatpush2.bf16.msra.mxu1 %v14314_v43  ;;  %9961 = vmatprep.subr.bf16.mxu0 %v14319_v46  ;;  %v14361_v43 = vld [vmem:[#allocation6 + $0xa2c] ss:$20 sps:$4 sm:$0xff]  }
 0x40c   :  { %10002 = vmatprep.subr.bf16.mxu1 %v14322_v28  ;;  %v14364_v46 = vld [vmem:[#allocation6 + $0xcac] ss:$20 sps:$4 sm:$0xff]   ;;  %v14359_v28 = vld [vmem:[#allocation6 + $0xa28] ss:$20 sps:$4 sm:$0xff]  }
 0x40e   :  { %9962 = vmatpush2.bf16.msra.mxu0 %v14317_v53  ;;  %v14367_v53 = vld [vmem:[#allocation6 + $0xa04] ss:$20 sps:$4 sm:$0xff]  }
 0x40f   :  { %10003 = vmatpush2.bf16.msra.mxu1 %v14320_v55  ;;  %10013 = vmatprep.subr.bf16.mxu0 %v14325_v56  ;;  %v14365_v55 = vld [vmem:[#allocation6 + $0xa00] ss:$20 sps:$4 sm:$0xff]  }
 0x410   :  { %10054 = vmatprep.subr.bf16.mxu1 %v14328_v61  ;;  %v14368_v56 = vld [vmem:[#allocation6 + $0xc80] ss:$20 sps:$4 sm:$0xff]   ;;  %v14376_v61 = vld [vmem:[#allocation6 + $0xedc] ss:$20 sps:$4 sm:$0xff]  }
 0x411   :  { %v15328_v27 = vpop.f32.mrf.mxu0  ;;  %9964 = vmatmul.mubr.bf16.vlgmr.msra.gmra.mxu0 %v15322_v1 }
 0x412   :  { %v15331_v13 = vpop.f32.mrf.mxu1  ;;  %10005 = vmatmul.mubr.bf16.vlgmr.msra.gmra.mxu1 %v15324_v57  ;;  %10014 = vmatpush1.bf16.msra.mxu0 %v14323_v14  ;;  %v14379_v14 = vld [vmem:[#allocation6 + $0xc34] ss:$20 sps:$4 sm:$0xff]  }
 0x413   :  { %10045 = vmatprep.mubr.bf16.mxu0 %v15326_v5  ;;  %10055 = vmatpush1.bf16.msra.mxu1 %v14326_v3  ;;  %v6262_v18 = vpop.f32.mrf.mxu0  ;;  %v14382_v3 = vld [vmem:[#allocation6 + $0xeb4] ss:$20 sps:$4 sm:$0xff]  }
 0x414   :  { %v6303_v9 = vpop.f32.mrf.mxu1  ;;  %v6263_v7 = vadd.f32 %v6262_v18, %v6222_v26  ;;  %10015 = vmatprep.subr.bf16.mxu0 %v14331_v4  ;;  %10056 = vmatprep.subr.bf16.mxu1 %v14334_v20  ;;  %v14377_v26 = vld [vmem:[#allocation6 + $0xc30] ss:$20 sps:$4 sm:$0xff]  }
 0x415   :  { %v6264_v12 = vpop.f32.mrf.mxu0 }
 0x416   :  { %v6305_v15 = vpop.f32.mrf.mxu1  ;;  %v6304_v17 = vadd.f32 %v6303_v9, %v6263_v7  ;;  %10016 = vmatpush1.bf16.msra.mxu0 %v14329_v8  ;;  %v14380_v9 = vld [vmem:[#allocation6 + $0xeb0] ss:$20 sps:$4 sm:$0xff]   ;;  %v14383_v12 = vld [vmem:[#allocation6 + $0xc08] ss:$20 sps:$4 sm:$0xff]  }
 0x417   :  { %10057 = vmatpush1.bf16.msra.mxu1 %v14332_v6  ;;  %v6265_v24 = vpop.f32.mrf.mxu0  ;;  %10017 = vmatprep.subr.bf16.mxu0 %v14337_v10  ;;  %v14385_v6 = vld [vmem:[#allocation6 + $0xc0c] ss:$20 sps:$4 sm:$0xff]  }
 0x418   :  { %v6306_v63 = vpop.f32.mrf.mxu1  ;;  %v6479_v38 = vmax.f32 %v6304_v17, 0.0  ;;  %10058 = vmatprep.subr.bf16.mxu1 %v14340_v11  ;;  %v14388_v10 = vld [vmem:[#allocation6 + $0xe8c] ss:$20 sps:$4 sm:$0xff]   ;;  %v14386_v17 = vld [vmem:[#allocation6 + $0xe88] ss:$20 sps:$4 sm:$0xff]  }
 0x419   :  { %v14392_v63 = vld [vmem:[#allocation6 + $0xe60] ss:$20 sps:$4 sm:$0xff]  }
 0x41a   :  { %v15336_v25 = vpack.c.bf16 %v6479_v38, %v6479_v38  ;;  %10018 = vmatpush1.bf16.msra.mxu0 %v14335_v59  ;;  %v14391_v59 = vld [vmem:[#allocation6 + $0xbe4] ss:$20 sps:$4 sm:$0xff]   ;;  %v14397_v38 = vld [vmem:[#allocation6 + $0xbbc] ss:$20 sps:$4 sm:$0xff]  }
 0x41b   :  { %10059 = vmatpush1.bf16.msra.mxu1 %v14338_v32  ;;  %10019 = vmatprep.subr.bf16.mxu0 %v14343_v22  ;;  %v14394_v32 = vld [vmem:[#allocation6 + $0xe64] ss:$20 sps:$4 sm:$0xff]   ;;  %v14389_v22 = vld [vmem:[#allocation6 + $0xbe0] ss:$20 sps:$4 sm:$0xff]  }
 0x41c   :  { %10086 = vmatprep.mubr.bf16.mxu1 %v15336_v25  ;;  %10060 = vmatprep.subr.bf16.mxu1 %v14346_v50  ;;  %v14400_v50 = vld [vmem:[#allocation6 + $0xe3c] ss:$20 sps:$4 sm:$0xff]  }
 0x41e   :  { %10020 = vmatpush1.bf16.msra.mxu0 %v14341_v30  ;;  %v14395_v30 = vld [vmem:[#allocation6 + $0xbb8] ss:$20 sps:$4 sm:$0xff]  }
 0x41f   :  { %10061 = vmatpush1.bf16.msra.mxu1 %v14344_v31  ;;  %10021 = vmatprep.subr.bf16.mxu0 %v14349_v51  ;;  %v14398_v31 = vld [vmem:[#allocation6 + $0xe38] ss:$20 sps:$4 sm:$0xff]   ;;  %v14403_v51 = vld [vmem:[#allocation6 + $0xb94] ss:$20 sps:$4 sm:$0xff]  }
 0x420   :  { %10062 = vmatprep.subr.bf16.mxu1 %v14352_v33  ;;  %v14406_v33 = vld [vmem:[#allocation6 + $0xe14] ss:$20 sps:$4 sm:$0xff]  }
 0x422   :  { %10022 = vmatpush1.bf16.msra.mxu0 %v14347_v34  ;;  %v14401_v34 = vld [vmem:[#allocation6 + $0xb90] ss:$20 sps:$4 sm:$0xff]  }
 0x423   :  { %10063 = vmatpush1.bf16.msra.mxu1 %v14350_v2  ;;  %10023 = vmatprep.subr.bf16.mxu0 %v14355_v29  ;;  %v14404_v2 = vld [vmem:[#allocation6 + $0xe10] ss:$20 sps:$4 sm:$0xff]   ;;  %v14409_v29 = vld [vmem:[#allocation6 + $0xb6c] ss:$20 sps:$4 sm:$0xff]  }
 0x424   :  { %10064 = vmatprep.subr.bf16.mxu1 %v14358_v52  ;;  %v6261_v52 = vadd.f32 %v15328_v27, %v15312_v47  ;;  %v14421_v47 = vld [vmem:[#allocation6 + $0x101c] ss:$20 sps:$4 sm:$0xff]  }
 0x426   :  { %10024 = vmatpush1.bf16.msra.mxu0 %v14353_v60  ;;  %v14412_v60 = vld [vmem:[#allocation6 + $0xdec] ss:$20 sps:$4 sm:$0xff]  }
 0x427   :  { %10065 = vmatpush1.bf16.msra.mxu1 %v14356_v42  ;;  %10025 = vmatprep.subr.bf16.mxu0 %v14361_v43  ;;  %v14407_v42 = vld [vmem:[#allocation6 + $0xb68] ss:$20 sps:$4 sm:$0xff]  }
 0x428   :  { %10066 = vmatprep.subr.bf16.mxu1 %v14364_v46  ;;  %v14410_v43 = vld [vmem:[#allocation6 + $0xde8] ss:$20 sps:$4 sm:$0xff]   ;;  %v14415_v46 = vld [vmem:[#allocation6 + $0xb44] ss:$20 sps:$4 sm:$0xff]  }
 0x42a   :  { %10026 = vmatpush1.bf16.msra.mxu0 %v14359_v28  ;;  %v6302_v28 = vadd.f32 %v15331_v13, %v6261_v52  ;;  %v14422_v13 = vld [vmem:[#allocation6 + $0x120] ss:$20 sps:$4 sm:$0xff]   ;;  %v14443_v52 = vld [vmem:[#allocation6 + $0xf78] ss:$20 sps:$4 sm:$0xff]  }
 0x42b   :  { %10067 = vmatpush1.bf16.msra.mxu1 %v14362_v48  ;;  %10027 = vmatprep.subr.bf16.mxu0 %v14367_v53  ;;  %v14418_v48 = vld [vmem:[#allocation6 + $0xdc4] ss:$20 sps:$4 sm:$0xff]   ;;  %v14413_v53 = vld [vmem:[#allocation6 + $0xb40] ss:$20 sps:$4 sm:$0xff]  }
 0x42c   :  { %10068 = vmatprep.subr.bf16.mxu1 %v14370_v54  ;;  %v6476_v54 = vmax.f32 %v15286_v16, 0.0  ;;  %v6478_v27 = vmax.f32 %v6302_v28, 0.0 }
 0x42e   :  { %10028 = vmatpush1.bf16.msra.mxu0 %v14365_v55  ;;  %v14416_v55 = vld [vmem:[#allocation6 + $0xdc0] ss:$20 sps:$4 sm:$0xff]  }
 0x42f   :  { %10069 = vmatpush1.bf16.msra.mxu1 %v14368_v56  ;;  %10029 = vmatprep.subr.bf16.mxu0 %v14373_v58  ;;  %v14424_v56 = vld [vmem:[#allocation6 + $0x124] ss:$20 sps:$4 sm:$0xff]  }
 0x430   :  { %10070 = vmatprep.subr.bf16.mxu1 %v14376_v61  ;;  %v14419_v58 = vld [vmem:[#allocation6 + $0x1018] ss:$20 sps:$4 sm:$0xff]   ;;  %v15351_v61 = vpack.c.bf16 %v6476_v54, %v6476_v54 }
 0x431   :  { %v15339_v4 = vpop.f32.mrf.mxu0 }
 0x432   :  { %v15341_v20 = vpop.f32.mrf.mxu1  ;;  %10030 = vmatpush2.bf16.msra.mxu0 %v14371_v19  ;;  %v15353_v19 = vpack.c.bf16 %v6478_v27, %v6478_v27  ;;  %v14466_v27 = vld [vmem:[#allocation6 + $0xc] ss:$20 sps:$4 sm:$0xff]  }
 0x433   :  { %10071 = vmatpush2.bf16.msra.mxu1 %v14374_v62  ;;  %v15343_v8 = vpop.f32.mrf.mxu0  ;;  %10031 = vmatprep.subr.bf16.mxu0 %v14379_v14  ;;  %v14427_v62 = vld [vmem:[#allocation6 + $0xff4] ss:$20 sps:$4 sm:$0xff]   ;;  %v14430_v14 = vld [vmem:[#allocation6 + $0xfc] ss:$20 sps:$4 sm:$0xff]  }
 0x434   :  { %v15345_v18 = vpop.f32.mrf.mxu1  ;;  %10072 = vmatprep.subr.bf16.mxu1 %v14382_v3 }
 0x435   :  { %v12589_v7 = vpop.f32.mrf.mxu0 }
 0x436   :  { %v12611_v11 = vpop.f32.mrf.mxu1  ;;  %10032 = vmatpush2.bf16.msra.mxu0 %v14377_v26  ;;  %v14425_v26 = vld [vmem:[#allocation6 + $0xff0] ss:$20 sps:$4 sm:$0xff]   ;;  %v14433_v7 = vld [vmem:[#allocation6 + $0xfcc] ss:$20 sps:$4 sm:$0xff]  }
 0x437   :  { %10073 = vmatpush2.bf16.msra.mxu1 %v14380_v9  ;;  %v12590_v15 = vpop.f32.mrf.mxu0  ;;  %10033 = vmatprep.subr.bf16.mxu0 %v14385_v6  ;;  %v14436_v11 = vld [vmem:[#allocation6 + $0xd4] ss:$20 sps:$4 sm:$0xff]  }
 0x438   :  { %v12612_v24 = vpop.f32.mrf.mxu1  ;;  %10074 = vmatprep.subr.bf16.mxu1 %v14388_v10  ;;  %v14428_v10 = vld [vmem:[#allocation6 + $0xf8] ss:$20 sps:$4 sm:$0xff]  }
 0x43a   :  { %10034 = vmatpush2.bf16.msra.mxu0 %v14383_v12 }
 0x43b   :  { %10075 = vmatpush2.bf16.msra.mxu1 %v14386_v17  ;;  %10035 = vmatprep.subr.bf16.mxu0 %v14391_v59  ;;  %v15044_v17 = vmov 0   ;;  %v14431_v59 = vld [vmem:[#allocation6 + $0xfc8] ss:$20 sps:$4 sm:$0xff]  }
 0x43c   :  { %10076 = vmatprep.subr.bf16.mxu1 %v14394_v32  ;;  %v14434_v32 = vld [vmem:[#allocation6 + $0xd0] ss:$20 sps:$4 sm:$0xff]  }
 0x43e   :  { %10036 = vmatpush2.bf16.msra.mxu0 %v14389_v22  ;;  %v14439_v22 = vld [vmem:[#allocation6 + $0xfa4] ss:$20 sps:$4 sm:$0xff]  }
 0x43f   :  { %10077 = vmatpush2.bf16.msra.mxu1 %v14392_v63  ;;  %10037 = vmatprep.subr.bf16.mxu0 %v14397_v38  ;;  %v14442_v38 = vld [vmem:[#allocation6 + $0xac] ss:$20 sps:$4 sm:$0xff]  }
 0x440   :  { %10078 = vmatprep.subr.bf16.mxu1 %v14400_v50  ;;  %v1058_v50 = vrot.slane %v15314_v39, %v15214_v49  ;;  %v14446_v39 = vld [vmem:[#allocation6 + $0x80] ss:$20 sps:$4 sm:$0xff]  }
 0x442   :  { %10038 = vmatpush2.bf16.msra.mxu0 %v14395_v30  ;;  %v12588_v30 = vadd.f32 %v15343_v8, %v15339_v4  ;;  %v14454_v4 = vld [vmem:[#allocation6 + $0x5c] ss:$20 sps:$4 sm:$0xff]  }
 0x443   :  { %10079 = vmatpush2.bf16.msra.mxu1 %v14398_v31  ;;  %10039 = vmatprep.subr.bf16.mxu0 %v14403_v51  ;;  %v14437_v31 = vld [vmem:[#allocation6 + $0xfa0] ss:$20 sps:$4 sm:$0xff]   ;;  %v14440_v51 = vld [vmem:[#allocation6 + $0xa8] ss:$20 sps:$4 sm:$0xff]  }
 0x444   :  { %10080 = vmatprep.subr.bf16.mxu1 %v14406_v33  ;;  %v14445_v33 = vld [vmem:[#allocation6 + $0xf7c] ss:$20 sps:$4 sm:$0xff]  }
 0x446   :  { %10040 = vmatpush2.bf16.msra.mxu0 %v14401_v34  ;;  %v14448_v34 = vld [vmem:[#allocation6 + $0x84] ss:$20 sps:$4 sm:$0xff]  }
 0x447   :  { %10081 = vmatpush2.bf16.msra.mxu1 %v14404_v2  ;;  %10041 = vmatprep.subr.bf16.mxu0 %v14409_v29  ;;  %v6343_v2 = vadd.f32 %v12588_v30, %v1058_v50  ;;  %v12610_v29 = vadd.f32 %v15345_v18, %v15341_v20  ;;  %v14460_v20 = vld [vmem:[#allocation6 + $0x34] ss:$20 sps:$4 sm:$0xff]   ;;  %v14493_v50 = vld [vmem:[#allocation6 + $0x1c4] ss:$20 sps:$4 sm:$0xff]  }
 0x448   :  { %10082 = vmatprep.subr.bf16.mxu1 %v14412_v60  ;;  %v14455_v18 = vld [vmem:[#allocation6 + $0xf28] ss:$20 sps:$4 sm:$0xff]   ;;  %v14494_v30 = vld [vmem:[#allocation6 + $0x300] ss:$20 sps:$4 sm:$0xff]  }
 0x449   :  { %v6383_v8 = vadd.f32 %v12610_v29, %v6343_v2  ;;  %v14497_v2 = vld [vmem:[#allocation6 + $0x198] ss:$20 sps:$4 sm:$0xff]   ;;  %v14508_v29 = vld [vmem:[#allocation6 + $0x2b4] ss:$20 sps:$4 sm:$0xff]  }
 0x44a   :  { %10042 = vmatpush2.bf16.msra.mxu0 %v14407_v42  ;;  %v14451_v42 = vld [vmem:[#allocation6 + $0xf54] ss:$20 sps:$4 sm:$0xff]  }
 0x44b   :  { %10083 = vmatpush2.bf16.msra.mxu1 %v14410_v43  ;;  %10043 = vmatprep.subr.bf16.mxu0 %v14415_v46  ;;  %v14449_v43 = vld [vmem:[#allocation6 + $0xf50] ss:$20 sps:$4 sm:$0xff]  }
 0x44c   :  { %10084 = vmatprep.subr.bf16.mxu1 %v14418_v48  ;;  %v14452_v48 = vld [vmem:[#allocation6 + $0x58] ss:$20 sps:$4 sm:$0xff]  }
 0x44e   :  { %10044 = vmatpush2.bf16.msra.mxu0 %v14413_v53  ;;  %v14457_v53 = vld [vmem:[#allocation6 + $0xf2c] ss:$20 sps:$4 sm:$0xff]  }
 0x44f   :  { %10085 = vmatpush2.bf16.msra.mxu1 %v14416_v55  ;;  %10095 = vmatprep.subr.bf16.mxu0 %v14421_v47  ;;  %v14458_v55 = vld [vmem:[#allocation6 + $0x30] ss:$20 sps:$4 sm:$0xff]  }
 0x450   :  { %10136 = vmatprep.subr.bf16.mxu1 %v14424_v56  ;;  %v14463_v47 = vld [vmem:[#allocation6 + $0xf04] ss:$20 sps:$4 sm:$0xff]   ;;  %v14461_v56 = vld [vmem:[#allocation6 + $0xf00] ss:$20 sps:$4 sm:$0xff]  }
 0x451   :  { %v12630_v16 = vpop.f32.mrf.mxu0  ;;  %10046 = vmatmul.mubr.bf16.vlgmr.msra.gmra.mxu0 %v15351_v61 }
 0x452   :  { %v12652_v3 = vpop.f32.mrf.mxu1  ;;  %10087 = vmatmul.mubr.bf16.vlgmr.msra.gmra.mxu1 %v15353_v19  ;;  %10096 = vmatpush1.bf16.msra.mxu0 %v14419_v58 }
 0x453   :  { %10137 = vmatpush1.bf16.msra.mxu1 %v14422_v13  ;;  %10168 = vmatprep.mubr.bf16.mxu1 %v15276_v44  ;;  %v12631_v9 = vpop.f32.mrf.mxu0  ;;  %v14464_v13 = vld [vmem:[#allocation6 + $0x8] ss:$20 sps:$4 sm:$0xff]  }
 0x454   :  { %v12653_v6 = vpop.f32.mrf.mxu1  ;;  %10097 = vmatprep.subr.bf16.mxu0 %v14427_v62  ;;  %10138 = vmatprep.subr.bf16.mxu1 %v14430_v14  ;;  %v12632_v60 = vadd.f32 %v12631_v9, %v12630_v16  ;;  %v14472_v62 = vld [vmem:[#allocation6 + $0x3a4] ss:$20 sps:$4 sm:$0xff]   ;;  %v14470_v16 = vld [vmem:[#allocation6 + $0x3a0] ss:$20 sps:$4 sm:$0xff]   ;;  %v14478_v9 = vld [vmem:[#allocation6 + $0x37c] ss:$20 sps:$4 sm:$0xff]  }
 0x455   :  { %v12633_v12 = vpop.f32.mrf.mxu0  ;;  %10127 = vmatprep.mubr.bf16.mxu0 %v15044_v17  ;;  %v12654_v28 = vadd.f32 %v12653_v6, %v12652_v3  ;;  %v14469_v14 = vld [vmem:[#allocation6 + $0x264] ss:$20 sps:$4 sm:$0xff]   ;;  %v14475_v6 = vld [vmem:[#allocation6 + $0x23c] ss:$20 sps:$4 sm:$0xff]  }
 0x456   :  { %v12655_v15 = vpop.f32.mrf.mxu1  ;;  %10098 = vmatpush1.bf16.msra.mxu0 %v14425_v26  ;;  %v6423_v46 = vadd.f32 %v12632_v60, %v6383_v8  ;;  %v14467_v26 = vld [vmem:[#allocation6 + $0x260] ss:$20 sps:$4 sm:$0xff]   ;;  %v14506_v60 = vld [vmem:[#allocation6 + $0x2b0] ss:$20 sps:$4 sm:$0xff]   ;;  %v14512_v8 = vld [vmem:[#allocation6 + $0x288] ss:$20 sps:$4 sm:$0xff]  }
 0x457   :  { %10139 = vmatpush1.bf16.msra.mxu1 %v14428_v10  ;;  %v12634_v24 = vpop.f32.mrf.mxu0  ;;  %10099 = vmatprep.subr.bf16.mxu0 %v14433_v7  ;;  %v14476_v10 = vld [vmem:[#allocation6 + $0x378] ss:$20 sps:$4 sm:$0xff]   ;;  %v14481_v12 = vld [vmem:[#allocation6 + $0x214] ss:$20 sps:$4 sm:$0xff]   ;;  %v14482_v15 = vld [vmem:[#allocation6 + $0x350] ss:$20 sps:$4 sm:$0xff]  }
 0x458   :  { %v12656_v63 = vpop.f32.mrf.mxu1  ;;  %10140 = vmatprep.subr.bf16.mxu1 %v14436_v11  ;;  %v6463_v54 = vadd.f32 %v12654_v28, %v6423_v46  ;;  %v14473_v7 = vld [vmem:[#allocation6 + $0x238] ss:$20 sps:$4 sm:$0xff]   ;;  %v14484_v11 = vld [vmem:[#allocation6 + $0x354] ss:$20 sps:$4 sm:$0xff]   ;;  %v7118_v46 = vld [vmem:[#allocation7] sm:$0x1f] }
 0x459   :  { %v14490_v24 = vld [vmem:[#allocation6 + $0x32c] ss:$20 sps:$4 sm:$0xff]   ;;  %v14485_v63 = vld [vmem:[#allocation6 + $0x1e8] ss:$20 sps:$4 sm:$0xff]   ;;  %v14517_v28 = vld [vmem:[#allocation6 + $0x4e4] ss:$20 sps:$4 sm:$0xff]  }
 0x45a   :  { %10100 = vmatpush1.bf16.msra.mxu0 %v14431_v59  ;;  %v6480_v58 = vmax.f32 %v6463_v54, 0.0  ;;  %v14479_v59 = vld [vmem:[#allocation6 + $0x210] ss:$20 sps:$4 sm:$0xff]   ;;  %v7127_v54 = vrot.slane %v7118_v46, %v15165_v40  ;;  %v14532_v40 = vld [vmem:[#allocation6 + $0x5d4] ss:$20 sps:$4 sm:$0xff]  }
 0x45b   :  { %10141 = vmatpush1.bf16.msra.mxu1 %v14434_v32  ;;  %10101 = vmatprep.subr.bf16.mxu0 %v14439_v22  ;;  %v14487_v32 = vld [vmem:[#allocation6 + $0x1ec] ss:$20 sps:$4 sm:$0xff]   ;;  %v14488_v22 = vld [vmem:[#allocation6 + $0x328] ss:$20 sps:$4 sm:$0xff]  }
 0x45c   :  { %10142 = vmatprep.subr.bf16.mxu1 %v14442_v38  ;;  %v15365_v3 = vpack.c.bf16 %v6480_v58, %v6480_v58  ;;  %v14496_v38 = vld [vmem:[#allocation6 + $0x304] ss:$20 sps:$4 sm:$0xff]  }
 0x45e   :  { %10102 = vmatpush1.bf16.msra.mxu0 %v14437_v31  ;;  %v14491_v31 = vld [vmem:[#allocation6 + $0x1c0] ss:$20 sps:$4 sm:$0xff]  }
 0x45f   :  { %10143 = vmatpush1.bf16.msra.mxu1 %v14440_v51  ;;  %10103 = vmatprep.subr.bf16.mxu0 %v14445_v33  ;;  %v14502_v51 = vld [vmem:[#allocation6 + $0x2dc] ss:$20 sps:$4 sm:$0xff]  }
 0x460   :  { %10144 = vmatprep.subr.bf16.mxu1 %v14448_v34  ;;  %v14499_v33 = vld [vmem:[#allocation6 + $0x19c] ss:$20 sps:$4 sm:$0xff]   ;;  %v14500_v34 = vld [vmem:[#allocation6 + $0x2d8] ss:$20 sps:$4 sm:$0xff]  }
 0x462   :  { %10104 = vmatpush1.bf16.msra.mxu0 %v14443_v52  ;;  %v14505_v52 = vld [vmem:[#allocation6 + $0x174] ss:$20 sps:$4 sm:$0xff]  }
 0x463   :  { %10145 = vmatpush1.bf16.msra.mxu1 %v14446_v39  ;;  %10105 = vmatprep.subr.bf16.mxu0 %v14451_v42  ;;  %v14503_v39 = vld [vmem:[#allocation6 + $0x170] ss:$20 sps:$4 sm:$0xff]   ;;  %v14514_v42 = vld [vmem:[#allocation6 + $0x28c] ss:$20 sps:$4 sm:$0xff]  }
 0x464   :  { %10146 = vmatprep.subr.bf16.mxu1 %v14454_v4  ;;  %v14511_v4 = vld [vmem:[#allocation6 + $0x14c] ss:$20 sps:$4 sm:$0xff]  }
 0x466   :  { %10106 = vmatpush1.bf16.msra.mxu0 %v14449_v43  ;;  %v14509_v43 = vld [vmem:[#allocation6 + $0x148] ss:$20 sps:$4 sm:$0xff]  }
 0x467   :  { %10147 = vmatpush1.bf16.msra.mxu1 %v14452_v48  ;;  %10107 = vmatprep.subr.bf16.mxu0 %v14457_v53  ;;  %v14520_v48 = vld [vmem:[#allocation6 + $0x624] ss:$20 sps:$4 sm:$0xff]   ;;  %v7123_v53 = vrot.slane %v7118_v46, %v15162_v35 }
 0x468   :  { %10148 = vmatprep.subr.bf16.mxu1 %v14460_v20  ;;  %v14515_v20 = vld [vmem:[#allocation6 + $0x4e0] ss:$20 sps:$4 sm:$0xff]   ;;  %v14568_v46 = vld [vmem:[#allocation6 + $0x8a4] ss:$20 sps:$4 sm:$0xff]  }
 0x46a   :  { %10108 = vmatpush1.bf16.msra.mxu0 %v14455_v18  ;;  %v14518_v18 = vld [vmem:[#allocation6 + $0x620] ss:$20 sps:$4 sm:$0xff]  }
 0x46b   :  { %10149 = vmatpush1.bf16.msra.mxu1 %v14458_v55  ;;  %10109 = vmatprep.subr.bf16.mxu0 %v14463_v47  ;;  %v14523_v55 = vld [vmem:[#allocation6 + $0x4bc] ss:$20 sps:$4 sm:$0xff]  }
 0x46c   :  { %10150 = vmatprep.subr.bf16.mxu1 %v14466_v27  ;;  %v14526_v47 = vld [vmem:[#allocation6 + $0x5fc] ss:$20 sps:$4 sm:$0xff]  }
 0x46e   :  { %10110 = vmatpush1.bf16.msra.mxu0 %v14461_v56 }
 0x46f   :  { %10151 = vmatpush1.bf16.msra.mxu1 %v14464_v13  ;;  %10177 = vmatprep.subr.bf16.mxu0 %v14472_v62  ;;  %v14521_v13 = vld [vmem:[#allocation6 + $0x4b8] ss:$20 sps:$4 sm:$0xff]  }
 0x470   :  { %10152 = vmatprep.subr.bf16.mxu1 %v14469_v14  ;;  %v14524_v62 = vld [vmem:[#allocation6 + $0x5f8] ss:$20 sps:$4 sm:$0xff]   ;;  %v14529_v14 = vld [vmem:[#allocation6 + $0x494] ss:$20 sps:$4 sm:$0xff]  }
 0x471   :  { %10128 = vmatmul.mubr.bf16.vlgmr.msra.gmra.mxu0 %v15365_v3 }
 0x472   :  { %10178 = vmatpush1.bf16.msra.mxu0 %v14470_v16  ;;  %10209 = vmatprep.mubr.bf16.mxu0 %v15278_v45 }
 0x473   :  { %10153 = vmatpush2.bf16.msra.mxu1 %v14467_v26  ;;  %10179 = vmatprep.subr.bf16.mxu0 %v14478_v9 }
 0x474   :  { %10154 = vmatprep.subr.bf16.mxu1 %v14475_v6 }
 0x476   :  { %10180 = vmatpush1.bf16.msra.mxu0 %v14476_v10 }
 0x477   :  { %10155 = vmatpush2.bf16.msra.mxu1 %v14473_v7  ;;  %10181 = vmatprep.subr.bf16.mxu0 %v14484_v11  ;;  %v14527_v11 = vld [vmem:[#allocation6 + $0x490] ss:$20 sps:$4 sm:$0xff]  }
 0x478   :  { %10156 = vmatprep.subr.bf16.mxu1 %v14481_v12 }
 0x47a   :  { %10182 = vmatpush1.bf16.msra.mxu0 %v14482_v15  ;;  %v14530_v15 = vld [vmem:[#allocation6 + $0x5d0] ss:$20 sps:$4 sm:$0xff]  }
 0x47b   :  { %10157 = vmatpush2.bf16.msra.mxu1 %v14479_v59  ;;  %10183 = vmatprep.subr.bf16.mxu0 %v14490_v24  ;;  %v14535_v59 = vld [vmem:[#allocation6 + $0x46c] ss:$20 sps:$4 sm:$0xff]  }
 0x47c   :  { %10158 = vmatprep.subr.bf16.mxu1 %v14487_v32  ;;  %v14538_v32 = vld [vmem:[#allocation6 + $0x5ac] ss:$20 sps:$4 sm:$0xff]  }
 0x47e   :  { %10184 = vmatpush1.bf16.msra.mxu0 %v14488_v22  ;;  %v14533_v22 = vld [vmem:[#allocation6 + $0x468] ss:$20 sps:$4 sm:$0xff]  }
 0x47f   :  { %10159 = vmatpush2.bf16.msra.mxu1 %v14485_v63  ;;  %10185 = vmatprep.subr.bf16.mxu0 %v14496_v38  ;;  %v14536_v63 = vld [vmem:[#allocation6 + $0x5a8] ss:$20 sps:$4 sm:$0xff]   ;;  %v14541_v38 = vld [vmem:[#allocation6 + $0x444] ss:$20 sps:$4 sm:$0xff]  }
 0x480   :  { %10160 = vmatprep.subr.bf16.mxu1 %v14493_v50  ;;  %v14544_v50 = vld [vmem:[#allocation6 + $0x584] ss:$20 sps:$4 sm:$0xff]  }
 0x482   :  { %10186 = vmatpush1.bf16.msra.mxu0 %v14494_v30  ;;  %v14539_v30 = vld [vmem:[#allocation6 + $0x440] ss:$20 sps:$4 sm:$0xff]  }
 0x483   :  { %10161 = vmatpush2.bf16.msra.mxu1 %v14491_v31  ;;  %10187 = vmatprep.subr.bf16.mxu0 %v14502_v51  ;;  %v14542_v31 = vld [vmem:[#allocation6 + $0x580] ss:$20 sps:$4 sm:$0xff]   ;;  %v14547_v51 = vld [vmem:[#allocation6 + $0x41c] ss:$20 sps:$4 sm:$0xff]  }
 0x484   :  { %10162 = vmatprep.subr.bf16.mxu1 %v14499_v33  ;;  %v14550_v33 = vld [vmem:[#allocation6 + $0x55c] ss:$20 sps:$4 sm:$0xff]  }
 0x486   :  { %10188 = vmatpush1.bf16.msra.mxu0 %v14500_v34  ;;  %v14545_v34 = vld [vmem:[#allocation6 + $0x418] ss:$20 sps:$4 sm:$0xff]  }
 0x487   :  { %10163 = vmatpush2.bf16.msra.mxu1 %v14497_v2  ;;  %10189 = vmatprep.subr.bf16.mxu0 %v14508_v29  ;;  %v14548_v2 = vld [vmem:[#allocation6 + $0x558] ss:$20 sps:$4 sm:$0xff]   ;;  %v14553_v29 = vld [vmem:[#allocation6 + $0x3f4] ss:$20 sps:$4 sm:$0xff]  }
 0x488   :  { %10164 = vmatprep.subr.bf16.mxu1 %v14505_v52  ;;  %v14556_v52 = vld [vmem:[#allocation6 + $0x534] ss:$20 sps:$4 sm:$0xff]  }
 0x48a   :  { %10190 = vmatpush1.bf16.msra.mxu0 %v14506_v60  ;;  %v14551_v60 = vld [vmem:[#allocation6 + $0x3f0] ss:$20 sps:$4 sm:$0xff]  }
 0x48b   :  { %10165 = vmatpush2.bf16.msra.mxu1 %v14503_v39  ;;  %10191 = vmatprep.subr.bf16.mxu0 %v14514_v42  ;;  %v14554_v39 = vld [vmem:[#allocation6 + $0x530] ss:$20 sps:$4 sm:$0xff]   ;;  %v14559_v42 = vld [vmem:[#allocation6 + $0x3cc] ss:$20 sps:$4 sm:$0xff]  }
 0x48c   :  { %10166 = vmatprep.subr.bf16.mxu1 %v14511_v4  ;;  %v14562_v4 = vld [vmem:[#allocation6 + $0x50c] ss:$20 sps:$4 sm:$0xff]  }
 0x48e   :  { %10192 = vmatpush1.bf16.msra.mxu0 %v14512_v8  ;;  %v14557_v8 = vld [vmem:[#allocation6 + $0x3c8] ss:$20 sps:$4 sm:$0xff]  }
 0x48f   :  { %10167 = vmatpush2.bf16.msra.mxu1 %v14509_v43  ;;  %10193 = vmatprep.subr.bf16.mxu0 %v14517_v28  ;;  %v14560_v43 = vld [vmem:[#allocation6 + $0x508] ss:$20 sps:$4 sm:$0xff]   ;;  %v14565_v28 = vld [vmem:[#allocation6 + $0x764] ss:$20 sps:$4 sm:$0xff]  }
 0x490   :  { %10218 = vmatprep.subr.bf16.mxu1 %v14520_v48  ;;  %v14566_v48 = vld [vmem:[#allocation6 + $0x8a0] ss:$20 sps:$4 sm:$0xff]  }
 0x491   :  { %v9883_v27 = vpop.f32.mrf.mxu0 }
 0x492   :  { %v9884_v56 = vadd.f32 %v9883_v27, %v7123_v53  ;;  %v9924_v58 = vpop.f32.mrf.mxu1  ;;  %10169 = vmatmul.mubr.bf16.vlgmr.msra.gmra.mxu1 %v15296_v36  ;;  %10194 = vmatpush2.bf16.msra.mxu0 %v14515_v20  ;;  %v14563_v53 = vld [vmem:[#allocation6 + $0x760] ss:$20 sps:$4 sm:$0xff]   ;;  %v14574_v20 = vld [vmem:[#allocation6 + $0x87c] ss:$20 sps:$4 sm:$0xff]  }
 0x493   :  { %10219 = vmatpush1.bf16.msra.mxu1 %v14518_v18  ;;  %10250 = vmatprep.mubr.bf16.mxu1 %v15300_v21  ;;  %v9885_v35 = vpop.f32.mrf.mxu0  ;;  %v14571_v18 = vld [vmem:[#allocation6 + $0x73c] ss:$20 sps:$4 sm:$0xff]   ;;  %v14577_v27 = vld [vmem:[#allocation6 + $0x714] ss:$20 sps:$4 sm:$0xff]  }
 0x494   :  { %v15373_v16 = vadd.f32 %v9924_v58, %v9884_v56  ;;  %v9886_v26 = vadd.f32 %v9885_v35, %v7127_v54  ;;  %v9926_v9 = vpop.f32.mrf.mxu1  ;;  %10195 = vmatprep.subr.bf16.mxu0 %v14523_v55  ;;  %10220 = vmatprep.subr.bf16.mxu1 %v14526_v47  ;;  %v14572_v54 = vld [vmem:[#allocation6 + $0x878] ss:$20 sps:$4 sm:$0xff]   ;;  %v14580_v47 = vld [vmem:[#allocation6 + $0x854] ss:$20 sps:$4 sm:$0xff]   ;;  %v14578_v56 = vld [vmem:[#allocation6 + $0x850] ss:$20 sps:$4 sm:$0xff]  }
 0x495   :  { %v9887_v6 = vpop.f32.mrf.mxu0  ;;  %v14569_v55 = vld [vmem:[#allocation6 + $0x738] ss:$20 sps:$4 sm:$0xff]   ;;  %v14575_v58 = vld [vmem:[#allocation6 + $0x710] ss:$20 sps:$4 sm:$0xff]  }
 0x496   :  { %v15375_v10 = vadd.f32 %v9926_v9, %v9886_v26  ;;  %v9928_v7 = vpop.f32.mrf.mxu1  ;;  %10196 = vmatpush2.bf16.msra.mxu0 %v14521_v13  ;;  %v14586_v13 = vld [vmem:[#allocation6 + $0x82c] ss:$20 sps:$4 sm:$0xff]   ;;  %v14592_v26 = vld [vmem:[#allocation6 + $0x804] ss:$20 sps:$4 sm:$0xff]  }
 0x497   :  { %10221 = vmatpush1.bf16.msra.mxu1 %v14524_v62  ;;  %v9888_v12 = vpop.f32.mrf.mxu0  ;;  %10197 = vmatprep.subr.bf16.mxu0 %v14529_v14  ;;  %v14583_v35 = vld [vmem:[#allocation6 + $0x6ec] ss:$20 sps:$4 sm:$0xff]   ;;  %v14584_v62 = vld [vmem:[#allocation6 + $0x828] ss:$20 sps:$4 sm:$0xff]   ;;  %v14589_v9 = vld [vmem:[#allocation6 + $0x6c4] ss:$20 sps:$4 sm:$0xff]  }
 0x498   :  { %v9929_v24 = vpop.f32.mrf.mxu1  ;;  %10222 = vmatprep.subr.bf16.mxu1 %v14532_v40  ;;  %v14581_v14 = vld [vmem:[#allocation6 + $0x6e8] ss:$20 sps:$4 sm:$0xff]   ;;  %v14590_v40 = vld [vmem:[#allocation6 + $0x800] ss:$20 sps:$4 sm:$0xff]   ;;  %v14596_v12 = vld [vmem:[#allocation6 + $0x7d8] ss:$20 sps:$4 sm:$0xff]  }
 0x499   :  { %v14587_v6 = vld [vmem:[#allocation6 + $0x6c0] ss:$20 sps:$4 sm:$0xff]   ;;  %v14598_v7 = vld [vmem:[#allocation6 + $0x7dc] ss:$20 sps:$4 sm:$0xff]  }
 0x49a   :  { %10198 = vmatpush2.bf16.msra.mxu0 %v14527_v11  ;;  %v14595_v11 = vld [vmem:[#allocation6 + $0x69c] ss:$20 sps:$4 sm:$0xff]   ;;  %v14601_v24 = vld [vmem:[#allocation6 + $0x674] ss:$20 sps:$4 sm:$0xff]  }
 0x49b   :  { %10223 = vmatpush1.bf16.msra.mxu1 %v14530_v15  ;;  %10199 = vmatprep.subr.bf16.mxu0 %v14535_v59  ;;  %v14593_v15 = vld [vmem:[#allocation6 + $0x698] ss:$20 sps:$4 sm:$0xff]   ;;  %v14604_v59 = vld [vmem:[#allocation6 + $0x7b4] ss:$20 sps:$4 sm:$0xff]  }
 0x49c   :  { %10224 = vmatprep.subr.bf16.mxu1 %v14538_v32  ;;  %v14602_v32 = vld [vmem:[#allocation6 + $0x7b0] ss:$20 sps:$4 sm:$0xff]  }
 0x49e   :  { %10200 = vmatpush2.bf16.msra.mxu0 %v14533_v22  ;;  %v14599_v22 = vld [vmem:[#allocation6 + $0x670] ss:$20 sps:$4 sm:$0xff]  }
 0x49f   :  { %10225 = vmatpush1.bf16.msra.mxu1 %v14536_v63  ;;  %10201 = vmatprep.subr.bf16.mxu0 %v14541_v38  ;;  %v14610_v63 = vld [vmem:[#allocation6 + $0x78c] ss:$20 sps:$4 sm:$0xff]  }
 0x4a0   :  { %10226 = vmatprep.subr.bf16.mxu1 %v14544_v50  ;;  %v14607_v38 = vld [vmem:[#allocation6 + $0x64c] ss:$20 sps:$4 sm:$0xff]   ;;  %v14608_v50 = vld [vmem:[#allocation6 + $0x788] ss:$20 sps:$4 sm:$0xff]  }
 0x4a2   :  { %10202 = vmatpush2.bf16.msra.mxu0 %v14539_v30  ;;  %v14605_v30 = vld [vmem:[#allocation6 + $0x648] ss:$20 sps:$4 sm:$0xff]  }
 0x4a3   :  { %10227 = vmatpush1.bf16.msra.mxu1 %v14542_v31  ;;  %10203 = vmatprep.subr.bf16.mxu0 %v14547_v51  ;;  %v14613_v31 = vld [vmem:[#allocation6 + $0x9e4] ss:$20 sps:$4 sm:$0xff]  }
 0x4a4   :  { %10228 = vmatprep.subr.bf16.mxu1 %v14550_v33  ;;  %v14616_v51 = vld [vmem:[#allocation6 + $0xb24] ss:$20 sps:$4 sm:$0xff]   ;;  %v14611_v33 = vld [vmem:[#allocation6 + $0x9e0] ss:$20 sps:$4 sm:$0xff]  }
 0x4a6   :  { %10204 = vmatpush2.bf16.msra.mxu0 %v14545_v34  ;;  %v14614_v34 = vld [vmem:[#allocation6 + $0xb20] ss:$20 sps:$4 sm:$0xff]  }
 0x4a7   :  { %10229 = vmatpush1.bf16.msra.mxu1 %v14548_v2  ;;  %10205 = vmatprep.subr.bf16.mxu0 %v14553_v29  ;;  %v14619_v2 = vld [vmem:[#allocation6 + $0x9bc] ss:$20 sps:$4 sm:$0xff]  }
 0x4a8   :  { %10230 = vmatprep.subr.bf16.mxu1 %v14556_v52  ;;  %v14622_v29 = vld [vmem:[#allocation6 + $0xafc] ss:$20 sps:$4 sm:$0xff]  }
 0x4aa   :  { %10206 = vmatpush2.bf16.msra.mxu0 %v14551_v60 }
 0x4ab   :  { %10231 = vmatpush1.bf16.msra.mxu1 %v14554_v39  ;;  %10207 = vmatprep.subr.bf16.mxu0 %v14559_v42  ;;  %v14617_v42 = vld [vmem:[#allocation6 + $0x9b8] ss:$20 sps:$4 sm:$0xff]  }
 0x4ac   :  { %10232 = vmatprep.subr.bf16.mxu1 %v14562_v4 }
 0x4ae   :  { %10208 = vmatpush2.bf16.msra.mxu0 %v14557_v8  ;;  %v14620_v8 = vld [vmem:[#allocation6 + $0xaf8] ss:$20 sps:$4 sm:$0xff]  }
 0x4af   :  { %10233 = vmatpush1.bf16.msra.mxu1 %v14560_v43  ;;  %10259 = vmatprep.subr.bf16.mxu0 %v14568_v46  ;;  %v14625_v43 = vld [vmem:[#allocation6 + $0x994] ss:$20 sps:$4 sm:$0xff]  }
 0x4b0   :  { %10234 = vmatprep.subr.bf16.mxu1 %v14565_v28 }
 0x4b1   :  { %10210 = vmatmul.mubr.bf16.vlgmr.msra.gmra.mxu0 %v15298_v37 }
 0x4b2   :  { %10260 = vmatpush1.bf16.msra.mxu0 %v14566_v48  ;;  %10291 = vmatprep.mubr.bf16.mxu0 %v15303_v23 }
 0x4b3   :  { %10235 = vmatpush2.bf16.msra.mxu1 %v14563_v53  ;;  %10261 = vmatprep.subr.bf16.mxu0 %v14574_v20  ;;  %v14628_v53 = vld [vmem:[#allocation6 + $0xad4] ss:$20 sps:$4 sm:$0xff]  }
 0x4b4   :  { %10236 = vmatprep.subr.bf16.mxu1 %v14571_v18 }
 0x4b6   :  { %10262 = vmatpush1.bf16.msra.mxu0 %v14572_v54  ;;  %v14623_v54 = vld [vmem:[#allocation6 + $0x990] ss:$20 sps:$4 sm:$0xff]  }
 0x4b7   :  { %10237 = vmatpush2.bf16.msra.mxu1 %v14569_v55  ;;  %10263 = vmatprep.subr.bf16.mxu0 %v14580_v47  ;;  %v14626_v47 = vld [vmem:[#allocation6 + $0xad0] ss:$20 sps:$4 sm:$0xff]  }
 0x4b8   :  { %10238 = vmatprep.subr.bf16.mxu1 %v14577_v27  ;;  %v14631_v27 = vld [vmem:[#allocation6 + $0x96c] ss:$20 sps:$4 sm:$0xff]  }
 0x4ba   :  { %10264 = vmatpush1.bf16.msra.mxu0 %v14578_v56 }
 0x4bb   :  { %10239 = vmatpush2.bf16.msra.mxu1 %v14575_v58  ;;  %10265 = vmatprep.subr.bf16.mxu0 %v14586_v13  ;;  %v14634_v58 = vld [vmem:[#allocation6 + $0xaac] ss:$20 sps:$4 sm:$0xff]   ;;  %v14632_v13 = vld [vmem:[#allocation6 + $0xaa8] ss:$20 sps:$4 sm:$0xff]  }
 0x4bc   :  { %10240 = vmatprep.subr.bf16.mxu1 %v14583_v35  ;;  %v14637_v35 = vld [vmem:[#allocation6 + $0x944] ss:$20 sps:$4 sm:$0xff]  }
 0x4be   :  { %10266 = vmatpush1.bf16.msra.mxu0 %v14584_v62  ;;  %v14640_v62 = vld [vmem:[#allocation6 + $0xa84] ss:$20 sps:$4 sm:$0xff]  }
 0x4bf   :  { %10241 = vmatpush2.bf16.msra.mxu1 %v14581_v14  ;;  %10267 = vmatprep.subr.bf16.mxu0 %v14592_v26  ;;  %v14635_v14 = vld [vmem:[#allocation6 + $0x940] ss:$20 sps:$4 sm:$0xff]  }
 0x4c0   :  { %10242 = vmatprep.subr.bf16.mxu1 %v14589_v9  ;;  %v14638_v26 = vld [vmem:[#allocation6 + $0xa80] ss:$20 sps:$4 sm:$0xff]   ;;  %v14643_v9 = vld [vmem:[#allocation6 + $0x91c] ss:$20 sps:$4 sm:$0xff]  }
 0x4c2   :  { %10268 = vmatpush1.bf16.msra.mxu0 %v14590_v40  ;;  %v14646_v40 = vld [vmem:[#allocation6 + $0xa5c] ss:$20 sps:$4 sm:$0xff]  }
 0x4c3   :  { %10243 = vmatpush2.bf16.msra.mxu1 %v14587_v6  ;;  %10269 = vmatprep.subr.bf16.mxu0 %v14598_v7  ;;  %v14641_v6 = vld [vmem:[#allocation6 + $0x918] ss:$20 sps:$4 sm:$0xff]  }
 0x4c4   :  { %10244 = vmatprep.subr.bf16.mxu1 %v14595_v11  ;;  %v14644_v7 = vld [vmem:[#allocation6 + $0xa58] ss:$20 sps:$4 sm:$0xff]   ;;  %v14649_v11 = vld [vmem:[#allocation6 + $0x8f4] ss:$20 sps:$4 sm:$0xff]  }
 0x4c6   :  { %10270 = vmatpush1.bf16.msra.mxu0 %v14596_v12  ;;  %v14652_v12 = vld [vmem:[#allocation6 + $0xa34] ss:$20 sps:$4 sm:$0xff]  }
 0x4c7   :  { %10245 = vmatpush2.bf16.msra.mxu1 %v14593_v15  ;;  %10271 = vmatprep.subr.bf16.mxu0 %v14604_v59  ;;  %v14647_v15 = vld [vmem:[#allocation6 + $0x8f0] ss:$20 sps:$4 sm:$0xff]  }
 0x4c8   :  { %10246 = vmatprep.subr.bf16.mxu1 %v14601_v24  ;;  %v14650_v59 = vld [vmem:[#allocation6 + $0xa30] ss:$20 sps:$4 sm:$0xff]   ;;  %v14655_v24 = vld [vmem:[#allocation6 + $0x8cc] ss:$20 sps:$4 sm:$0xff]  }
 0x4ca   :  { %10272 = vmatpush1.bf16.msra.mxu0 %v14602_v32  ;;  %v14658_v32 = vld [vmem:[#allocation6 + $0xa0c] ss:$20 sps:$4 sm:$0xff]  }
 0x4cb   :  { %10247 = vmatpush2.bf16.msra.mxu1 %v14599_v22  ;;  %10273 = vmatprep.subr.bf16.mxu0 %v14610_v63  ;;  %v14653_v22 = vld [vmem:[#allocation6 + $0x8c8] ss:$20 sps:$4 sm:$0xff]  }
 0x4cc   :  { %10248 = vmatprep.subr.bf16.mxu1 %v14607_v38  ;;  %v14656_v63 = vld [vmem:[#allocation6 + $0xa08] ss:$20 sps:$4 sm:$0xff]   ;;  %v14664_v38 = vld [vmem:[#allocation6 + $0xda4] ss:$20 sps:$4 sm:$0xff]  }
 0x4ce   :  { %10274 = vmatpush1.bf16.msra.mxu0 %v14608_v50  ;;  %v14661_v50 = vld [vmem:[#allocation6 + $0xc64] ss:$20 sps:$4 sm:$0xff]  }
 0x4cf   :  { %10249 = vmatpush2.bf16.msra.mxu1 %v14605_v30  ;;  %10275 = vmatprep.subr.bf16.mxu0 %v14613_v31  ;;  %v14662_v30 = vld [vmem:[#allocation6 + $0xda0] ss:$20 sps:$4 sm:$0xff]  }
 0x4d0   :  { %10300 = vmatprep.subr.bf16.mxu1 %v14616_v51  ;;  %v14659_v31 = vld [vmem:[#allocation6 + $0xc60] ss:$20 sps:$4 sm:$0xff]   ;;  %v14670_v51 = vld [vmem:[#allocation6 + $0xd7c] ss:$20 sps:$4 sm:$0xff]  }
 0x4d1   :  { %v9965_v52 = vpop.f32.mrf.mxu0 }
 0x4d2   :  { %v9966_v60 = vadd.f32 %v9965_v52, %v15373_v16  ;;  %v10006_v39 = vpop.f32.mrf.mxu1  ;;  %10251 = vmatmul.mubr.bf16.vlgmr.msra.gmra.mxu1 %v15322_v1  ;;  %10276 = vmatpush2.bf16.msra.mxu0 %v14611_v33  ;;  %v14667_v33 = vld [vmem:[#allocation6 + $0xc3c] ss:$20 sps:$4 sm:$0xff]   ;;  %v14673_v52 = vld [vmem:[#allocation6 + $0xc14] ss:$20 sps:$4 sm:$0xff]  }
 0x4d3   :  { %10301 = vmatpush1.bf16.msra.mxu1 %v14614_v34  ;;  %10332 = vmatprep.mubr.bf16.mxu1 %v15326_v5  ;;  %v9967_v4 = vpop.f32.mrf.mxu0  ;;  %v14668_v34 = vld [vmem:[#allocation6 + $0xd78] ss:$20 sps:$4 sm:$0xff]  }
 0x4d4   :  { %v15382_v46 = vadd.f32 %v10006_v39, %v9966_v60  ;;  %v9968_v28 = vadd.f32 %v9967_v4, %v15375_v10  ;;  %v10008_v48 = vpop.f32.mrf.mxu1  ;;  %10277 = vmatprep.subr.bf16.mxu0 %v14619_v2  ;;  %10302 = vmatprep.subr.bf16.mxu1 %v14622_v29  ;;  %v14629_v10 = vld [vmem:[#allocation6 + $0x968] ss:$20 sps:$4 sm:$0xff]   ;;  %v14665_v2 = vld [vmem:[#allocation6 + $0xc38] ss:$20 sps:$4 sm:$0xff]   ;;  %v14674_v60 = vld [vmem:[#allocation6 + $0xd50] ss:$20 sps:$4 sm:$0xff]  }
 0x4d5   :  { %v9969_v16 = vpop.f32.mrf.mxu0  ;;  %v14676_v29 = vld [vmem:[#allocation6 + $0xd54] ss:$20 sps:$4 sm:$0xff]   ;;  %v14671_v39 = vld [vmem:[#allocation6 + $0xc10] ss:$20 sps:$4 sm:$0xff]   ;;  %v14679_v4 = vld [vmem:[#allocation6 + $0xbec] ss:$20 sps:$4 sm:$0xff]  }
 0x4d6   :  { %v15385_v20 = vadd.f32 %v10008_v48, %v9968_v28  ;;  %v10010_v18 = vpop.f32.mrf.mxu1  ;;  %10278 = vmatpush2.bf16.msra.mxu0 %v14617_v42  ;;  %v14682_v42 = vld [vmem:[#allocation6 + $0xd2c] ss:$20 sps:$4 sm:$0xff]   ;;  %v14688_v28 = vld [vmem:[#allocation6 + $0xd04] ss:$20 sps:$4 sm:$0xff]  }
 0x4d7   :  { %10303 = vmatpush1.bf16.msra.mxu1 %v14620_v8  ;;  %v9970_v55 = vpop.f32.mrf.mxu0  ;;  %10279 = vmatprep.subr.bf16.mxu0 %v14625_v43  ;;  %v14680_v8 = vld [vmem:[#allocation6 + $0xd28] ss:$20 sps:$4 sm:$0xff]   ;;  %v14685_v48 = vld [vmem:[#allocation6 + $0xbc4] ss:$20 sps:$4 sm:$0xff]   ;;  %v14683_v16 = vld [vmem:[#allocation6 + $0xbc0] ss:$20 sps:$4 sm:$0xff]  }
 0x4d8   :  { %v10011_v56 = vpop.f32.mrf.mxu1  ;;  %10304 = vmatprep.subr.bf16.mxu1 %v14628_v53  ;;  %v14677_v43 = vld [vmem:[#allocation6 + $0xbe8] ss:$20 sps:$4 sm:$0xff]   ;;  %v14686_v53 = vld [vmem:[#allocation6 + $0xd00] ss:$20 sps:$4 sm:$0xff]   ;;  %v14692_v55 = vld [vmem:[#allocation6 + $0xcd8] ss:$20 sps:$4 sm:$0xff]  }
 0x4d9   :  { %v14694_v18 = vld [vmem:[#allocation6 + $0xcdc] ss:$20 sps:$4 sm:$0xff]   ;;  %v14697_v56 = vld [vmem:[#allocation6 + $0xb74] ss:$20 sps:$4 sm:$0xff]  }
 0x4da   :  { %10280 = vmatpush2.bf16.msra.mxu0 %v14623_v54  ;;  %v14691_v54 = vld [vmem:[#allocation6 + $0xb9c] ss:$20 sps:$4 sm:$0xff]  }
 0x4db   :  { %10305 = vmatpush1.bf16.msra.mxu1 %v14626_v47  ;;  %10281 = vmatprep.subr.bf16.mxu0 %v14631_v27  ;;  %v14689_v47 = vld [vmem:[#allocation6 + $0xb98] ss:$20 sps:$4 sm:$0xff]   ;;  %v14700_v27 = vld [vmem:[#allocation6 + $0xcb4] ss:$20 sps:$4 sm:$0xff]  }
 0x4dc   :  { %10306 = vmatprep.subr.bf16.mxu1 %v14634_v58  ;;  %v14698_v58 = vld [vmem:[#allocation6 + $0xcb0] ss:$20 sps:$4 sm:$0xff]  }
 0x4de   :  { %10282 = vmatpush2.bf16.msra.mxu0 %v14629_v10  ;;  %v14695_v10 = vld [vmem:[#allocation6 + $0xb70] ss:$20 sps:$4 sm:$0xff]  }
 0x4df   :  { %10307 = vmatpush1.bf16.msra.mxu1 %v14632_v13  ;;  %10283 = vmatprep.subr.bf16.mxu0 %v14637_v35  ;;  %v14706_v13 = vld [vmem:[#allocation6 + $0xc8c] ss:$20 sps:$4 sm:$0xff]  }
 0x4e0   :  { %10308 = vmatprep.subr.bf16.mxu1 %v14640_v62  ;;  %v14703_v35 = vld [vmem:[#allocation6 + $0xb4c] ss:$20 sps:$4 sm:$0xff]   ;;  %v14704_v62 = vld [vmem:[#allocation6 + $0xc88] ss:$20 sps:$4 sm:$0xff]  }
 0x4e2   :  { %10284 = vmatpush2.bf16.msra.mxu0 %v14635_v14  ;;  %v14701_v14 = vld [vmem:[#allocation6 + $0xb48] ss:$20 sps:$4 sm:$0xff]  }
 0x4e3   :  { %10309 = vmatpush1.bf16.msra.mxu1 %v14638_v26  ;;  %10285 = vmatprep.subr.bf16.mxu0 %v14643_v9  ;;  %v14709_v26 = vld [vmem:[#allocation6 + $0xee4] ss:$20 sps:$4 sm:$0xff]  }
 0x4e4   :  { %10310 = vmatprep.subr.bf16.mxu1 %v14646_v40  ;;  %v14712_v9 = vld [vmem:[#allocation6 + $0x1024] ss:$20 sps:$4 sm:$0xff]   ;;  %v14707_v40 = vld [vmem:[#allocation6 + $0xee0] ss:$20 sps:$4 sm:$0xff]  }
 0x4e6   :  { %10286 = vmatpush2.bf16.msra.mxu0 %v14641_v6  ;;  %v14710_v6 = vld [vmem:[#allocation6 + $0x1020] ss:$20 sps:$4 sm:$0xff]  }
 0x4e7   :  { %10311 = vmatpush1.bf16.msra.mxu1 %v14644_v7  ;;  %10287 = vmatprep.subr.bf16.mxu0 %v14649_v11  ;;  %v14715_v7 = vld [vmem:[#allocation6 + $0xebc] ss:$20 sps:$4 sm:$0xff]  }
 0x4e8   :  { %10312 = vmatprep.subr.bf16.mxu1 %v14652_v12  ;;  %v14718_v11 = vld [vmem:[#allocation6 + $0xffc] ss:$20 sps:$4 sm:$0xff]  }
 0x4ea   :  { %10288 = vmatpush2.bf16.msra.mxu0 %v14647_v15 }
 0x4eb   :  { %10313 = vmatpush1.bf16.msra.mxu1 %v14650_v59  ;;  %10289 = vmatprep.subr.bf16.mxu0 %v14655_v24  ;;  %v14713_v24 = vld [vmem:[#allocation6 + $0xeb8] ss:$20 sps:$4 sm:$0xff]  }
 0x4ec   :  { %10314 = vmatprep.subr.bf16.mxu1 %v14658_v32 }
 0x4ee   :  { %10290 = vmatpush2.bf16.msra.mxu0 %v14653_v22  ;;  %v14716_v22 = vld [vmem:[#allocation6 + $0xff8] ss:$20 sps:$4 sm:$0xff]  }
 0x4ef   :  { %10315 = vmatpush1.bf16.msra.mxu1 %v14656_v63  ;;  %10341 = vmatprep.subr.bf16.mxu0 %v14664_v38  ;;  %v14721_v63 = vld [vmem:[#allocation6 + $0xe94] ss:$20 sps:$4 sm:$0xff]  }
 0x4f0   :  { %10316 = vmatprep.subr.bf16.mxu1 %v14661_v50 }
 0x4f1   :  { %10292 = vmatmul.mubr.bf16.vlgmr.msra.gmra.mxu0 %v15324_v57 }
 0x4f2   :  { %10342 = vmatpush1.bf16.msra.mxu0 %v14662_v30  ;;  %10373 = vmatprep.mubr.bf16.mxu0 %v15336_v25 }
 0x4f3   :  { %10317 = vmatpush2.bf16.msra.mxu1 %v14659_v31  ;;  %10343 = vmatprep.subr.bf16.mxu0 %v14670_v51  ;;  %v14724_v31 = vld [vmem:[#allocation6 + $0xfd4] ss:$20 sps:$4 sm:$0xff]  }
 0x4f4   :  { %10318 = vmatprep.subr.bf16.mxu1 %v14667_v33 }
 0x4f6   :  { %10344 = vmatpush1.bf16.msra.mxu0 %v14668_v34  ;;  %v14719_v34 = vld [vmem:[#allocation6 + $0xe90] ss:$20 sps:$4 sm:$0xff]  }
 0x4f7   :  { %10319 = vmatpush2.bf16.msra.mxu1 %v14665_v2  ;;  %10345 = vmatprep.subr.bf16.mxu0 %v14676_v29  ;;  %v14722_v29 = vld [vmem:[#allocation6 + $0xfd0] ss:$20 sps:$4 sm:$0xff]  }
 0x4f8   :  { %10320 = vmatprep.subr.bf16.mxu1 %v14673_v52  ;;  %v14727_v52 = vld [vmem:[#allocation6 + $0xe6c] ss:$20 sps:$4 sm:$0xff]  }
 0x4fa   :  { %10346 = vmatpush1.bf16.msra.mxu0 %v14674_v60 }
 0x4fb   :  { %10321 = vmatpush2.bf16.msra.mxu1 %v14671_v39  ;;  %10347 = vmatprep.subr.bf16.mxu0 %v14682_v42  ;;  %v14730_v39 = vld [vmem:[#allocation6 + $0xfac] ss:$20 sps:$4 sm:$0xff]   ;;  %v14728_v42 = vld [vmem:[#allocation6 + $0xfa8] ss:$20 sps:$4 sm:$0xff]  }
 0x4fc   :  { %10322 = vmatprep.subr.bf16.mxu1 %v14679_v4  ;;  %v14736_v4 = vld [vmem:[#allocation6 + $0xf84] ss:$20 sps:$4 sm:$0xff]  }
 0x4fe   :  { %10348 = vmatpush1.bf16.msra.mxu0 %v14680_v8  ;;  %v14731_v8 = vld [vmem:[#allocation6 + $0xe40] ss:$20 sps:$4 sm:$0xff]  }
 0x4ff   :  { %10323 = vmatpush2.bf16.msra.mxu1 %v14677_v43  ;;  %10349 = vmatprep.subr.bf16.mxu0 %v14688_v28  ;;  %v14734_v43 = vld [vmem:[#allocation6 + $0xf80] ss:$20 sps:$4 sm:$0xff]   ;;  %v14739_v28 = vld [vmem:[#allocation6 + $0xe1c] ss:$20 sps:$4 sm:$0xff]  }
 0x500   :  { %10324 = vmatprep.subr.bf16.mxu1 %v14685_v48  ;;  %v14742_v48 = vld [vmem:[#allocation6 + $0xf5c] ss:$20 sps:$4 sm:$0xff]  }
 0x502   :  { %10350 = vmatpush1.bf16.msra.mxu0 %v14686_v53  ;;  %v14737_v53 = vld [vmem:[#allocation6 + $0xe18] ss:$20 sps:$4 sm:$0xff]  }
 0x503   :  { %10325 = vmatpush2.bf16.msra.mxu1 %v14683_v16  ;;  %10351 = vmatprep.subr.bf16.mxu0 %v14694_v18  ;;  %v14740_v16 = vld [vmem:[#allocation6 + $0xf58] ss:$20 sps:$4 sm:$0xff]   ;;  %v14745_v18 = vld [vmem:[#allocation6 + $0xdf4] ss:$20 sps:$4 sm:$0xff]  }
 0x504   :  { %10326 = vmatprep.subr.bf16.mxu1 %v14691_v54  ;;  %v14748_v54 = vld [vmem:[#allocation6 + $0xf34] ss:$20 sps:$4 sm:$0xff]  }
 0x506   :  { %10352 = vmatpush1.bf16.msra.mxu0 %v14692_v55  ;;  %v14743_v55 = vld [vmem:[#allocation6 + $0xdf0] ss:$20 sps:$4 sm:$0xff]  }
 0x507   :  { %10327 = vmatpush2.bf16.msra.mxu1 %v14689_v47  ;;  %10353 = vmatprep.subr.bf16.mxu0 %v14700_v27  ;;  %v14746_v47 = vld [vmem:[#allocation6 + $0xf30] ss:$20 sps:$4 sm:$0xff]   ;;  %v14751_v27 = vld [vmem:[#allocation6 + $0xdcc] ss:$20 sps:$4 sm:$0xff]  }
 0x508   :  { %10328 = vmatprep.subr.bf16.mxu1 %v14697_v56  ;;  %v14754_v56 = vld [vmem:[#allocation6 + $0xf0c] ss:$20 sps:$4 sm:$0xff]  }
 0x50a   :  { %10354 = vmatpush1.bf16.msra.mxu0 %v14698_v58  ;;  %v14749_v58 = vld [vmem:[#allocation6 + $0xdc8] ss:$20 sps:$4 sm:$0xff]  }
 0x50b   :  { %10329 = vmatpush2.bf16.msra.mxu1 %v14695_v10  ;;  %10355 = vmatprep.subr.bf16.mxu0 %v14706_v13  ;;  %v14752_v10 = vld [vmem:[#allocation6 + $0xf08] ss:$20 sps:$4 sm:$0xff]  }
 0x50c   :  { %10330 = vmatprep.subr.bf16.mxu1 %v14703_v35  ;;  %v14755_v13 = vld [vmem:[#allocation6 + $0x268] ss:$20 sps:$4 sm:$0xff]  }
 0x50d   :  { %v14756_v35 = vld [vmem:[#allocation6 + $0x4e8] ss:$20 sps:$4 sm:$0xff]  }
 0x50e   :  { %10356 = vmatpush1.bf16.msra.mxu0 %v14704_v62  ;;  %v14757_v62 = vld [vmem:[#allocation6 + $0x128] ss:$20 sps:$4 sm:$0xff]  }
 0x50f   :  { %10331 = vmatpush2.bf16.msra.mxu1 %v14701_v14  ;;  %10357 = vmatprep.subr.bf16.mxu0 %v14709_v26  ;;  %v14758_v14 = vld [vmem:[#allocation6 + $0x3a8] ss:$20 sps:$4 sm:$0xff]   ;;  %v14759_v26 = vld [vmem:[#allocation6 + $0x240] ss:$20 sps:$4 sm:$0xff]  }
 0x510   :  { %10382 = vmatprep.subr.bf16.mxu1 %v14712_v9 }
 0x511   :  { %v10047_v12 = vpop.f32.mrf.mxu0 }
 0x512   :  { %v10048_v15 = vadd.f32 %v10047_v12, %v15382_v46  ;;  %v10088_v59 = vpop.f32.mrf.mxu1  ;;  %10333 = vmatmul.mubr.bf16.vlgmr.msra.gmra.mxu1 %v15351_v61  ;;  %10358 = vmatpush2.bf16.msra.mxu0 %v14707_v40  ;;  %v14760_v40 = vld [vmem:[#allocation6 + $0x4c0] ss:$20 sps:$4 sm:$0xff]  }
 0x513   :  { %10383 = vmatpush1.bf16.msra.mxu1 %v14710_v6  ;;  %v10049_v32 = vpop.f32.mrf.mxu0  ;;  %10359 = vmatprep.subr.bf16.mxu0 %v14715_v7  ;;  %v14761_v7 = vld [vmem:[#allocation6 + $0x100] ss:$20 sps:$4 sm:$0xff]  }
 0x514   :  { %v15391_v38 = vadd.f32 %v10088_v59, %v10048_v15  ;;  %v10050_v50 = vadd.f32 %v10049_v32, %v15385_v20  ;;  %v10090_v30 = vpop.f32.mrf.mxu1  ;;  %10384 = vmatprep.subr.bf16.mxu1 %v14718_v11  ;;  %10414 = vmatprep.mubr.bf16.mxu1 %v15044_v17  ;;  %v14725_v20 = vld [vmem:[#allocation6 + $0xe68] ss:$20 sps:$4 sm:$0xff]   ;;  %v14733_v17 = vld [vmem:[#allocation6 + $0xe44] ss:$20 sps:$4 sm:$0xff]   ;;  %v14762_v12 = vld [vmem:[#allocation6 + $0x380] ss:$20 sps:$4 sm:$0xff]  }
 0x515   :  { %v10051_v46 = vpop.f32.mrf.mxu0  ;;  %v14763_v15 = vld [vmem:[#allocation6 + $0x218] ss:$20 sps:$4 sm:$0xff]  }
 0x516   :  { %v15395_v51 = vadd.f32 %v10090_v30, %v10050_v50  ;;  %v10092_v33 = vpop.f32.mrf.mxu1  ;;  %10360 = vmatpush2.bf16.msra.mxu0 %v14713_v24  ;;  %v14764_v24 = vld [vmem:[#allocation6 + $0x498] ss:$20 sps:$4 sm:$0xff]   ;;  %v14768_v50 = vld [vmem:[#allocation6 + $0x470] ss:$20 sps:$4 sm:$0xff]   ;;  %v14772_v46 = vld [vmem:[#allocation6 + $0x448] ss:$20 sps:$4 sm:$0xff]  }
 0x517   :  { %10385 = vmatpush1.bf16.msra.mxu1 %v14716_v22  ;;  %v10052_v2 = vpop.f32.mrf.mxu0  ;;  %10361 = vmatprep.subr.bf16.mxu0 %v14721_v63  ;;  %v14765_v22 = vld [vmem:[#allocation6 + $0xd8] ss:$20 sps:$4 sm:$0xff]   ;;  %v14769_v30 = vld [vmem:[#allocation6 + $0xb0] ss:$20 sps:$4 sm:$0xff]   ;;  %v14774_v33 = vld [vmem:[#allocation6 + $0x308] ss:$20 sps:$4 sm:$0xff]  }
 0x518   :  { %v10093_v60 = vpop.f32.mrf.mxu1  ;;  %10386 = vmatprep.subr.bf16.mxu1 %v14724_v31  ;;  %v14771_v31 = vld [vmem:[#allocation6 + $0x1c8] ss:$20 sps:$4 sm:$0xff]   ;;  %v14776_v2 = vld [vmem:[#allocation6 + $0x420] ss:$20 sps:$4 sm:$0xff]  }
 0x519   :  { %v14779_v60 = vld [vmem:[#allocation6 + $0x178] ss:$20 sps:$4 sm:$0xff]  }
 0x51a   :  { %10362 = vmatpush2.bf16.msra.mxu0 %v14719_v34  ;;  %v14775_v34 = vld [vmem:[#allocation6 + $0x1a0] ss:$20 sps:$4 sm:$0xff]  }
 0x51b   :  { %10387 = vmatpush1.bf16.msra.mxu1 %v14722_v29  ;;  %10363 = vmatprep.subr.bf16.mxu0 %v14727_v52  ;;  %v14777_v29 = vld [vmem:[#allocation6 + $0x60] ss:$20 sps:$4 sm:$0xff]  }
 0x51c   :  { %10388 = vmatprep.subr.bf16.mxu1 %v14730_v39  ;;  %v14778_v52 = vld [vmem:[#allocation6 + $0x2e0] ss:$20 sps:$4 sm:$0xff]   ;;  %v14780_v39 = vld [vmem:[#allocation6 + $0x3f8] ss:$20 sps:$4 sm:$0xff]  }
 0x51e   :  { %10364 = vmatpush2.bf16.msra.mxu0 %v14725_v20  ;;  %v14781_v20 = vld [vmem:[#allocation6 + $0x38] ss:$20 sps:$4 sm:$0xff]  }
 0x51f   :  { %10389 = vmatpush1.bf16.msra.mxu1 %v14728_v42  ;;  %10365 = vmatprep.subr.bf16.mxu0 %v14733_v17  ;;  %v14782_v42 = vld [vmem:[#allocation6 + $0x2b8] ss:$20 sps:$4 sm:$0xff]   ;;  %v14783_v17 = vld [vmem:[#allocation6 + $0x150] ss:$20 sps:$4 sm:$0xff]  }
 0x520   :  { %10390 = vmatprep.subr.bf16.mxu1 %v14736_v4  ;;  %v14784_v4 = vld [vmem:[#allocation6 + $0x3d0] ss:$20 sps:$4 sm:$0xff]  }
 0x522   :  { %10366 = vmatpush2.bf16.msra.mxu0 %v14731_v8  ;;  %v14785_v8 = vld [vmem:[#allocation6 + $0x10] ss:$20 sps:$4 sm:$0xff]  }
 0x523   :  { %10391 = vmatpush1.bf16.msra.mxu1 %v14734_v43  ;;  %10367 = vmatprep.subr.bf16.mxu0 %v14739_v28  ;;  %v14786_v43 = vld [vmem:[#allocation6 + $0x290] ss:$20 sps:$4 sm:$0xff]   ;;  %v14787_v28 = vld [vmem:[#allocation6 + $0x768] ss:$20 sps:$4 sm:$0xff]  }
 0x524   :  { %10392 = vmatprep.subr.bf16.mxu1 %v14742_v48  ;;  %v14788_v48 = vld [vmem:[#allocation6 + $0x9e8] ss:$20 sps:$4 sm:$0xff]  }
 0x526   :  { %10368 = vmatpush2.bf16.msra.mxu0 %v14737_v53  ;;  %v14789_v53 = vld [vmem:[#allocation6 + $0x628] ss:$20 sps:$4 sm:$0xff]  }
 0x527   :  { %10393 = vmatpush1.bf16.msra.mxu1 %v14740_v16  ;;  %10369 = vmatprep.subr.bf16.mxu0 %v14745_v18  ;;  %v14790_v16 = vld [vmem:[#allocation6 + $0x8a8] ss:$20 sps:$4 sm:$0xff]   ;;  %v14791_v18 = vld [vmem:[#allocation6 + $0x740] ss:$20 sps:$4 sm:$0xff]  }
 0x528   :  { %10394 = vmatprep.subr.bf16.mxu1 %v14748_v54  ;;  %v14792_v54 = vld [vmem:[#allocation6 + $0x9c0] ss:$20 sps:$4 sm:$0xff]  }
 0x52a   :  { %10370 = vmatpush2.bf16.msra.mxu0 %v14743_v55 }
 0x52b   :  { %10395 = vmatpush1.bf16.msra.mxu1 %v14746_v47  ;;  %10371 = vmatprep.subr.bf16.mxu0 %v14751_v27  ;;  %v14793_v47 = vld [vmem:[#allocation6 + $0x600] ss:$20 sps:$4 sm:$0xff]  }
 0x52c   :  { %10396 = vmatprep.subr.bf16.mxu1 %v14754_v56  ;;  %v14794_v27 = vld [vmem:[#allocation6 + $0x880] ss:$20 sps:$4 sm:$0xff]   ;;  %v14795_v56 = vld [vmem:[#allocation6 + $0x718] ss:$20 sps:$4 sm:$0xff]  }
 0x52e   :  { %10372 = vmatpush2.bf16.msra.mxu0 %v14749_v58 }
 0x52f   :  { %10397 = vmatpush1.bf16.msra.mxu1 %v14752_v10  ;;  %12658 = vmatprep.subr.bf16.mxu0 %v14755_v13  ;;  %v14796_v10 = vld [vmem:[#allocation6 + $0x998] ss:$20 sps:$4 sm:$0xff]  }
 0x530   :  { %12680 = vmatprep.subr.bf16.mxu1 %v14756_v35  ;;  %v14797_v13 = vld [vmem:[#allocation6 + $0x5d8] ss:$20 sps:$4 sm:$0xff]   ;;  %v14799_v35 = vld [vmem:[#allocation6 + $0x6f0] ss:$20 sps:$4 sm:$0xff]  }
 0x531   :  { %v10129_v9 = vpop.f32.mrf.mxu0  ;;  %10374 = vmatmul.mubr.bf16.vlgmr.msra.gmra.mxu0 %v15353_v19 }
 0x532   :  { %v15399_v6 = vadd.f32 %v10129_v9, %v15391_v38  ;;  %10415 = vmatmul.mubr.bf16.vlgmr.msra.gmra.mxu1 %v15365_v3  ;;  %12659 = vmatpush3.bf16.msra.mxu0 %v14757_v62  ;;  %v14766_v38 = vld [vmem:[#allocation6 + $0x358] ss:$20 sps:$4 sm:$0xff]   ;;  %v14804_v9 = vld [vmem:[#allocation6 + $0x948] ss:$20 sps:$4 sm:$0xff]  }
 0x533   :  { %10455 = vmatprep.mubr.bf16.mxu0 %v15276_v44  ;;  %12681 = vmatpush3.bf16.msra.mxu1 %v14758_v14  ;;  %v10131_v11 = vpop.f32.mrf.mxu0  ;;  %v14767_v44 = vld [vmem:[#allocation6 + $0x1f0] ss:$20 sps:$4 sm:$0xff]  }
 0x534   :  { %10495 = vmatprep.mubr.bf16.mxu1 %v15278_v45  ;;  %v15405_v59 = vadd.f32 %v10131_v11, %v15395_v51  ;;  %12660 = vmatprep.subr.bf16.mxu0 %v14759_v26  ;;  %v14770_v45 = vld [vmem:[#allocation6 + $0x330] ss:$20 sps:$4 sm:$0xff]   ;;  %v14773_v51 = vld [vmem:[#allocation6 + $0x88] ss:$20 sps:$4 sm:$0xff]   ;;  %v14807_v11 = vld [vmem:[#allocation6 + $0x6a0] ss:$20 sps:$4 sm:$0xff]  }
 0x535   :  { %v10133_v32 = vpop.f32.mrf.mxu0  ;;  %12682 = vmatprep.subr.bf16.mxu1 %v14760_v40  ;;  %v14801_v14 = vld [vmem:[#allocation6 + $0x5b0] ss:$20 sps:$4 sm:$0xff]   ;;  %v14803_v26 = vld [vmem:[#allocation6 + $0x6c8] ss:$20 sps:$4 sm:$0xff]  }
 0x536   :  { %12661 = vmatpush3.bf16.msra.mxu0 %v14761_v7  ;;  %v14805_v40 = vld [vmem:[#allocation6 + $0x588] ss:$20 sps:$4 sm:$0xff]   ;;  %v14811_v32 = vld [vmem:[#allocation6 + $0x678] ss:$20 sps:$4 sm:$0xff]  }
 0x537   :  { %12683 = vmatpush3.bf16.msra.mxu1 %v14762_v12  ;;  %v10134_v63 = vpop.f32.mrf.mxu0  ;;  %12662 = vmatprep.subr.bf16.mxu0 %v14763_v15  ;;  %v14806_v7 = vld [vmem:[#allocation6 + $0x808] ss:$20 sps:$4 sm:$0xff]   ;;  %v14808_v12 = vld [vmem:[#allocation6 + $0x920] ss:$20 sps:$4 sm:$0xff]  }
 0x538   :  { %12684 = vmatprep.subr.bf16.mxu1 %v14764_v24  ;;  %v14809_v15 = vld [vmem:[#allocation6 + $0x560] ss:$20 sps:$4 sm:$0xff]   ;;  %v14813_v63 = vld [vmem:[#allocation6 + $0x538] ss:$20 sps:$4 sm:$0xff]  }
 0x539   :  { %v14810_v24 = vld [vmem:[#allocation6 + $0x7e0] ss:$20 sps:$4 sm:$0xff]  }
 0x53a   :  { %12663 = vmatpush3.bf16.msra.mxu0 %v14765_v22  ;;  %v14812_v22 = vld [vmem:[#allocation6 + $0x8f8] ss:$20 sps:$4 sm:$0xff]  }
 0x53b   :  { %12685 = vmatpush3.bf16.msra.mxu1 %v14766_v38  ;;  %12664 = vmatprep.subr.bf16.mxu0 %v14767_v44  ;;  %v14814_v38 = vld [vmem:[#allocation6 + $0x7b8] ss:$20 sps:$4 sm:$0xff]   ;;  %v14815_v44 = vld [vmem:[#allocation6 + $0x650] ss:$20 sps:$4 sm:$0xff]  }
 0x53c   :  { %12686 = vmatprep.subr.bf16.mxu1 %v14768_v50  ;;  %v14816_v50 = vld [vmem:[#allocation6 + $0x8d0] ss:$20 sps:$4 sm:$0xff]  }
 0x53e   :  { %12665 = vmatpush3.bf16.msra.mxu0 %v14769_v30  ;;  %v14817_v30 = vld [vmem:[#allocation6 + $0x510] ss:$20 sps:$4 sm:$0xff]  }
 0x53f   :  { %12687 = vmatpush3.bf16.msra.mxu1 %v14770_v45  ;;  %12666 = vmatprep.subr.bf16.mxu0 %v14771_v31  ;;  %v14818_v45 = vld [vmem:[#allocation6 + $0x790] ss:$20 sps:$4 sm:$0xff]   ;;  %v14819_v31 = vld [vmem:[#allocation6 + $0xc68] ss:$20 sps:$4 sm:$0xff]  }
 0x540   :  { %12688 = vmatprep.subr.bf16.mxu1 %v14772_v46  ;;  %v15415_v46 = vld [vmem:[#allocation7] sm:$0x1f] }
 0x542   :  { %12667 = vmatpush3.bf16.msra.mxu0 %v14773_v51  ;;  %v7131_v51 = vrot.slane %v15415_v46, %v15188_v0 }
 0x543   :  { %12689 = vmatpush3.bf16.msra.mxu1 %v14774_v33  ;;  %12668 = vmatprep.subr.bf16.mxu0 %v14775_v34  ;;  %v14820_v33 = vld [vmem:[#allocation6 + $0xee8] ss:$20 sps:$4 sm:$0xff]   ;;  %v7135_v34 = vrot.slane %v15415_v46, %v15191_v41  ;;  %v14825_v41 = vld [vmem:[#allocation6 + $0xb00] ss:$20 sps:$4 sm:$0xff]  }
 0x544   :  { %12690 = vmatprep.subr.bf16.mxu1 %v14776_v2  ;;  %v14821_v2 = vld [vmem:[#allocation6 + $0xb28] ss:$20 sps:$4 sm:$0xff]  }
 0x546   :  { %12669 = vmatpush3.bf16.msra.mxu0 %v14777_v29  ;;  %v14822_v29 = vld [vmem:[#allocation6 + $0xda8] ss:$20 sps:$4 sm:$0xff]  }
 0x547   :  { %12691 = vmatpush3.bf16.msra.mxu1 %v14778_v52  ;;  %12670 = vmatprep.subr.bf16.mxu0 %v14779_v60  ;;  %v14823_v60 = vld [vmem:[#allocation6 + $0xc40] ss:$20 sps:$4 sm:$0xff]  }
 0x548   :  { %12692 = vmatprep.subr.bf16.mxu1 %v14780_v39 }
 0x54a   :  { %12671 = vmatpush3.bf16.msra.mxu0 %v14781_v20  ;;  %v14824_v20 = vld [vmem:[#allocation6 + $0xec0] ss:$20 sps:$4 sm:$0xff]  }
 0x54b   :  { %12693 = vmatpush3.bf16.msra.mxu1 %v14782_v42  ;;  %12672 = vmatprep.subr.bf16.mxu0 %v14783_v17 }
 0x54c   :  { %12694 = vmatprep.subr.bf16.mxu1 %v14784_v4  ;;  %v14826_v4 = vld [vmem:[#allocation6 + $0xd80] ss:$20 sps:$4 sm:$0xff]  }
 0x54e   :  { %12673 = vmatpush3.bf16.msra.mxu0 %v14785_v8  ;;  %v14827_v8 = vld [vmem:[#allocation6 + $0xc18] ss:$20 sps:$4 sm:$0xff]  }
 0x54f   :  { %12695 = vmatpush3.bf16.msra.mxu1 %v14786_v43  ;;  %12702 = vmatprep.subr.bf16.mxu0 %v14787_v28 }
 0x550   :  { %12724 = vmatprep.subr.bf16.mxu1 %v14788_v48  ;;  %v14829_v48 = vld [vmem:[#allocation6 + $0xad8] ss:$20 sps:$4 sm:$0xff]  }
 0x551   :  { %10456 = vmatmul.mubr.bf16.vlgmr.msra.gmra.mxu0 %v15296_v36 }
 0x552   :  { %v15408_v55 = vpop.f32.mrf.mxu1  ;;  %10496 = vmatmul.mubr.bf16.vlgmr.msra.gmra.mxu1 %v15298_v37  ;;  %12703 = vmatpush3.bf16.msra.mxu0 %v14789_v53  ;;  %v14798_v37 = vld [vmem:[#allocation6 + $0x858] ss:$20 sps:$4 sm:$0xff]  }
 0x553   :  { %10535 = vmatprep.mubr.bf16.mxu0 %v15300_v21  ;;  %12725 = vmatpush3.bf16.msra.mxu1 %v14790_v16  ;;  %v14800_v21 = vld [vmem:[#allocation6 + $0x970] ss:$20 sps:$4 sm:$0xff]   ;;  %v10171_v52 = vadd.f32 %v15408_v55, %v7131_v51  ;;  %v14830_v53 = vld [vmem:[#allocation6 + $0xd58] ss:$20 sps:$4 sm:$0xff]   ;;  %v14836_v55 = vld [vmem:[#allocation6 + $0xe48] ss:$20 sps:$4 sm:$0xff]  }
 0x554   :  { %10575 = vmatprep.mubr.bf16.mxu1 %v15303_v23  ;;  %v15413_v58 = vpop.f32.mrf.mxu1  ;;  %12704 = vmatprep.subr.bf16.mxu0 %v14791_v18  ;;  %v14802_v23 = vld [vmem:[#allocation6 + $0x830] ss:$20 sps:$4 sm:$0xff]  }
 0x555   :  { %12726 = vmatprep.subr.bf16.mxu1 %v14792_v54  ;;  %v10173_v0 = vadd.f32 %v15413_v58, %v7135_v34  ;;  %v14831_v16 = vld [vmem:[#allocation6 + $0xbf0] ss:$20 sps:$4 sm:$0xff]   ;;  %v14835_v54 = vld [vmem:[#allocation6 + $0xbc8] ss:$20 sps:$4 sm:$0xff]   ;;  %v14840_v58 = vld [vmem:[#allocation6 + $0xe20] ss:$20 sps:$4 sm:$0xff]  }
 0x556   :  { %v10174_v36 = vpop.f32.mrf.mxu1  ;;  %12705 = vmatpush3.bf16.msra.mxu0 %v14793_v47  ;;  %v14833_v18 = vld [vmem:[#allocation6 + $0xab0] ss:$20 sps:$4 sm:$0xff]   ;;  %v14837_v47 = vld [vmem:[#allocation6 + $0xa88] ss:$20 sps:$4 sm:$0xff]  }
 0x557   :  { %12727 = vmatpush3.bf16.msra.mxu1 %v14794_v27  ;;  %12706 = vmatprep.subr.bf16.mxu0 %v14795_v56  ;;  %v14838_v27 = vld [vmem:[#allocation6 + $0xd08] ss:$20 sps:$4 sm:$0xff]   ;;  %v14839_v56 = vld [vmem:[#allocation6 + $0xba0] ss:$20 sps:$4 sm:$0xff]   ;;  %v14861_v51 = vld [vmem:[#allocation6 + $0xfb0] ss:$20 sps:$4 sm:$0xff]  }
 0x558   :  { %v10175_v62 = vpop.f32.mrf.mxu1  ;;  %12728 = vmatprep.subr.bf16.mxu1 %v14796_v10  ;;  %v14841_v10 = vld [vmem:[#allocation6 + $0xa60] ss:$20 sps:$4 sm:$0xff]  }
 0x559   :  { %v14842_v36 = vld [vmem:[#allocation6 + $0xce0] ss:$20 sps:$4 sm:$0xff]   ;;  %v14846_v62 = vld [vmem:[#allocation6 + $0xcb8] ss:$20 sps:$4 sm:$0xff]  }
 0x55a   :  { %12707 = vmatpush3.bf16.msra.mxu0 %v14797_v13  ;;  %v14843_v13 = vld [vmem:[#allocation6 + $0xb78] ss:$20 sps:$4 sm:$0xff]   ;;  %v14863_v34 = vld [vmem:[#allocation9 + $0x58] sm:$0xff]  }
 0x55b   :  { %12729 = vmatpush3.bf16.msra.mxu1 %v14798_v37  ;;  %12708 = vmatprep.subr.bf16.mxu0 %v14799_v35  ;;  %v14844_v37 = vld [vmem:[#allocation6 + $0xdf8] ss:$20 sps:$4 sm:$0xff]  }
 0x55c   :  { %12730 = vmatprep.subr.bf16.mxu1 %v14800_v21  ;;  %v14845_v35 = vld [vmem:[#allocation6 + $0xa38] ss:$20 sps:$4 sm:$0xff]   ;;  %v14847_v21 = vld [vmem:[#allocation6 + $0xb50] ss:$20 sps:$4 sm:$0xff]  }
 0x55e   :  { %12709 = vmatpush3.bf16.msra.mxu0 %v14801_v14  ;;  %v14848_v14 = vld [vmem:[#allocation6 + $0xdd0] ss:$20 sps:$4 sm:$0xff]  }
 0x55f   :  { %12731 = vmatpush3.bf16.msra.mxu1 %v14802_v23  ;;  %12710 = vmatprep.subr.bf16.mxu0 %v14803_v26  ;;  %v14849_v23 = vld [vmem:[#allocation6 + $0xa10] ss:$20 sps:$4 sm:$0xff]  }
 0x560   :  { %12732 = vmatprep.subr.bf16.mxu1 %v14804_v9  ;;  %v14850_v26 = vld [vmem:[#allocation6 + $0xc90] ss:$20 sps:$4 sm:$0xff]  }
 0x561   :  { %v14851_v9 = vld [vmem:[#allocation9 + $0x78] sm:$0xff]  }
 0x562   :  { %12711 = vmatpush3.bf16.msra.mxu0 %v14805_v40  ;;  %v10704_v40 = vmax.f32 %v15405_v59, 0.0  ;;  %v14856_v59 = vld [vmem:[#allocation9 + $0x30] sm:$0xff]  }
 0x563   :  { %12733 = vmatpush3.bf16.msra.mxu1 %v14806_v7  ;;  %12712 = vmatprep.subr.bf16.mxu0 %v14807_v11  ;;  %v14852_v7 = vld [vmem:[#allocation6 + $0x1028] ss:$20 sps:$4 sm:$0xff]   ;;  %v15045_v11 = vmov 0.0  }
 0x564   :  { %12734 = vmatprep.subr.bf16.mxu1 %v14808_v12  ;;  %v14853_v12 = vld [vmem:[#allocation9 + $0x38] sm:$0xff]  }
 0x566   :  { %12713 = vmatpush3.bf16.msra.mxu0 %v14809_v15  ;;  %v14854_v15 = vld [vmem:[#allocation9 + $0x70] sm:$0xff]  }
 0x567   :  { %12735 = vmatpush3.bf16.msra.mxu1 %v14810_v24  ;;  %12714 = vmatprep.subr.bf16.mxu0 %v14811_v32  ;;  %v10709_v24 = vpack.c.bf16 %v10704_v40, %v10704_v40  ;;  %v14895_v40 = vld [vmem:[#allocation9 + $0x118] sm:$0xff]  }
 0x568   :  { %12736 = vmatprep.subr.bf16.mxu1 %v14812_v22  ;;  %v14855_v22 = vld [vmem:[#allocation6 + $0x1000] ss:$20 sps:$4 sm:$0xff]  }
 0x56a   :  { %12715 = vmatpush3.bf16.msra.mxu0 %v14813_v63 }
 0x56b   :  { %12737 = vmatpush3.bf16.msra.mxu1 %v14814_v38  ;;  %12716 = vmatprep.subr.bf16.mxu0 %v14815_v44  ;;  %v14857_v44 = vld [vmem:[#allocation9 + $0x68] sm:$0xff]  }
 0x56c   :  { %12738 = vmatprep.subr.bf16.mxu1 %v14816_v50 }
 0x56e   :  { %12717 = vmatpush3.bf16.msra.mxu0 %v14817_v30  ;;  %v14859_v30 = vld [vmem:[#allocation9 + $0x28] sm:$0xff]  }
 0x56f   :  { %12739 = vmatpush3.bf16.msra.mxu1 %v14818_v45  ;;  %12746 = vmatprep.subr.bf16.mxu0 %v14819_v31  ;;  %v14860_v31 = vld [vmem:[#allocation9 + $0x60] sm:$0xff]  }
 0x570   :  { %12768 = vmatprep.subr.bf16.mxu1 %v14820_v33  ;;  %v14862_v33 = vld [vmem:[#allocation9 + $0x20] sm:$0xff]  }
 0x571   :  { %v10211_v39 = vpop.f32.mrf.mxu0  ;;  %10536 = vmatmul.mubr.bf16.vlgmr.msra.gmra.mxu0 %v15322_v1  ;;  %v14828_v1 = vld [vmem:[#allocation6 + $0xe98] ss:$20 sps:$4 sm:$0xff]  }
 0x572   :  { %v15424_v42 = vadd.f32 %v10211_v39, %v10171_v52  ;;  %10576 = vmatmul.mubr.bf16.vlgmr.msra.gmra.mxu1 %v15324_v57  ;;  %12747 = vmatpush3.bf16.msra.mxu0 %v14821_v2  ;;  %v14864_v2 = vld [vmem:[#allocation6 + $0xf88] ss:$20 sps:$4 sm:$0xff]  }
 0x573   :  { %10615 = vmatprep.mubr.bf16.mxu0 %v15326_v5  ;;  %12769 = vmatpush3.bf16.msra.mxu1 %v14822_v29  ;;  %v10213_v17 = vpop.f32.mrf.mxu0  ;;  %v14832_v5 = vld [vmem:[#allocation6 + $0xe70] ss:$20 sps:$4 sm:$0xff]   ;;  %v14866_v52 = vld [vmem:[#allocation9 + $0x50] sm:$0xff]  }
 0x574   :  { %10655 = vmatprep.mubr.bf16.mxu1 %v15336_v25  ;;  %v15429_v43 = vadd.f32 %v10213_v17, %v10173_v0  ;;  %12748 = vmatprep.subr.bf16.mxu0 %v14823_v60  ;;  %v14834_v25 = vld [vmem:[#allocation6 + $0xd30] ss:$20 sps:$4 sm:$0xff]   ;;  %v14867_v60 = vld [vmem:[#allocation6 + $0xf60] ss:$20 sps:$4 sm:$0xff]   ;;  %v14870_v0 = vld [vmem:[#allocation6 + $0xf38] ss:$20 sps:$4 sm:$0xff]  }
 0x575   :  { %v10215_v28 = vpop.f32.mrf.mxu0  ;;  %12770 = vmatprep.subr.bf16.mxu1 %v14824_v20  ;;  %v14865_v29 = vld [vmem:[#allocation9 + $0x18] sm:$0xff]   ;;  %v14868_v39 = vld [vmem:[#allocation9 + $0x10] sm:$0xff]   ;;  %v14869_v20 = vld [vmem:[#allocation9 + $0x48] sm:$0xff]  }
 0x576   :  { %12749 = vmatpush3.bf16.msra.mxu0 %v14825_v41  ;;  %v14872_v41 = vld [vmem:[#allocation9 + $0x40] sm:$0xff]   ;;  %v14877_v28 = vld [vmem:[#allocation9 + $0xf0] sm:$0xff]  }
 0x577   :  { %12771 = vmatpush3.bf16.msra.mxu1 %v14826_v4  ;;  %v10216_v57 = vpop.f32.mrf.mxu0  ;;  %12750 = vmatprep.subr.bf16.mxu0 %v14827_v8  ;;  %v14873_v17 = vld [vmem:[#allocation6 + $0xf10] ss:$20 sps:$4 sm:$0xff]  }
 0x578   :  { %12772 = vmatprep.subr.bf16.mxu1 %v14828_v1  ;;  %v14874_v4 = vld [vmem:[#allocation9] sm:$0xff]   ;;  %v14875_v8 = vld [vmem:[#allocation9 + $0xf8] sm:$0xff]  }
 0x579   :  { %v14876_v1 = vld [vmem:[#allocation9 + $0xb8] sm:$0xff]  }
 0x57a   :  { %12751 = vmatpush3.bf16.msra.mxu0 %v14829_v48 }
 0x57b   :  { %12773 = vmatpush3.bf16.msra.mxu1 %v14830_v53  ;;  %12752 = vmatprep.subr.bf16.mxu0 %v14831_v16  ;;  %v14878_v53 = vld [vmem:[#allocation9 + $0xb0] sm:$0xff]  }
 0x57c   :  { %12774 = vmatprep.subr.bf16.mxu1 %v14832_v5  ;;  %v14879_v5 = vld [vmem:[#allocation9 + $0xe8] sm:$0xff]  }
 0x57e   :  { %12753 = vmatpush3.bf16.msra.mxu0 %v14833_v18  ;;  %v14880_v18 = vld [vmem:[#allocation9 + $0xa8] sm:$0xff]  }
 0x57f   :  { %12775 = vmatpush3.bf16.msra.mxu1 %v14834_v25  ;;  %12754 = vmatprep.subr.bf16.mxu0 %v14835_v54  ;;  %v14881_v54 = vld [vmem:[#allocation9 + $0xe0] sm:$0xff]  }
 0x580   :  { %12776 = vmatprep.subr.bf16.mxu1 %v14836_v55  ;;  %v14882_v55 = vld [vmem:[#allocation9 + $0xa0] sm:$0xff]  }
 0x582   :  { %12755 = vmatpush3.bf16.msra.mxu0 %v14837_v47  ;;  %v14883_v47 = vld [vmem:[#allocation9 + $0xd8] sm:$0xff]  }
 0x583   :  { %12777 = vmatpush3.bf16.msra.mxu1 %v14838_v27  ;;  %12756 = vmatprep.subr.bf16.mxu0 %v14839_v56  ;;  %v14885_v27 = vld [vmem:[#allocation9 + $0xd0] sm:$0xff]  }
 0x584   :  { %12778 = vmatprep.subr.bf16.mxu1 %v14840_v58  ;;  %v14886_v56 = vld [vmem:[#allocation9 + $0x90] sm:$0xff]   ;;  %v14887_v58 = vld [vmem:[#allocation9 + $0xc8] sm:$0xff]  }
 0x586   :  { %12757 = vmatpush3.bf16.msra.mxu0 %v14841_v10  ;;  %v14888_v10 = vld [vmem:[#allocation9 + $0x88] sm:$0xff]  }
 0x587   :  { %12779 = vmatpush3.bf16.msra.mxu1 %v14842_v36  ;;  %12758 = vmatprep.subr.bf16.mxu0 %v14843_v13  ;;  %v14889_v36 = vld [vmem:[#allocation9 + $0xc0] sm:$0xff]  }
 0x588   :  { %12780 = vmatprep.subr.bf16.mxu1 %v14844_v37  ;;  %v14890_v13 = vld [vmem:[#allocation9 + $0x80] sm:$0xff]  }
 0x58a   :  { %12759 = vmatpush3.bf16.msra.mxu0 %v14845_v35 }
 0x58b   :  { %12781 = vmatpush3.bf16.msra.mxu1 %v14846_v62  ;;  %12760 = vmatprep.subr.bf16.mxu0 %v14847_v21 }
 0x58c   :  { %12782 = vmatprep.subr.bf16.mxu1 %v14848_v14  ;;  %v14891_v14 = vld [vmem:[#allocation9 + $0x138] sm:$0xff]  }
 0x58e   :  { %12761 = vmatpush3.bf16.msra.mxu0 %v14849_v23  ;;  %v14892_v23 = vld [vmem:[#allocation9 + $0x130] sm:$0xff]  }
 0x58f   :  { %12783 = vmatpush3.bf16.msra.mxu1 %v14850_v26  ;;  %12852 = vmatprep.subr.bf16.mxu0 %v15045_v11  ;;  %v14893_v26 = vld [vmem:[#allocation9 + $0x128] sm:$0xff]  }
 0x590   :  { %12799 = vmatprep.subr.bf16.mxu1 %v14851_v9  ;;  %v14894_v9 = vld [vmem:[#allocation9 + $0x120] sm:$0xff]  }
 0x591   :  { %10616 = vmatmul.mubr.bf16.vlgmr.msra.gmra.mxu0 %v15351_v61 }
 0x592   :  { %v10252_v32 = vpop.f32.mrf.mxu1  ;;  %10656 = vmatmul.mubr.bf16.vlgmr.msra.gmra.mxu1 %v15353_v19  ;;  %12853 = vmatpush3.bf16.msra.mxu0 %v14852_v7  ;;  %v14858_v19 = vld [vmem:[#allocation6 + $0xfd8] ss:$20 sps:$4 sm:$0xff]  }
 0x593   :  { %v15436_v63 = vadd.f32 %v10252_v32, %v15424_v42  ;;  %12800 = vmatpush3.bf16.msra.mxu1 %v14853_v12  ;;  %11072 = vmatprep.mubr.bf16.mxu1 %v10709_v24  ;;  %v14871_v42 = vld [vmem:[#allocation9 + $0x8] sm:$0xff]   ;;  %v14896_v7 = vld [vmem:[#allocation9 + $0x110] sm:$0xff]  }
 0x594   :  { %v10254_v38 = vpop.f32.mrf.mxu1  ;;  %12854 = vmatprep.subr.bf16.mxu0 %v15045_v11  ;;  %12801 = vmatprep.subr.bf16.mxu1 %v14854_v15 }
 0x595   :  { %v15440_v50 = vadd.f32 %v10254_v38, %v15429_v43  ;;  %12868 = vmatprep.mubr.msk.bf16.mxu0 %vm15046_vm0, %v15045_v11  ;;  %v10703_v43 = vmax.f32 %v15399_v6, 0.0 }
 0x596   :  { %v10256_v61 = vpop.f32.mrf.mxu1  ;;  %12855 = vmatpush3.bf16.msra.mxu0 %v14855_v22  ;;  %v14897_v22 = vld [vmem:[#allocation9 + $0x108] sm:$0xff]  }
 0x597   :  { %12802 = vmatpush3.bf16.msra.mxu1 %v14856_v59  ;;  %12856 = vmatprep.subr.bf16.mxu0 %v15045_v11  ;;  %v10708_v48 = vpack.c.bf16 %v10703_v43, %v10703_v43 }
 0x598   :  { %v10257_v45 = vpop.f32.mrf.mxu1  ;;  %12803 = vmatprep.subr.bf16.mxu1 %v14857_v44 }
 0x59a   :  { %12857 = vmatpush3.bf16.msra.mxu0 %v14858_v19 }
 0x59b   :  { %12804 = vmatpush3.bf16.msra.mxu1 %v14859_v30  ;;  %12858 = vmatprep.subr.bf16.mxu0 %v15045_v11 }
 0x59c   :  { %12805 = vmatprep.subr.bf16.mxu1 %v14860_v31 }
 0x59e   :  { %12859 = vmatpush3.bf16.msra.mxu0 %v14861_v51 }
 0x59f   :  { %12806 = vmatpush3.bf16.msra.mxu1 %v14862_v33  ;;  %12860 = vmatprep.subr.bf16.mxu0 %v15045_v11 }
 0x5a0   :  { %12807 = vmatprep.subr.bf16.mxu1 %v14863_v34 }
 0x5a2   :  { %12861 = vmatpush3.bf16.msra.mxu0 %v14864_v2 }
 0x5a3   :  { %12808 = vmatpush3.bf16.msra.mxu1 %v14865_v29  ;;  %12862 = vmatprep.subr.bf16.mxu0 %v15045_v11 }
 0x5a4   :  { %12809 = vmatprep.subr.bf16.mxu1 %v14866_v52 }
 0x5a6   :  { %12863 = vmatpush3.bf16.msra.mxu0 %v14867_v60 }
 0x5a7   :  { %12810 = vmatpush3.bf16.msra.mxu1 %v14868_v39  ;;  %12864 = vmatprep.subr.bf16.mxu0 %v15045_v11 }
 0x5a8   :  { %12811 = vmatprep.subr.bf16.mxu1 %v14869_v20 }
 0x5aa   :  { %12865 = vmatpush3.bf16.msra.mxu0 %v14870_v0  ;;  %v7139_v0 = vrot.slane %v15415_v46, %v15214_v49 }
 0x5ab   :  { %12812 = vmatpush3.bf16.msra.mxu1 %v14871_v42  ;;  %12866 = vmatprep.subr.bf16.mxu0 %v15045_v11 }
 0x5ac   :  { %12813 = vmatprep.subr.bf16.mxu1 %v14872_v41 }
 0x5ae   :  { %12867 = vmatpush3.bf16.msra.mxu0 %v14873_v17 }
 0x5af   :  { %12814 = vmatpush3.bf16.msra.mxu1 %v14874_v4  ;;  %12821 = vmatprep.subr.bf16.mxu0 %v14875_v8 }
 0x5b0   :  { %12872 = vmatprep.subr.bf16.mxu1 %v15045_v11 }
 0x5b1   :  { %v10293_v57 = vpop.f32.mrf.mxu0  ;;  %12869 = vmatmul.mubr.bf16.vlgmr.msra.gmra.mxu0 %v15365_v3  ;;  %v14884_v3 = vld [vmem:[#allocation9 + $0x98] sm:$0xff]  }
 0x5b2   :  { %11073 = vmatmul.mubr.bf16.vlgmr.msra.gmra.mxu1 %v10708_v48  ;;  %12822 = vmatpush3.bf16.msra.mxu0 %v14876_v1  ;;  %v10294_v12 = vadd.f32 %v10293_v57, %v15436_v63  ;;  %v14898_v63 = vld [vmem:[#allocation9 + $0x100] sm:$0xff]  }
 0x5b3   :  { %v10295_v16 = vpop.f32.mrf.mxu0  ;;  %12823 = vmatprep.subr.bf16.mxu0 %v14877_v28  ;;  %12888 = vmatprep.mubr.msk.bf16.mxu1 %vm15046_vm0, %v15045_v11 }
 0x5b4   :  { %12873 = vmatpush3.bf16.msra.mxu1 %v14891_v14  ;;  %v10296_v15 = vadd.f32 %v10295_v16, %v15440_v50 }
 0x5b5   :  { %v10297_v6 = vpop.f32.mrf.mxu0  ;;  %12874 = vmatprep.subr.bf16.mxu1 %v15045_v11 }
 0x5b6   :  { %12824 = vmatpush3.bf16.msra.mxu0 %v14878_v53 }
 0x5b7   :  { %v10298_v25 = vpop.f32.mrf.mxu0  ;;  %12825 = vmatprep.subr.bf16.mxu0 %v14879_v5 }
 0x5b8   :  { %12875 = vmatpush3.bf16.msra.mxu1 %v14892_v23 }
 0x5b9   :  { %12876 = vmatprep.subr.bf16.mxu1 %v15045_v11 }
 0x5ba   :  { %12826 = vmatpush3.bf16.msra.mxu0 %v14880_v18 }
 0x5bb   :  { %12827 = vmatprep.subr.bf16.mxu0 %v14881_v54 }
 0x5bc   :  { %12877 = vmatpush3.bf16.msra.mxu1 %v14893_v26 }
 0x5bd   :  { %12878 = vmatprep.subr.bf16.mxu1 %v15045_v11 }
 0x5be   :  { %12828 = vmatpush3.bf16.msra.mxu0 %v14882_v55 }
 0x5bf   :  { %12829 = vmatprep.subr.bf16.mxu0 %v14883_v47 }
 0x5c0   :  { %12879 = vmatpush3.bf16.msra.mxu1 %v14894_v9 }
 0x5c1   :  { %12880 = vmatprep.subr.bf16.mxu1 %v15045_v11 }
 0x5c2   :  { %12830 = vmatpush3.bf16.msra.mxu0 %v14884_v3 }
 0x5c3   :  { %12831 = vmatprep.subr.bf16.mxu0 %v14885_v27 }
 0x5c4   :  { %12881 = vmatpush3.bf16.msra.mxu1 %v14895_v40 }
 0x5c5   :  { %12882 = vmatprep.subr.bf16.mxu1 %v15045_v11 }
 0x5c6   :  { %12832 = vmatpush3.bf16.msra.mxu0 %v14886_v56 }
 0x5c7   :  { %12833 = vmatprep.subr.bf16.mxu0 %v14887_v58 }
 0x5c8   :  { %12883 = vmatpush3.bf16.msra.mxu1 %v14896_v7 }
 0x5c9   :  { %12884 = vmatprep.subr.bf16.mxu1 %v15045_v11 }
 0x5ca   :  { %12834 = vmatpush3.bf16.msra.mxu0 %v14888_v10 }
 0x5cb   :  { %12835 = vmatprep.subr.bf16.mxu0 %v14889_v36 }
 0x5cc   :  { %12885 = vmatpush3.bf16.msra.mxu1 %v14897_v22 }
 0x5cd   :  { %12886 = vmatprep.subr.bf16.mxu1 %v15045_v11 }
 0x5ce   :  { %12836 = vmatpush3.bf16.msra.mxu0 %v14890_v13 }
 0x5d0   :  { %12887 = vmatpush3.bf16.msra.mxu1 %v14898_v63 }
 0x5d2   :  { %v10334_v37 = vpop.f32.mrf.mxu1 }
 0x5d3   :  { %v10335_v24 = vadd.f32 %v10334_v37, %v10294_v12 }
 0x5d4   :  { %v10336_v35 = vpop.f32.mrf.mxu1 }
 0x5d5   :  { %v10337_v59 = vadd.f32 %v10336_v35, %v10296_v15 }
 0x5d6   :  { %v10338_v62 = vpop.f32.mrf.mxu1 }
 0x5d8   :  { %v10339_v21 = vpop.f32.mrf.mxu1 }
 0x5f1   :  { %v10375_v32 = vpop.f32.mrf.mxu0 }
 0x5f2   :  { %v10376_v38 = vadd.f32 %v10375_v32, %v10335_v24  ;;  %v10416_v44 = vpop.f32.mrf.mxu1 }
 0x5f3   :  { %v10377_v61 = vpop.f32.mrf.mxu0 }
 0x5f4   :  { %v10417_v19 = vadd.f32 %v10416_v44, %v10376_v38  ;;  %v10378_v30 = vadd.f32 %v10377_v61, %v10337_v59  ;;  %v10418_v45 = vpop.f32.mrf.mxu1  ;;  %v12529_v44 = vld [vmem:[#allocation10] ss:$0 sm:$0xff] }
 0x5f5   :  { %v10379_v31 = vpop.f32.mrf.mxu0 }
 0x5f6   :  { %v10419_v51 = vadd.f32 %v10418_v45, %v10378_v30  ;;  %v10420_v33 = vpop.f32.mrf.mxu1  ;;  %v10705_v34 = vmax.f32 %v10417_v19, 0.0 }
 0x5f7   :  { %v10380_v2 = vpop.f32.mrf.mxu0 }
 0x5f8   :  { %v10706_v50 = vmax.f32 %v10419_v51, 0.0  ;;  %v10421_v29 = vpop.f32.mrf.mxu1  ;;  %v10710_v60 = vpack.c.bf16 %v10705_v34, %v10705_v34 }
 0x5fa   :  { %v10711_v52 = vpack.c.bf16 %v10706_v50, %v10706_v50 }
 0x5fc   :  { %11112 = vmatprep.mubr.bf16.mxu0 %v10711_v52 }
 0x5fd   :  { %11113 = vmatmul.mubr.bf16.vlgmr.msra.gmra.mxu0 %v10710_v60 }
 0x611   :  { %v12674_v39 = vpop.f32.mrf.mxu0 }
 0x612   :  { %v12696_v20 = vpop.f32.mrf.mxu1 }
 0x613   :  { %v12675_v42 = vpop.f32.mrf.mxu0 }
 0x614   :  { %v12676_v11 = vadd.f32 %v12675_v42, %v12674_v39  ;;  %v12697_v41 = vpop.f32.mrf.mxu1 }
 0x615   :  { %v12698_v17 = vadd.f32 %v12697_v41, %v12696_v20  ;;  %v12677_v4 = vpop.f32.mrf.mxu0 }
 0x616   :  { %v10458_v8 = vadd.f32 %v12676_v11, %v7139_v0  ;;  %v12699_v43 = vpop.f32.mrf.mxu1 }
 0x617   :  { %v12678_v1 = vpop.f32.mrf.mxu0 }
 0x618   :  { %v10498_v28 = vadd.f32 %v12698_v17, %v10458_v8  ;;  %v12700_v48 = vpop.f32.mrf.mxu1 }
 0x631   :  { %v12718_v57 = vpop.f32.mrf.mxu0 }
 0x632   :  { %v12740_v53 = vpop.f32.mrf.mxu1 }
 0x633   :  { %v12719_v16 = vpop.f32.mrf.mxu0 }
 0x634   :  { %v12741_v5 = vpop.f32.mrf.mxu1  ;;  %v12720_v10 = vadd.f32 %v12719_v16, %v12718_v57 }
 0x635   :  { %v12721_v6 = vpop.f32.mrf.mxu0  ;;  %v12742_v13 = vadd.f32 %v12741_v5, %v12740_v53 }
 0x636   :  { %v12743_v18 = vpop.f32.mrf.mxu1  ;;  %v10538_v36 = vadd.f32 %v12720_v10, %v10498_v28 }
 0x637   :  { %v12722_v25 = vpop.f32.mrf.mxu0 }
 0x638   :  { %v12744_v54 = vpop.f32.mrf.mxu1  ;;  %v10578_v35 = vadd.f32 %v12742_v13, %v10538_v36 }
 0x651   :  { %v12762_v55 = vpop.f32.mrf.mxu0 }
 0x652   :  { %v12784_v49 = vpop.f32.mrf.mxu1 }
 0x653   :  { %v12763_v46 = vpop.f32.mrf.mxu0 }
 0x654   :  { %v12785_v47 = vpop.f32.mrf.mxu1  ;;  %v12764_v37 = vadd.f32 %v12763_v46, %v12762_v55 }
 0x655   :  { %v12765_v3 = vpop.f32.mrf.mxu0  ;;  %v12786_v21 = vadd.f32 %v12785_v47, %v12784_v49 }
 0x656   :  { %v12787_v27 = vpop.f32.mrf.mxu1  ;;  %v10618_v62 = vadd.f32 %v12764_v37, %v10578_v35 }
 0x657   :  { %v12766_v56 = vpop.f32.mrf.mxu0 }
 0x658   :  { %v12788_v58 = vpop.f32.mrf.mxu1  ;;  %v10658_v14 = vadd.f32 %v12786_v21, %v10618_v62 }
 0x671   :  { %v10697_v23 = vpop.f32.mrf.mxu0 }
 0x672   :  { %v10698_v26 = vadd.f32 %v10697_v23, %v10658_v14  ;;  %v12815_v9 = vpop.f32.mrf.mxu1 }
 0x673   :  { %v12870_v40 = vpop.f32.mrf.mxu0 }
 0x674   :  { %v10707_v7 = vmax.f32 %v10698_v26, 0.0  ;;  %v12816_v12 = vpop.f32.mrf.mxu1 }
 0x675   :  { %v12817_v15 = vadd.f32 %v12816_v12, %v12815_v9  ;;  %v10700_v24 = vpop.f32.mrf.mxu0 }
 0x676   :  { %v10712_v32 = vpack.c.bf16 %v10707_v7, %v10707_v7  ;;  %v12818_v22 = vpop.f32.mrf.mxu1 }
 0x677   :  { %v12871_v59 = vpop.f32.mrf.mxu0  ;;  %v11075_v30 = vadd.f32 %v12817_v15, %v12529_v44 }
 0x678   :  { %v12819_v38 = vpop.f32.mrf.mxu1  ;;  %12889 = vmatmul.mubr.bf16.vlgmr.msra.gmra.mxu1 %v10712_v32 }
 0x6bd   :  { %v12837_v61 = vpop.f32.mrf.mxu0 }
 0x6bf   :  { %v12838_v19 = vpop.f32.mrf.mxu0 }
 0x6c0   :  { %v12839_v45 = vadd.f32 %v12838_v19, %v12837_v61 }
 0x6c1   :  { %v12840_v31 = vpop.f32.mrf.mxu0 }
 0x6c2   :  { %v11115_v63 = vadd.f32 %v12839_v45, %v11075_v30 }
 0x6c3   :  { %v12841_v51 = vpop.f32.mrf.mxu0 }
 0x738   :  { %v11154_v33 = vpop.f32.mrf.mxu1 }
 0x739   :  { %v11155_v34 = vadd.f32 %v11154_v33, %v11115_v63 }
 0x73a   :  { %v12890_v2 = vpop.f32.mrf.mxu1 }
 0x73b   :  { %11160 = vst [vmem:[%s15476_s7] sm:$0xff] %v11155_v34 }
 0x73c   :  { %v11157_v50 = vpop.f32.mrf.mxu1 }
 0x73e   :  { %v12891_v29 = vpop.f32.mrf.mxu1 }
 0x73f   :  { %11165 = vsyncpa [#allocation3], 1 }
 0x740   :  { %11166 = vsyncpa [#allocation5], 1 }
 0x741   :  { %11167 = vsyncpa [#allocation8], 1 }
 0x742   :  { %11168 = vsyncpa [#allocation11], 1 }

</bundles_post_ra>
